<compile_context>
chip_gen: v7x
topology: tpu7x:2x2x1
jax: 0.10.0
libtpu: 0.0.40
codegen_flags: <defaults>
</compile_context>

<pallas_src>
import functools

import jax
import jax.numpy as jnp
from jax import lax
from jax.experimental import pallas as pl
from jax.experimental.pallas import tpu as pltpu


def _round_up(x, m):
    return ((x + m - 1) // m) * m


# ----------------------------- Pallas kernel --------------------------------
def linear_kernel(x_ref, w_ref, b_ref, o_ref, *, apply_relu: bool):
    # x_ref: (TM, K)  w_ref: (K, TN)  b_ref: (1, TN)  o_ref: (TM, TN)
    y = lax.dot_general(
        x_ref[...], w_ref[...],
        dimension_numbers=(((1,), (0,)), ((), ())),
        precision=lax.Precision.HIGHEST,
        preferred_element_type=jnp.float32)
    y = y + b_ref[...]                      # bias (broadcast over rows)
    if apply_relu:
        y = jnp.maximum(y, 0.0)             # ReLU
    o_ref[...] = y.astype(o_ref.dtype)


def fused_linear(x, w, b, *, apply_relu, tm_max=256, tn_max=512):
    """y = [ReLU](x @ w + b).  x: (M, K), w: (K, N), b: (N,)."""
    m, k = x.shape
    k2, n = w.shape
    assert k == k2 and b.shape == (n,)

    # Row tile: multiple of 8 (sublanes). Column tile: multiple of 128 (lanes)
    # so output stores are lane-dense (no masked partial vst).
    m_pad = _round_up(m, 8)
    tm = min(tm_max, m_pad)
    m_pad = _round_up(m_pad, tm)

    n_pad = _round_up(n, 128)
    tn = min(tn_max, n_pad)
    n_pad = _round_up(n_pad, tn)

    x_p = jnp.pad(x, ((0, m_pad - m), (0, 0)))
    w_p = jnp.pad(w, ((0, 0), (0, n_pad - n)))
    b_p = jnp.pad(b, (0, n_pad - n)).reshape(1, n_pad)

    # VMEM: double-buffered x / w / bias / out blocks, plus headroom.
    # Capped at 56 MiB so it also fits v7x's 64 MiB per-TensorCore VMEM.
    vmem_bytes = 2 * 4 * (tm * k + k * tn + tn + tm * tn) + (4 << 20)
    vmem_bytes = int(max(min(vmem_bytes, 56 << 20), 16 << 20))

    out = pl.pallas_call(
        functools.partial(linear_kernel, apply_relu=apply_relu),
        out_shape=jax.ShapeDtypeStruct((m_pad, n_pad), jnp.float32),
        grid_spec=pltpu.PrefetchScalarGridSpec(
            num_scalar_prefetch=0,
            grid=(m_pad // tm, n_pad // tn),
            in_specs=[
                pl.BlockSpec((tm, k), lambda i, j: (i, 0)),   # activations
                pl.BlockSpec((k, tn), lambda i, j: (0, j)),   # weight cols
                pl.BlockSpec((1, tn), lambda i, j: (0, j)),   # bias slice
            ],
            out_specs=pl.BlockSpec((tm, tn), lambda i, j: (i, j)),
        ),
        compiler_params=pltpu.CompilerParams(
            dimension_semantics=("parallel", "parallel"),
            vmem_limit_bytes=vmem_bytes),
    )(x_p, w_p, b_p)

    return out[:m, :n]


# --------------------------- AlexOutputBlock forward -------------------------
def alex_output_block(x, params):
    """x: (batch, in_channels).  params: ((w1,b1),(w2,b2),(w3,b3)) with
    w_i stored as (in_features, out_features)."""
    (w1, b1), (w2, b2), (w3, b3) = params

    # fc1: AlexDense = Linear -> ReLU -> Dropout
    h = fused_linear(x, w1, b1, apply_relu=True)
    # TODO(synk): Dropout(p=0.5) is identity in eval mode; training-mode
    # stochastic dropout (pltpu.prng_seed / prng_random_bits) not implemented.

    # fc2: AlexDense = Linear -> ReLU -> Dropout (identity at inference)
    h = fused_linear(h, w2, b2, apply_relu=True)

    # fc3: plain Linear
    logits = fused_linear(h, w3, b3, apply_relu=False)
    return logits


# ------------------------------- reference ----------------------------------
def _reference(x, params):
    (w1, b1), (w2, b2), (w3, b3) = params
    hp = lax.Precision.HIGHEST
    h = jnp.maximum(jnp.dot(x, w1, precision=hp) + b1, 0.0)
    h = jnp.maximum(jnp.dot(h, w2, precision=hp) + b2, 0.0)
    return jnp.dot(h, w3, precision=hp) + b3


if __name__ == "__main__":
    BATCH = 2
    IN_CHANNELS = 256      # flattened conv features (real AlexNet uses 9216)
    MID_CHANNELS = 4096    # hard-coded in AlexOutputBlock
    CLASSES = 10

    key = jax.random.PRNGKey(0)
    kx, kw1, kw2, kw3, kb1, kb2, kb3 = jax.random.split(key, 7)

    def make_linear(kw, kb, fan_in, fan_out):
        w = jax.random.normal(kw, (fan_in, fan_out), jnp.float32) / jnp.sqrt(
            jnp.float32(fan_in))
        b = jax.random.normal(kb, (fan_out,), jnp.float32) * 0.01
        return w, b

    x = jax.random.normal(kx, (BATCH, IN_CHANNELS), dtype=jnp.float32)
    params = (
        make_linear(kw1, kb1, IN_CHANNELS, MID_CHANNELS),
        make_linear(kw2, kb2, MID_CHANNELS, MID_CHANNELS),
        make_linear(kw3, kb3, MID_CHANNELS, CLASSES),
    )

    out = alex_output_block(x, params)
    out = jax.block_until_ready(out)

    ref = _reference(x, params)
    assert out.shape == (BATCH, CLASSES), out.shape
    max_err = float(jnp.max(jnp.abs(out - ref)))
    assert jnp.allclose(out, ref, atol=2e-3, rtol=2e-3), max_err

    print("KERNEL_OK")
</pallas_src>

<mosaic_0001>
module attributes {stable_mosaic.version = 11 : i64} {
  func.func @linear_kernel(%arg0: i32, %arg1: i32, %arg2: memref<8x256xf32, #tpu.memory_space<vmem>>, %arg3: memref<256x512xf32, #tpu.memory_space<vmem>>, %arg4: memref<1x512xf32, #tpu.memory_space<vmem>>, %arg5: memref<8x512xf32, #tpu.memory_space<vmem>>) attributes {dimension_semantics = [#tpu.dimension_semantics<parallel>, #tpu.dimension_semantics<parallel>], iteration_bounds = array<i64: 1, 8>, scalar_prefetch = 0 : i64, scratch_operands = 0 : i64, tpu.core_type = #tpu.core_type<tc>, window_params = [{transform_indices = @transform_0, window_bounds = array<i64: 8, 256>}, {transform_indices = @transform_1, window_bounds = array<i64: 256, 512>}, {transform_indices = @transform_2, window_bounds = array<i64: 1, 512>}, {transform_indices = @transform_3, window_bounds = array<i64: 8, 512>}]} {
    %c0 = arith.constant 0 : index
    %c0_0 = arith.constant 0 : index
    %0 = vector.load %arg2[%c0, %c0_0] : memref<8x256xf32, #tpu.memory_space<vmem>>, vector<8x256xf32>
    %c0_1 = arith.constant 0 : index
    %c0_2 = arith.constant 0 : index
    %1 = vector.load %arg3[%c0_1, %c0_2] : memref<256x512xf32, #tpu.memory_space<vmem>>, vector<256x512xf32>
    %cst = arith.constant dense<0.000000e+00> : vector<8x512xf32>
    %2 = tpu.matmul %0, %1, %cst {dimension_numbers = #tpu.dot_dimension_numbers<[1], [0], [0], [1], [0, 0, 1, 1], [], []>, precision = #tpu.contract_precision<fp32>} : vector<8x256xf32>, vector<256x512xf32>, vector<8x512xf32> -> vector<8x512xf32>
    %c0_3 = arith.constant 0 : index
    %c0_4 = arith.constant 0 : index
    %3 = vector.load %arg4[%c0_3, %c0_4] : memref<1x512xf32, #tpu.memory_space<vmem>>, vector<1x512xf32>
    %4 = vector.broadcast %3 : vector<1x512xf32> to vector<8x512xf32>
    %5 = arith.addf %2, %4 : vector<8x512xf32>
    %cst_5 = arith.constant 0.000000e+00 : f32
    %6 = vector.broadcast %cst_5 : f32 to vector<8x512xf32>
    %7 = arith.maximumf %5, %6 : vector<8x512xf32>
    %c0_6 = arith.constant 0 : index
    %c0_7 = arith.constant 0 : index
    %8 = vector.load %arg5[%c0_6, %c0_7] : memref<8x512xf32, #tpu.memory_space<vmem>>, vector<8x512xf32>
    tpu.vector_store %arg5[%c0_6, %c0_7], %7 {strides = array<i32>} : memref<8x512xf32, #tpu.memory_space<vmem>>, vector<8x512xf32>,
    return
  }
  func.func @transform_0(%arg0: i32, %arg1: i32) -> (i32, i32) {
    %c0_i32 = arith.constant 0 : i32
    %c0_i32_0 = arith.constant 0 : i32
    return %arg0, %c0_i32 : i32, i32
  }
  func.func @transform_1(%arg0: i32, %arg1: i32) -> (i32, i32) {
    %c0_i32 = arith.constant 0 : i32
    %c0_i32_0 = arith.constant 0 : i32
    return %c0_i32, %arg1 : i32, i32
  }
  func.func @transform_2(%arg0: i32, %arg1: i32) -> (i32, i32) {
    %c0_i32 = arith.constant 0 : i32
    %c0_i32_0 = arith.constant 0 : i32
    return %c0_i32, %arg1 : i32, i32
  }
  func.func @transform_3(%arg0: i32, %arg1: i32) -> (i32, i32) {
    %c0_i32 = arith.constant 0 : i32
    return %arg0, %arg1 : i32, i32
  }
}

</mosaic_0001>

<bundles_post_ra>
// kernel: tpu_custom_call.1
= control target key start
LH: loop header
LB: loop body
LE: loop exit
PB: predicated region body
PF: predicated region fallthrough
CT: control target
= control target key end

     0   :  { %s6203_s0 = inlined_call_operand.hbm [shape: f32[8,256], index: 0, kind: input, shape index: {}]   ;;  %s6204_s1 = inlined_call_operand.hbm [shape: f32[256,4096], index: 1, kind: input, shape index: {}]   ;;  %s6205_s2 = inlined_call_operand.hbm [shape: f32[1,4096], index: 2, kind: input, shape index: {}]   ;;  %s6206_s3 = inlined_call_operand.hbm [shape: f32[8,4096], index: 3, kind: output, shape index: {}]  }
   0x1   :  { %6716 = sst [smem:[#allocation210_spill]] %s6204_s1 }
   0x2   :  { %8 = vsyncpa [#allocation3], 0 }
   0x3   :  { %9 = vsyncpa [#allocation6], 0 }
   0x4   :  { %11 = vsyncpa [#allocation6 + $0x1], 0 }
   0x5   :  { %12 = vsyncpa [#allocation4], 0 }
   0x6   :  { %14 = vsyncpa [#allocation4 + $0x1], 0  ;;  %s4222_s12 = smov 0   ;;  %s4224_s13 = smov 0  }
   0x7   :  { %s4226_s14 = smov 0   ;;  %s4228_s15 = smov 0  }
   0x8   :  { %s4230_s16 = smov 0   ;;  %s4232_s17 = smov 0  }
   0x9 LB: > { %s29_s18 = sadd.s32 1, %s4189_s16  ;;  %s65_s19 = sadd.s32 1, %s4181_s14  ;;  %s4193_s17 = sphi %s4232_s17, %s20_s17   ;;  %s4189_s16 = sphi %s4230_s16, %s7498_s16   ;;  %s4185_s15 = sphi %s4228_s15, %s7497_s15   ;;  %s4181_s14 = sphi %s4226_s14, %s7496_s14   ;;  %s4177_s13 = sphi %s4224_s13, %s7495_s13   ;;  %s4173_s12 = sphi %s4222_s12, %s7494_s12  }
   0xa   : > { %p30_p0 = scmp.ge.s32.totalorder %s29_s18, 8  ;;  %p72_p1 = scmp.ne.s32.totalorder %s4181_s14, %s4177_s13 }
   0xb   : > { %p73_p2 = scmp.eq.s32.totalorder %s4193_s17, 0  ;;  %p3964_p4 = scmp.lt.s32.totalorder %s4193_s17, 8 }
   0xc   : > { %s7500_s18 = smov (%p30_p0, %s29_s18), 0  ;;  %s170_s21 = sand.u32 1, %s4193_s17  }
   0xd   : > { %p74_p3 = por %p73_p2, %p72_p1  ;;  %s62_s20 = ssub.s32 %s4189_s16, %s7500_s18 }
   0xe   : > { %p63_p5 = scmp.eq.s32.totalorder %s62_s20, 0  ;;  %s172_s22 = sand.u32 1, %s4181_s14  }
   0xf   : > { %s3143_s23 = sshll.u32 %s4189_s16, 9  ;;  %s3127_s25 = sshll.u32 %s172_s22, 10 }
  0x10   : > { %s4269_s24 = scalar_select %p63_p5, %s4181_s14, %s65_s19  }
  0x11   : > { %s6717_s1 = sld [smem:[#allocation210_spill]]  ;;  %p4278_p6 = pnand %p3964_p4, %p74_p3 }
  0x12   : > { %s174_s30 = scalar_lea.vmem [#allocation5], %s3127_s25  ;;  %s4284_s5 = scalar_lea.sflag [#allocation6], %s170_s21 }
  0x13   : > { %s181_s4 = sshll.u32 %s174_s30, 4  ;;  %p4021_p8 = pneg %p4278_p6  ;;  %s4282_s4 = int_to_ptr.vmem [resolvable:$true] %s181_s4 }
  0x17   : > { %s4276_s28 = scalar_lea.hbm %s6717_s1, %s3143_s23  ;;  %s4024_s9 = scalar_lea.hbm %s6717_s1, 131072 }
  0x18   : > { %s4019_s6 = scalar_lea.hbm %s4276_s28, 16384  ;;  %p4025_p11 = scmp.lt.u32.totalorder %s4276_s28, %s6717_s1 }
  0x19   : > { %p4020_p7 = scmp.ne.s32.totalorder %s4276_s28, %s4019_s6  ;;  %p4026_p12 = scmp.lt.u32.totalorder %s4024_s9, %s4019_s6 }
  0x1a   : > { %p4028_p0 = scmp.lt.u32.totalorder %s4019_s6, %s4276_s28 }
  0x1b   : > { %p4022_p9 = pnand %p4021_p8, %p4020_p7  ;;  %p4027_p13 = por %p4026_p12, %p4025_p11 }
  0x1d   : > { %p4023_p10 = pneg %p4022_p9  ;;  %p4029_p2 = por %p4028_p0, %p4027_p13 }
  0x1f   : > { %p4030_p3 = pnand %p4029_p2, %p4023_p10 }
  0x21   : > { %4033 = shalt.err (!%p4030_p3)
}
  0x22   : > { %s4034_s19 = scalar_lea.vmem %s4282_s4, 16384  ;;  %s4195_s20 = smov [#allocation5]  }
  0x23   : > { %p4035_p4 = scmp.ne.s32.totalorder %s4282_s4, %s4034_s19  ;;  %s4039_s21 = sshll.u32 %s4195_s20, 4  ;;  %s4040_s21 = int_to_ptr.vmem [resolvable:$false] %s4039_s21 }
  0x24   : > { %s4041_s23 = scalar_lea.vmem %s4040_s21, 32768  ;;  %p4042_p9 = scmp.lt.s32.totalorder %s4282_s4, %s4040_s21 }
  0x25   : > { %p4037_p5 = pnand %p4035_p4, %p4021_p8  ;;  %p4043_p11 = scmp.lt.s32.totalorder %s4041_s23, %s4034_s19 }
  0x27   : > { %p4038_p7 = pneg %p4037_p5  ;;  %p4044_p12 = por %p4043_p11, %p4042_p9 }
  0x29   : > { %p4045_p13 = pnand %p4044_p12, %p4038_p7 }
  0x2b   : > { %4048 = shalt.err (!%p4045_p13)
}
  0x2c   : > { %s4196_s25 = smov 4096   ;;  %s4197_s26 = smov 512  }
  0x2d   : > { %s4198_s27 = smov 32   ;;  %s4313_s30 = sadd.s32 4294967295, %s4193_s17  }
  0x2e   : > { %3955 = dma.hbm_to_vmem [thread:$0]  (!%p4278_p6), %s4276_s28, 16384, %s4282_s4, %s4284_s5, %s4196_s25, %s4197_s26, %s4198_s27  }
  0x2f   : > { %s3123_s6 = sadd.s32 4294967294, %s4193_s17   ;;  %p78_p10 = scmp.ne.s32.totalorder %s4177_s13, %s4173_s12 }
  0x30   : > { %p6207_p0 = scmp.eq.s32.totalorder %s4313_s30, 0  ;;  %p130_p2 = scmp.eq.s32.totalorder %s4313_s30, 7 }
  0x31   : > { %p136_p3 = scmp.eq.s32.totalorder %s3123_s6, 7  ;;  %p3124_p5 = scmp.ge.s32.totalorder %s4193_s17, 1 }
  0x32   : > { %p4322_p4 = por %p6207_p0, %p78_p10  ;;  %p4330_p7 = por %p130_p2, %p72_p1 }
  0x33   : > { %p4334_p9 = por %p136_p3, %p78_p10  ;;  %p143_p11 = scmp.lt.s32.totalorder %s4193_s17, 9 }
  0x34   : > { %s6719_s7 = scalar_select %p4322_p4, 1, 0 }
  0x35   : > { %s6720_s28 = scalar_select %p4330_p7, 1, 0 }
  0x36   : > { %s6721_s4 = scalar_select %p4334_p9, 1, 0 }
  0x37   : > { %s3130_s8 = sshll.u32 %s172_s22, 2  ;;  %p4341_p12 = pnand %p3124_p5, %p143_p11 }
  0x38   : > { %s4199_s10 = smov [#allocation2]   ;;  %s3144_s19 = sshll.u32 %s4189_s16, 6 }
  0x39   : > { %s6722_s9 = scalar_select %p4341_p12, 1, 0 }
  0x3a   : > { %s159_s11 = sshll.u32 %s4199_s10, 4  ;;  %p3948_p1 = pneg %p4341_p12  ;;  %s4345_s11 = int_to_ptr.vmem [resolvable:$true] %s159_s11 }
  0x3b   : > { %s4353_s23 = scalar_lea.hbm %s6205_s2, %s3144_s19  ;;  %s195_s22 = scalar_lea.vmem [#allocation7], %s3130_s8 }
  0x3c   : > { %s203_s25 = sshll.u32 %s195_s22, 4  ;;  %p4357_p13 = pnand %p3948_p1, %p6207_p0  ;;  %s204_s25 = int_to_ptr.vmem [resolvable:$true] %s203_s25 }
  0x3d   : > { %s4049_s27 = scalar_lea.hbm %s4353_s23, 64  ;;  %s4054_s19 = scalar_lea.hbm %s6205_s2, 512 }
  0x3e   : > { %s6723_s26 = scalar_select %p4357_p13, 1, 0 }
  0x3f   : > { %p4050_p10 = scmp.ne.s32.totalorder %s4353_s23, %s4049_s27  ;;  %p4055_p5 = scmp.lt.u32.totalorder %s4353_s23, %s6205_s2 }
  0x40   : > { %p4056_p11 = scmp.lt.u32.totalorder %s4054_s19, %s4049_s27  ;;  %p4058_p0 = scmp.lt.u32.totalorder %s4049_s27, %s4353_s23 }
  0x41   : > { %p4052_p2 = pnand %p4050_p10, %p4021_p8 }
  0x42   : > { %p4057_p1 = por %p4056_p11, %p4055_p5 }
  0x43   : > { %p4053_p3 = pneg %p4052_p2 }
  0x44   : > { %p4059_p9 = por %p4058_p0, %p4057_p1 }
  0x46   : > { %p4060_p7 = pnand %p4059_p9, %p4053_p3 }
  0x48   : > { %4063 = shalt.err (!%p4060_p7)
}
  0x49   : > { %s4064_s8 = scalar_lea.vmem %s204_s25, 64  ;;  %s4200_s22 = smov [#allocation7]  }
  0x4a   : > { %p4065_p4 = scmp.ne.s32.totalorder %s204_s25, %s4064_s8  ;;  %s4069_s6 = sshll.u32 %s4200_s22, 4  ;;  %s4070_s6 = int_to_ptr.vmem [resolvable:$false] %s4069_s6 }
  0x4b   : > { %s4071_s10 = scalar_lea.vmem %s4070_s6, 128  ;;  %p4072_p12 = scmp.lt.s32.totalorder %s204_s25, %s4070_s6 }
  0x4c   : > { %p4067_p10 = pnand %p4065_p4, %p4021_p8  ;;  %p4073_p13 = scmp.lt.s32.totalorder %s4071_s10, %s4064_s8 }
  0x4e   : > { %p4068_p2 = pneg %p4067_p10  ;;  %p4074_p5 = por %p4073_p13, %p4072_p12 }
  0x50   : > { %p4075_p11 = pnand %p4074_p5, %p4068_p2 }
  0x52   : > { %4078 = shalt.err (!%p4075_p11)
}
  0x53   : > { %3958 = dma.hbm_to_vmem [thread:$0]  (!%p4278_p6), %s4353_s23, 64, %s204_s25, %s4284_s5  }
  0x54   : > { %s4079_s20 = scalar_lea.hbm %s6203_s0, 256  ;;  %p6724_p0 = scmp.ne.s32.totalorder %s6723_s26, 0 }
  0x55   : > { %p4080_p8 = scmp.ne.s32.totalorder %s6203_s0, %s4079_s20  ;;  %p4086_p12 = scmp.lt.u32.totalorder %s4079_s20, %s6203_s0 }
  0x56   : > { %p4081_p4 = pneg %p6724_p0 }
  0x58   : > { %p4082_p7 = pnand %p4081_p4, %p4080_p8 }
  0x5a   : > { %p4083_p9 = pneg %p4082_p7 }
  0x5c   : > { %p4088_p13 = pnand %p4086_p12, %p4083_p9 }
  0x5e   : > { %4091 = shalt.err (!%p4088_p13)
}
  0x5f   : > { %s4092_s29 = scalar_lea.vmem %s4345_s11, 256  ;;  %p4100_p10 = scmp.lt.s32.totalorder %s4345_s11, %s4345_s11 }
  0x60   : > { %p4093_p6 = scmp.ne.s32.totalorder %s4345_s11, %s4092_s29  ;;  %p4101_p2 = scmp.lt.s32.totalorder %s4092_s29, %s4092_s29 }
  0x62   : > { %p4095_p3 = pnand %p4093_p6, %p4081_p4  ;;  %p4102_p5 = por %p4101_p2, %p4100_p10 }
  0x64   : > { %p4096_p1 = pneg %p4095_p3 }
  0x66   : > { %p4103_p11 = pnand %p4102_p5, %p4096_p1 }
  0x68   : > { %4106 = shalt.err (!%p4103_p11)
}
  0x69   : > { %3951 = dma.hbm_to_vmem [thread:$0]  (!%p6724_p0), %s6203_s0, 256, %s4345_s11, [#allocation3]  }
  0x6a   : > { %p6725_p8 = scmp.ne.s32.totalorder %s6722_s9, 0 }
  0x6c   : > { %212 = sbr.rel (%p6725_p8) target bundleno = 827 (0x33b), region = 32 }
  0x73   : > { %p6726_p7 = scmp.eq.s32.totalorder %s4313_s30, 0 }
  0x75   : > { %4160 = dma.done.wait (%p6726_p7), [#allocation3], 256   ;;  %p6727_p4 = pmov %p6726_p7 }
  0x76   : > { %s218_s23 = sand.u32 1, %s4313_s30   ;;  %s4410_s25 = sand.u32 1, %s4177_s13  }
  0x77   : > { %4162 = vsyncadd (%p6727_p4), [#allocation3], 4294967040  ;;  %s3135_s26 = sshll.u32 %s4410_s25, 10  ;;  %s219_s6 = scalar_lea.sflag [#allocation6], %s218_s23 }
  0x78   : > { %s4413_s10 = scalar_lea.vmem [#allocation5], %s3135_s26  ;;  %p6728_p0 = scmp.ne.s32.totalorder %s6719_s7, 0 }
  0x7a   : > { %4164 = dma.done.wait (%p6728_p0), %s219_s6, 16448  }
  0x7b   : > { %4166 = vsyncadd (%p6728_p0), %s219_s6, 4294950848  ;;  %v265_v0 = vld [vmem:[%s4413_s10 + $0x8] sm:$0xff]  ;;  %v267_v2 = vld [vmem:[%s4413_s10 + $0x18] sm:$0xff]  ;;  %s3136_s30 = sshll.u32 %s4410_s25, 2  ;;  %s3137_s9 = sshll.u32 %s4410_s25, 5 }
  0x7c   : > { %v269_v1 = vld [vmem:[%s4413_s10 + $0x28] sm:$0xff]  ;;  %v414_v3 = vand.u32 4294901760, %v265_v0  ;;  %v271_v5 = vld [vmem:[%s4413_s10 + $0x38] sm:$0xff]  ;;  %v1698_v6 = vand.u32 4294901760, %v267_v2  ;;  %v264_v7 = vld [vmem:[%s4413_s10] sm:$0xff]  ;;  %s231_s7 = scalar_lea.vmem [#allocation7], %s3136_s30 }
  0x7d   : > { %v418_v4 = vand.u32 4294901760, %v269_v1  ;;  %v268_v8 = vld [vmem:[%s4413_s10 + $0x20] sm:$0xff]  ;;  %v1702_v9 = vand.u32 4294901760, %v271_v5  ;;  %v416_v10 = vand.u32 4294901760, %v264_v7  ;;  %v266_v12 = vld [vmem:[%s4413_s10 + $0x10] sm:$0xff]  ;;  %v273_v14 = vld [vmem:[%s4413_s10 + $0x48] sm:$0xff] }
  0x7e   : > { %v420_v11 = vand.u32 4294901760, %v268_v8  ;;  %v270_v13 = vld [vmem:[%s4413_s10 + $0x30] sm:$0xff]  ;;  %v4430_v16 = vsub.f32 %v265_v0, %v414_v3  ;;  %v4434_v18 = vsub.f32 %v267_v2, %v1698_v6  ;;  %v277_v19 = vld [vmem:[%s4413_s10 + $0x68] sm:$0xff]  ;;  %v275_v20 = vld [vmem:[%s4413_s10 + $0x58] sm:$0xff]  ;;  %v1700_v28 = vand.u32 4294901760, %v266_v12  ;;  %s3145_s11 = sshll.u32 %s4185_s15, 9 }
  0x7f   : > { %v4428_v15 = vpack.c.bf16 %v418_v4, %v414_v3  ;;  %v4432_v17 = vsub.f32 %v269_v1, %v418_v4  ;;  %v279_v21 = vld [vmem:[%s4413_s10 + $0x78] sm:$0xff]  ;;  %v4439_v22 = vpack.c.bf16 %v1702_v9, %v1698_v6  ;;  %v4441_v23 = vsub.f32 %v271_v5, %v1702_v9  ;;  %v272_v26 = vld [vmem:[%s4413_s10 + $0x40] sm:$0xff]  ;;  %v274_v36 = vld [vmem:[%s4413_s10 + $0x50] sm:$0xff]  ;;  %s258_s27 = scalar_lea.vmem [#allocation8], %s3137_s9  ;;  %s6155_s8 = scalar_lea.hbm %s6206_s3, %s3145_s11 }
  0x80   : > { %6730 = vst [vmem:[#allocation13_spill] sm:$0xff] %v4430_v16  ;;  %6732 = vst [vmem:[#allocation15_spill] sm:$0xff] %v4434_v18  ;;  %v4443_v24 = vpack.c.bf16 %v420_v11, %v416_v10  ;;  %v4445_v25 = vsub.f32 %v264_v7, %v416_v10  ;;  %v4449_v27 = vsub.f32 %v268_v8, %v420_v11  ;;  %v1704_v29 = vand.u32 4294901760, %v270_v13  ;;  %v276_v31 = vld [vmem:[%s4413_s10 + $0x60] sm:$0xff]  ;;  %v278_v37 = vld [vmem:[%s4413_s10 + $0x70] sm:$0xff]  ;;  %s3007_s19 = sshll.u32 %s258_s27, 4  ;;  %s6157_s19 = int_to_ptr.vmem [resolvable:$true] %s3007_s19 }
  0x81   : > { %6729 = vst [vmem:[#allocation12_spill] sm:$0xff] %v4428_v15  ;;  %6731 = vst [vmem:[#allocation14_spill] sm:$0xff] %v4432_v17  ;;  %3147 = vmatprep.subr.bf16.mxu0 %v4428_v15  ;;  %v422_v30 = vand.u32 4294901760, %v273_v14  ;;  %3531 = vmatprep.subr.bf16.mxu1 %v4439_v22  ;;  %v426_v32 = vand.u32 4294901760, %v277_v19  ;;  %v1706_v33 = vand.u32 4294901760, %v275_v20  ;;  %v1710_v34 = vand.u32 4294901760, %v279_v21 }
  0x82   : > { %6733 = vst [vmem:[#allocation16_spill] sm:$0xff] %v4439_v22  ;;  %6734 = vst [vmem:[#allocation17_spill] sm:$0xff] %v4441_v23  ;;  %3149 = vmatpush1.bf16.msra.mxu0 %v4443_v24  ;;  %v424_v35 = vand.u32 4294901760, %v272_v26  ;;  %v4456_v38 = vpack.c.bf16 %v1704_v29, %v1700_v28  ;;  %v4458_v39 = vsub.f32 %v266_v12, %v1700_v28  ;;  %v281_v42 = vld [vmem:[%s4413_s10 + $0x88] sm:$0xff]  ;;  %v283_v44 = vld [vmem:[%s4413_s10 + $0x98] sm:$0xff]  ;;  %v428_v51 = vand.u32 4294901760, %v276_v31 }
  0x83   : > { %6735 = vst [vmem:[#allocation18_spill] sm:$0xff] %v4443_v24  ;;  %6736 = vst [vmem:[#allocation19_spill] sm:$0xff] %v4445_v25  ;;  %v4460_v40 = vsub.f32 %v270_v13, %v1704_v29  ;;  %v4462_v41 = vsub.f32 %v273_v14, %v422_v30  ;;  %v285_v43 = vld [vmem:[%s4413_s10 + $0xa8] sm:$0xff]  ;;  %v4467_v45 = vpack.c.bf16 %v426_v32, %v422_v30  ;;  %v287_v49 = vld [vmem:[%s4413_s10 + $0xb8] sm:$0xff]  ;;  %v1708_v53 = vand.u32 4294901760, %v274_v36  ;;  %s2991_s15 = scalar_lea.sflag [#allocation4], %s4410_s25 }
  0x84   : > { %6737 = vst [vmem:[#allocation20_spill] sm:$0xff] %v4449_v27  ;;  %6738 = vst [vmem:[#allocation21_spill] sm:$0xff] %v4456_v38  ;;  %v4469_v46 = vsub.f32 %v277_v19, %v426_v32  ;;  %v4471_v47 = vpack.c.bf16 %v1710_v34, %v1706_v33  ;;  %v4473_v48 = vsub.f32 %v275_v20, %v1706_v33  ;;  %3533 = vmatpush1.bf16.msra.mxu1 %v4456_v38  ;;  %v280_v58 = vld [vmem:[%s4413_s10 + $0x80] sm:$0xff]  ;;  %v282_v0 = vld [vmem:[%s4413_s10 + $0x90] sm:$0xff]  ;;  %s4107_s22 = scalar_lea.vmem %s6157_s19, 512  ;;  %p7492_p12 = scmp.ne.s32.totalorder %s6720_s28, 0 }
  0x85   : > { %6739 = vst [vmem:[#allocation22_spill] sm:$0xff] %v4458_v39  ;;  %6740 = vst [vmem:[#allocation23_spill] sm:$0xff] %v4460_v40  ;;  %v4477_v50 = vsub.f32 %v279_v21, %v1710_v34  ;;  %v4479_v52 = vsub.f32 %v272_v26, %v424_v35  ;;  %3151 = vmatprep.subr.bf16.mxu0 %v4467_v45  ;;  %v1712_v54 = vand.u32 4294901760, %v278_v37  ;;  %v430_v55 = vand.u32 4294901760, %v281_v42  ;;  %v284_v59 = vld [vmem:[%s4413_s10 + $0xa0] sm:$0xff]  ;;  %v286_v1 = vld [vmem:[%s4413_s10 + $0xb0] sm:$0xff]  ;;  %p4108_p9 = scmp.ne.s32.totalorder %s6157_s19, %s4107_s22 }
  0x86   : > { %6741 = vst [vmem:[#allocation24_spill] sm:$0xff] %v4462_v41  ;;  %6742 = vst [vmem:[#allocation25_spill] sm:$0xff] %v4467_v45  ;;  %3535 = vmatprep.subr.bf16.mxu1 %v4471_v47  ;;  %v434_v56 = vand.u32 4294901760, %v285_v43  ;;  %v1714_v57 = vand.u32 4294901760, %v283_v44  ;;  %v4485_v60 = vpack.c.bf16 %v428_v51, %v424_v35  ;;  %v4487_v61 = vsub.f32 %v276_v31, %v428_v51  ;;  %v289_v2 = vld [vmem:[%s4413_s10 + $0xc8] sm:$0xff]  ;;  %v291_v8 = vld [vmem:[%s4413_s10 + $0xd8] sm:$0xff] }
  0x87   : > { %6743 = vst [vmem:[#allocation26_spill] sm:$0xff] %v4469_v46  ;;  %6744 = vst [vmem:[#allocation27_spill] sm:$0xff] %v4471_v47  ;;  %v4489_v62 = vsub.f32 %v274_v36, %v1708_v53  ;;  %v1718_v63 = vand.u32 4294901760, %v287_v49  ;;  %v4494_v3 = vpack.c.bf16 %v1712_v54, %v1708_v53  ;;  %v4496_v4 = vsub.f32 %v278_v37, %v1712_v54  ;;  %v293_v7 = vld [vmem:[%s4413_s10 + $0xe8] sm:$0xff]  ;;  %v295_v9 = vld [vmem:[%s4413_s10 + $0xf8] sm:$0xff]  ;;  %p4109_p13 = pnand %p4108_p9, %p7492_p12  ;;  %s4201_s29 = smov [#allocation8]  }
  0x88   : > { %6745 = vst [vmem:[#allocation28_spill] sm:$0xff] %v4473_v48  ;;  %6746 = vst [vmem:[#allocation29_spill] sm:$0xff] %v4477_v50  ;;  %v4498_v5 = vpack.c.bf16 %v434_v56, %v430_v55  ;;  %v4500_v6 = vsub.f32 %v281_v42, %v430_v55  ;;  %3153 = vmatpush1.bf16.msra.mxu0 %v4485_v60  ;;  %v4506_v10 = vsub.f32 %v285_v43, %v434_v56  ;;  %v288_v31 = vld [vmem:[%s4413_s10 + $0xc0] sm:$0xff]  ;;  %v290_v37 = vld [vmem:[%s4413_s10 + $0xd0] sm:$0xff]  ;;  %s4111_s1 = sshll.u32 %s4201_s29, 4  ;;  %s4112_s1 = int_to_ptr.vmem [resolvable:$false] %s4111_s1 }
  0x89   : > { %6747 = vst [vmem:[#allocation30_spill] sm:$0xff] %v4479_v52  ;;  %6748 = vst [vmem:[#allocation31_spill] sm:$0xff] %v4485_v60  ;;  %v4508_v11 = vpack.c.bf16 %v1718_v63, %v1714_v57  ;;  %v4510_v12 = vsub.f32 %v283_v44, %v1714_v57  ;;  %v4512_v13 = vsub.f32 %v287_v49, %v1718_v63  ;;  %3537 = vmatpush1.bf16.msra.mxu1 %v4494_v3  ;;  %v292_v36 = vld [vmem:[%s4413_s10 + $0xe0] sm:$0xff]  ;;  %v294_v42 = vld [vmem:[%s4413_s10 + $0xf0] sm:$0xff]  ;;  %p4110_p6 = pneg %p4109_p13  ;;  %s4113_s5 = scalar_lea.vmem %s4112_s1, 1024 }
  0x8a   : > { %6749 = vst [vmem:[#allocation32_spill] sm:$0xff] %v4487_v61  ;;  %6750 = vst [vmem:[#allocation33_spill] sm:$0xff] %v4489_v62  ;;  %3155 = vmatprep.subr.bf16.mxu0 %v4498_v5  ;;  %v432_v14 = vand.u32 4294901760, %v280_v58  ;;  %v436_v19 = vand.u32 4294901760, %v284_v59  ;;  %v1716_v20 = vand.u32 4294901760, %v282_v0  ;;  %v1720_v21 = vand.u32 4294901760, %v286_v1  ;;  %p4114_p3 = scmp.lt.s32.totalorder %s6157_s19, %s4112_s1  ;;  %p4115_p1 = scmp.lt.s32.totalorder %s4113_s5, %s4107_s22 }
  0x8b   : > { %6751 = vst [vmem:[#allocation34_spill] sm:$0xff] %v4494_v3  ;;  %6752 = vst [vmem:[#allocation35_spill] sm:$0xff] %v4496_v4  ;;  %3539 = vmatprep.subr.bf16.mxu1 %v4508_v11  ;;  %v438_v26 = vand.u32 4294901760, %v289_v2  ;;  %v442_v28 = vand.u32 4294901760, %v293_v7  ;;  %v1722_v29 = vand.u32 4294901760, %v291_v8  ;;  %v1726_v30 = vand.u32 4294901760, %v295_v9 }
  0x8c   : > { %6753 = vst [vmem:[#allocation36_spill] sm:$0xff] %v4498_v5  ;;  %6754 = vst [vmem:[#allocation37_spill] sm:$0xff] %v4500_v6  ;;  %v4518_v32 = vpack.c.bf16 %v436_v19, %v432_v14  ;;  %v4520_v33 = vsub.f32 %v280_v58, %v432_v14  ;;  %v4522_v34 = vsub.f32 %v284_v59, %v436_v19  ;;  %v297_v53 = vld [vmem:[%s4413_s10 + $0x108] sm:$0xff]  ;;  %v299_v55 = vld [vmem:[%s4413_s10 + $0x118] sm:$0xff]  ;;  %v440_v59 = vand.u32 4294901760, %v288_v31  ;;  %p4116_p10 = por %p4115_p1, %p4114_p3 }
  0x8d   : > { %6755 = vst [vmem:[#allocation38_spill] sm:$0xff] %v4506_v10  ;;  %6756 = vst [vmem:[#allocation39_spill] sm:$0xff] %v4508_v11  ;;  %v4524_v35 = vpack.c.bf16 %v1720_v21, %v1716_v20  ;;  %v4529_v43 = vsub.f32 %v282_v0, %v1716_v20  ;;  %v4531_v44 = vsub.f32 %v286_v1, %v1720_v21  ;;  %v301_v54 = vld [vmem:[%s4413_s10 + $0x128] sm:$0xff]  ;;  %v444_v0 = vand.u32 4294901760, %v292_v36  ;;  %v303_v14 = vld [vmem:[%s4413_s10 + $0x138] sm:$0xff] }
  0x8e   : > { %6757 = vst [vmem:[#allocation40_spill] sm:$0xff] %v4510_v12  ;;  %6758 = vst [vmem:[#allocation41_spill] sm:$0xff] %v4512_v13  ;;  %v4533_v49 = vpack.c.bf16 %v442_v28, %v438_v26  ;;  %v4535_v51 = vsub.f32 %v289_v2, %v438_v26  ;;  %3157 = vmatpush1.bf16.msra.mxu0 %v4518_v32  ;;  %v4542_v56 = vsub.f32 %v293_v7, %v442_v28  ;;  %v296_v21 = vld [vmem:[%s4413_s10 + $0x100] sm:$0xff]  ;;  %v298_v28 = vld [vmem:[%s4413_s10 + $0x110] sm:$0xff]  ;;  %p4117_p2 = pnand %p4116_p10, %p4110_p6 }
  0x8f   : > { %6759 = vst [vmem:[#allocation42_spill] sm:$0xff] %v4518_v32  ;;  %6760 = vst [vmem:[#allocation43_spill] sm:$0xff] %v4520_v33  ;;  %3541 = vmatpush1.bf16.msra.mxu1 %v4524_v35  ;;  %v4544_v57 = vpack.c.bf16 %v1726_v30, %v1722_v29  ;;  %v4546_v58 = vsub.f32 %v291_v8, %v1722_v29  ;;  %v4549_v63 = vsub.f32 %v295_v9, %v1726_v30  ;;  %v300_v26 = vld [vmem:[%s4413_s10 + $0x120] sm:$0xff]  ;;  %v305_v32 = vld [vmem:[%s4413_s10 + $0x148] sm:$0xff] }
  0x90   : > { %6761 = vst [vmem:[#allocation44_spill] sm:$0xff] %v4522_v34  ;;  %6762 = vst [vmem:[#allocation45_spill] sm:$0xff] %v4524_v35  ;;  %3159 = vmatprep.subr.bf16.mxu0 %v4533_v49  ;;  %v1724_v1 = vand.u32 4294901760, %v290_v37  ;;  %v1728_v2 = vand.u32 4294901760, %v294_v42  ;;  %v4553_v7 = vsub.f32 %v288_v31, %v440_v59  ;;  %v446_v19 = vand.u32 4294901760, %v297_v53  ;;  %v309_v11 = vld [vmem:[%s4413_s10 + $0x168] sm:$0xff] }
  0x91   : > { %6763 = vst [vmem:[#allocation46_spill] sm:$0xff] %v4529_v43  ;;  %6764 = vst [vmem:[#allocation47_spill] sm:$0xff] %v4531_v44  ;;  %3543 = vmatprep.subr.bf16.mxu1 %v4544_v57  ;;  %v450_v20 = vand.u32 4294901760, %v301_v54  ;;  %v1730_v8 = vand.u32 4294901760, %v299_v55  ;;  %v4558_v29 = vpack.c.bf16 %v444_v0, %v440_v59  ;;  %v4560_v9 = vsub.f32 %v292_v36, %v444_v0  ;;  %v304_v60 = vld [vmem:[%s4413_s10 + $0x140] sm:$0xff]  ;;  %v310_v15 = vld [vmem:[%s4413_s10 + $0x170] sm:$0xff] }
  0x92   : > { %6765 = vst [vmem:[#allocation48_spill] sm:$0xff] %v4533_v49  ;;  %6766 = vst [vmem:[#allocation49_spill] sm:$0xff] %v4535_v51  ;;  %v4562_v30 = vpack.c.bf16 %v1728_v2, %v1724_v1  ;;  %v4564_v35 = vsub.f32 %v290_v37, %v1724_v1  ;;  %v302_v49 = vld [vmem:[%s4413_s10 + $0x130] sm:$0xff]  ;;  %v4569_v31 = vsub.f32 %v294_v42, %v1728_v2  ;;  %v1734_v36 = vand.u32 4294901760, %v303_v14  ;;  %v307_v2 = vld [vmem:[%s4413_s10 + $0x158] sm:$0xff] }
  0x93   : > { %6767 = vst [vmem:[#allocation50_spill] sm:$0xff] %v4542_v56  ;;  %6768 = vst [vmem:[#allocation51_spill] sm:$0xff] %v4544_v57  ;;  %v4571_v57 = vpack.c.bf16 %v450_v20, %v446_v19  ;;  %v4573_v3 = vsub.f32 %v297_v53, %v446_v19  ;;  %v4575_v5 = vsub.f32 %v301_v54, %v450_v20  ;;  %3161 = vmatpush1.bf16.msra.mxu0 %v4558_v29  ;;  %v311_v19 = vld [vmem:[%s4413_s10 + $0x178] sm:$0xff]  ;;  %v308_v47 = vld [vmem:[%s4413_s10 + $0x160] sm:$0xff] }
  0x94   : > { %6769 = vst [vmem:[#allocation52_spill] sm:$0xff] %v4546_v58  ;;  %6770 = vst [vmem:[#allocation53_spill] sm:$0xff] %v4549_v63  ;;  %3545 = vmatpush1.bf16.msra.mxu1 %v4562_v30  ;;  %v4579_v37 = vsub.f32 %v299_v55, %v1730_v8  ;;  %v448_v59 = vand.u32 4294901760, %v296_v21  ;;  %v452_v42 = vand.u32 4294901760, %v300_v26  ;;  %v1732_v0 = vand.u32 4294901760, %v298_v28 }
  0x95   : > { %6771 = vst [vmem:[#allocation54_spill] sm:$0xff] %v4553_v7  ;;  %6772 = vst [vmem:[#allocation55_spill] sm:$0xff] %v4558_v29  ;;  %3163 = vmatprep.subr.bf16.mxu0 %v4571_v57  ;;  %v1736_v1 = vand.u32 4294901760, %v302_v49  ;;  %v454_v53 = vand.u32 4294901760, %v305_v32  ;;  %v458_v54 = vand.u32 4294901760, %v309_v11  ;;  %v4584_v20 = vpack.c.bf16 %v1734_v36, %v1730_v8  ;;  %v313_v8 = vld [vmem:[%s4413_s10 + $0x188] sm:$0xff] }
  0x96   : > { %6773 = vst [vmem:[#allocation56_spill] sm:$0xff] %v4560_v9  ;;  %6774 = vst [vmem:[#allocation57_spill] sm:$0xff] %v4562_v30  ;;  %v4586_v30 = vsub.f32 %v303_v14, %v1734_v36  ;;  %v4588_v55 = vpack.c.bf16 %v452_v42, %v448_v59  ;;  %v4590_v29 = vsub.f32 %v296_v21, %v448_v59  ;;  %v1738_v36 = vand.u32 4294901760, %v307_v2 }
  0x97   : > { %6775 = vst [vmem:[#allocation58_spill] sm:$0xff] %v4564_v35  ;;  %6776 = vst [vmem:[#allocation59_spill] sm:$0xff] %v4569_v31  ;;  %v4595_v38 = vsub.f32 %v300_v26, %v452_v42  ;;  %v4597_v45 = vpack.c.bf16 %v1736_v1, %v1732_v0  ;;  %v4599_v24 = vsub.f32 %v298_v28, %v1732_v0  ;;  %3547 = vmatprep.subr.bf16.mxu1 %v4584_v20 }
  0x98   : > { %6777 = vst [vmem:[#allocation60_spill] sm:$0xff] %v4571_v57  ;;  %6778 = vst [vmem:[#allocation61_spill] sm:$0xff] %v4573_v3  ;;  %v306_v57 = vld [vmem:[%s4413_s10 + $0x150] sm:$0xff]  ;;  %v4601_v22 = vsub.f32 %v302_v49, %v1736_v1  ;;  %3165 = vmatpush1.bf16.msra.mxu0 %v4588_v55  ;;  %v4608_v14 = vpack.c.bf16 %v458_v54, %v454_v53  ;;  %v4610_v21 = vsub.f32 %v305_v32, %v454_v53  ;;  %v315_v53 = vld [vmem:[%s4413_s10 + $0x198] sm:$0xff] }
  0x99   : > { %6779 = vst [vmem:[#allocation62_spill] sm:$0xff] %v4575_v5  ;;  %6780 = vst [vmem:[#allocation63_spill] sm:$0xff] %v4579_v37  ;;  %v317_v37 = vld [vmem:[%s4413_s10 + $0x1a8] sm:$0xff]  ;;  %v4612_v26 = vsub.f32 %v309_v11, %v458_v54  ;;  %3549 = vmatpush1.bf16.msra.mxu1 %v4597_v45  ;;  %v1742_v49 = vand.u32 4294901760, %v311_v19  ;;  %v456_v28 = vand.u32 4294901760, %v304_v60  ;;  %v460_v59 = vand.u32 4294901760, %v308_v47 }
  0x9a   : > { %6781 = vst [vmem:[#allocation64_spill] sm:$0xff] %v4584_v20  ;;  %6782 = vst [vmem:[#allocation65_spill] sm:$0xff] %v4586_v30  ;;  %v1740_v42 = vand.u32 4294901760, %v306_v57  ;;  %3167 = vmatprep.subr.bf16.mxu0 %v4608_v14  ;;  %v4616_v0 = vsub.f32 %v307_v2, %v1738_v36  ;;  %v1744_v1 = vand.u32 4294901760, %v310_v15  ;;  %v462_v32 = vand.u32 4294901760, %v313_v8  ;;  %v319_v54 = vld [vmem:[%s4413_s10 + $0x1b8] sm:$0xff] }
  0x9b   : > { %6783 = vst [vmem:[#allocation66_spill] sm:$0xff] %v4588_v55  ;;  %6784 = vst [vmem:[#allocation67_spill] sm:$0xff] %v4590_v29  ;;  %v466_v11 = vand.u32 4294901760, %v317_v37  ;;  %v4622_v55 = vsub.f32 %v311_v19, %v1742_v49  ;;  %v4624_v20 = vpack.c.bf16 %v460_v59, %v456_v28  ;;  %v314_v2 = vld [vmem:[%s4413_s10 + $0x190] sm:$0xff]  ;;  %v325_v30 = vld [vmem:[%s4413_s10 + $0x1e8] sm:$0xff] }
  0x9c   : > { %6785 = vst [vmem:[#allocation68_spill] sm:$0xff] %v4595_v38  ;;  %6786 = vst [vmem:[#allocation69_spill] sm:$0xff] %v4597_v45  ;;  %v4620_v45 = vpack.c.bf16 %v1742_v49, %v1738_v36  ;;  %v4637_v38 = vsub.f32 %v310_v15, %v1744_v1  ;;  %v318_v29 = vld [vmem:[%s4413_s10 + $0x1b0] sm:$0xff]  ;;  %v321_v36 = vld [vmem:[%s4413_s10 + $0x1c8] sm:$0xff]  ;;  %v4646_v19 = vsub.f32 %v313_v8, %v462_v32  ;;  %v1746_v49 = vand.u32 4294901760, %v315_v53 }
  0x9d   : > { %6787 = vst [vmem:[#allocation70_spill] sm:$0xff] %v4599_v24  ;;  %6788 = vst [vmem:[#allocation71_spill] sm:$0xff] %v4601_v22  ;;  %v4633_v22 = vpack.c.bf16 %v1744_v1, %v1740_v42  ;;  %v4635_v24 = vsub.f32 %v306_v57, %v1740_v42  ;;  %3169 = vmatpush1.bf16.msra.mxu0 %v4624_v20  ;;  %v1750_v15 = vand.u32 4294901760, %v319_v54  ;;  %v1752_v1 = vand.u32 4294901760, %v318_v29 }
  0x9e   : > { %6789 = vst [vmem:[#allocation72_spill] sm:$0xff] %v4608_v14  ;;  %6790 = vst [vmem:[#allocation73_spill] sm:$0xff] %v4610_v21  ;;  %v312_v21 = vld [vmem:[%s4413_s10 + $0x180] sm:$0xff]  ;;  %3551 = vmatprep.subr.bf16.mxu1 %v4620_v45  ;;  %v4652_v42 = vsub.f32 %v315_v53, %v1746_v49  ;;  %v470_v8 = vand.u32 4294901760, %v321_v36  ;;  %v322_v53 = vld [vmem:[%s4413_s10 + $0x1d0] sm:$0xff] }
  0x9f   : > { %6791 = vst [vmem:[#allocation74_spill] sm:$0xff] %v4612_v26  ;;  %6792 = vst [vmem:[#allocation75_spill] sm:$0xff] %v4616_v0  ;;  %v4626_v26 = vsub.f32 %v304_v60, %v456_v28  ;;  %v316_v14 = vld [vmem:[%s4413_s10 + $0x1a0] sm:$0xff]  ;;  %v4631_v0 = vsub.f32 %v308_v47, %v460_v59  ;;  %v4644_v60 = vpack.c.bf16 %v466_v11, %v462_v32  ;;  %3553 = vmatpush1.bf16.msra.mxu1 %v4633_v22  ;;  %v323_v32 = vld [vmem:[%s4413_s10 + $0x1d8] sm:$0xff] }
  0xa0   : > { %6793 = vst [vmem:[#allocation76_spill] sm:$0xff] %v4620_v45  ;;  %6794 = vst [vmem:[#allocation77_spill] sm:$0xff] %v4622_v55  ;;  %v4648_v47 = vsub.f32 %v317_v37, %v466_v11  ;;  %v464_v57 = vand.u32 4294901760, %v312_v21  ;;  %v468_v28 = vand.u32 4294901760, %v316_v14  ;;  %v1748_v59 = vand.u32 4294901760, %v314_v2  ;;  %v327_v11 = vld [vmem:[%s4413_s10 + $0x1f8] sm:$0xff] }
  0xa1   : > { %6795 = vst [vmem:[#allocation78_spill] sm:$0xff] %v4624_v20  ;;  %6796 = vst [vmem:[#allocation79_spill] sm:$0xff] %v4626_v26  ;;  %3171 = vmatprep.subr.bf16.mxu0 %v4644_v60  ;;  %v474_v37 = vand.u32 4294901760, %v325_v30  ;;  %v4658_v20 = vsub.f32 %v319_v54, %v1750_v15  ;;  %v326_v26 = vld [vmem:[%s4413_s10 + $0x1f0] sm:$0xff]  ;;  %v333_v55 = vld [vmem:[%s4413_s10 + $0x228] sm:$0xff]  ;;  %v4682_v54 = vsub.f32 %v321_v36, %v470_v8 }
  0xa2   : > { %6797 = vst [vmem:[#allocation80_spill] sm:$0xff] %v4631_v0  ;;  %6798 = vst [vmem:[#allocation81_spill] sm:$0xff] %v4633_v22  ;;  %v4656_v22 = vpack.c.bf16 %v1750_v15, %v1746_v49  ;;  %v4660_v45 = vpack.c.bf16 %v468_v28, %v464_v57  ;;  %v4673_v0 = vsub.f32 %v318_v29, %v1752_v1  ;;  %v329_v49 = vld [vmem:[%s4413_s10 + $0x208] sm:$0xff]  ;;  %v1754_v15 = vand.u32 4294901760, %v323_v32 }
  0xa3   : > { %6799 = vst [vmem:[#allocation82_spill] sm:$0xff] %v4635_v24  ;;  %6800 = vst [vmem:[#allocation83_spill] sm:$0xff] %v4637_v38  ;;  %v4669_v38 = vpack.c.bf16 %v1752_v1, %v1748_v59  ;;  %v4671_v24 = vsub.f32 %v314_v2, %v1748_v59  ;;  %v1758_v29 = vand.u32 4294901760, %v327_v11  ;;  %v1760_v1 = vand.u32 4294901760, %v326_v26 }
  0xa4   : > { %6801 = vst [vmem:[#allocation84_spill] sm:$0xff] %v4644_v60  ;;  %6802 = vst [vmem:[#allocation85_spill] sm:$0xff] %v4646_v19  ;;  %v320_v19 = vld [vmem:[%s4413_s10 + $0x1c0] sm:$0xff]  ;;  %3555 = vmatprep.subr.bf16.mxu1 %v4656_v22  ;;  %3173 = vmatpush1.bf16.msra.mxu0 %v4660_v45  ;;  %v4688_v59 = vsub.f32 %v323_v32, %v1754_v15  ;;  %v478_v36 = vand.u32 4294901760, %v329_v49  ;;  %v330_v32 = vld [vmem:[%s4413_s10 + $0x210] sm:$0xff] }
  0xa5   : > { %6803 = vst [vmem:[#allocation86_spill] sm:$0xff] %v4648_v47  ;;  %6804 = vst [vmem:[#allocation87_spill] sm:$0xff] %v4652_v42  ;;  %v4662_v47 = vsub.f32 %v312_v21, %v464_v57  ;;  %v324_v60 = vld [vmem:[%s4413_s10 + $0x1e0] sm:$0xff]  ;;  %v4667_v42 = vsub.f32 %v316_v14, %v468_v28  ;;  %v4680_v21 = vpack.c.bf16 %v474_v37, %v470_v8  ;;  %3557 = vmatpush1.bf16.msra.mxu1 %v4669_v38  ;;  %v331_v8 = vld [vmem:[%s4413_s10 + $0x218] sm:$0xff] }
  0xa6   : > { %6805 = vst [vmem:[#allocation88_spill] sm:$0xff] %v4656_v22  ;;  %6806 = vst [vmem:[#allocation89_spill] sm:$0xff] %v4658_v20  ;;  %v4684_v14 = vsub.f32 %v325_v30, %v474_v37  ;;  %v472_v2 = vand.u32 4294901760, %v320_v19  ;;  %v476_v57 = vand.u32 4294901760, %v324_v60  ;;  %v1756_v28 = vand.u32 4294901760, %v322_v53  ;;  %v335_v37 = vld [vmem:[%s4413_s10 + $0x238] sm:$0xff] }
  0xa7   : > { %6807 = vst [vmem:[#allocation90_spill] sm:$0xff] %v4660_v45  ;;  %6808 = vst [vmem:[#allocation91_spill] sm:$0xff] %v4662_v47  ;;  %3175 = vmatprep.subr.bf16.mxu0 %v4680_v21  ;;  %v482_v30 = vand.u32 4294901760, %v333_v55  ;;  %v4694_v45 = vsub.f32 %v327_v11, %v1758_v29  ;;  %v334_v47 = vld [vmem:[%s4413_s10 + $0x230] sm:$0xff]  ;;  %v341_v20 = vld [vmem:[%s4413_s10 + $0x268] sm:$0xff]  ;;  %v4718_v11 = vsub.f32 %v329_v49, %v478_v36 }
  0xa8   : > { %6809 = vst [vmem:[#allocation92_spill] sm:$0xff] %v4667_v42  ;;  %6810 = vst [vmem:[#allocation93_spill] sm:$0xff] %v4669_v38  ;;  %v4692_v38 = vpack.c.bf16 %v1758_v29, %v1754_v15  ;;  %v4696_v22 = vpack.c.bf16 %v476_v57, %v472_v2  ;;  %v4709_v42 = vsub.f32 %v326_v26, %v1760_v1  ;;  %v337_v15 = vld [vmem:[%s4413_s10 + $0x248] sm:$0xff]  ;;  %v1762_v29 = vand.u32 4294901760, %v331_v8 }
  0xa9   : > { %6811 = vst [vmem:[#allocation94_spill] sm:$0xff] %v4671_v24  ;;  %6812 = vst [vmem:[#allocation95_spill] sm:$0xff] %v4673_v0  ;;  %v4705_v0 = vpack.c.bf16 %v1760_v1, %v1756_v28  ;;  %v4707_v24 = vsub.f32 %v322_v53, %v1756_v28  ;;  %v1766_v26 = vand.u32 4294901760, %v335_v37  ;;  %v1768_v1 = vand.u32 4294901760, %v334_v47 }
  0xaa   : > { %6813 = vst [vmem:[#allocation96_spill] sm:$0xff] %v4680_v21  ;;  %6814 = vst [vmem:[#allocation97_spill] sm:$0xff] %v4682_v54  ;;  %v328_v54 = vld [vmem:[%s4413_s10 + $0x200] sm:$0xff]  ;;  %3559 = vmatprep.subr.bf16.mxu1 %v4692_v38  ;;  %3177 = vmatpush1.bf16.msra.mxu0 %v4696_v22  ;;  %v4724_v28 = vsub.f32 %v331_v8, %v1762_v29  ;;  %v486_v49 = vand.u32 4294901760, %v337_v15  ;;  %v338_v8 = vld [vmem:[%s4413_s10 + $0x250] sm:$0xff] }
  0xab   : > { %6815 = vst [vmem:[#allocation98_spill] sm:$0xff] %v4684_v14  ;;  %6816 = vst [vmem:[#allocation99_spill] sm:$0xff] %v4688_v59  ;;  %v4698_v14 = vsub.f32 %v320_v19, %v472_v2  ;;  %v332_v21 = vld [vmem:[%s4413_s10 + $0x220] sm:$0xff]  ;;  %v4703_v59 = vsub.f32 %v324_v60, %v476_v57  ;;  %v4716_v19 = vpack.c.bf16 %v482_v30, %v478_v36  ;;  %3561 = vmatpush1.bf16.msra.mxu1 %v4705_v0  ;;  %v339_v36 = vld [vmem:[%s4413_s10 + $0x258] sm:$0xff] }
  0xac   : > { %6817 = vst [vmem:[#allocation100_spill] sm:$0xff] %v4692_v38  ;;  %6818 = vst [vmem:[#allocation101_spill] sm:$0xff] %v4694_v45  ;;  %v4720_v60 = vsub.f32 %v333_v55, %v482_v30  ;;  %v480_v53 = vand.u32 4294901760, %v328_v54  ;;  %v484_v2 = vand.u32 4294901760, %v332_v21  ;;  %v1764_v57 = vand.u32 4294901760, %v330_v32  ;;  %v343_v30 = vld [vmem:[%s4413_s10 + $0x278] sm:$0xff] }
  0xad   : > { %6819 = vst [vmem:[#allocation102_spill] sm:$0xff] %v4696_v22  ;;  %6820 = vst [vmem:[#allocation103_spill] sm:$0xff] %v4698_v14  ;;  %3179 = vmatprep.subr.bf16.mxu0 %v4716_v19  ;;  %v490_v55 = vand.u32 4294901760, %v341_v20  ;;  %v4730_v22 = vsub.f32 %v335_v37, %v1766_v26  ;;  %v342_v14 = vld [vmem:[%s4413_s10 + $0x270] sm:$0xff]  ;;  %v349_v45 = vld [vmem:[%s4413_s10 + $0x2a8] sm:$0xff]  ;;  %v4754_v37 = vsub.f32 %v337_v15, %v486_v49 }
  0xae   : > { %6821 = vst [vmem:[#allocation104_spill] sm:$0xff] %v4703_v59  ;;  %6822 = vst [vmem:[#allocation105_spill] sm:$0xff] %v4705_v0  ;;  %v4728_v0 = vpack.c.bf16 %v1766_v26, %v1762_v29  ;;  %v4732_v38 = vpack.c.bf16 %v484_v2, %v480_v53  ;;  %v4745_v59 = vsub.f32 %v334_v47, %v1768_v1  ;;  %v345_v29 = vld [vmem:[%s4413_s10 + $0x288] sm:$0xff]  ;;  %v1770_v26 = vand.u32 4294901760, %v339_v36 }
  0xaf   : > { %6823 = vst [vmem:[#allocation106_spill] sm:$0xff] %v4707_v24  ;;  %6824 = vst [vmem:[#allocation107_spill] sm:$0xff] %v4709_v42  ;;  %v4741_v42 = vpack.c.bf16 %v1768_v1, %v1764_v57  ;;  %v4743_v24 = vsub.f32 %v330_v32, %v1764_v57  ;;  %v1774_v47 = vand.u32 4294901760, %v343_v30  ;;  %v1776_v1 = vand.u32 4294901760, %v342_v14 }
  0xb0   : > { %6825 = vst [vmem:[#allocation108_spill] sm:$0xff] %v4716_v19  ;;  %6826 = vst [vmem:[#allocation109_spill] sm:$0xff] %v4718_v11  ;;  %v336_v11 = vld [vmem:[%s4413_s10 + $0x240] sm:$0xff]  ;;  %3563 = vmatprep.subr.bf16.mxu1 %v4728_v0  ;;  %3181 = vmatpush1.bf16.msra.mxu0 %v4732_v38  ;;  %v4760_v57 = vsub.f32 %v339_v36, %v1770_v26  ;;  %v494_v15 = vand.u32 4294901760, %v345_v29  ;;  %v346_v36 = vld [vmem:[%s4413_s10 + $0x290] sm:$0xff] }
  0xb1   : > { %6827 = vst [vmem:[#allocation110_spill] sm:$0xff] %v4720_v60  ;;  %6828 = vst [vmem:[#allocation111_spill] sm:$0xff] %v4724_v28  ;;  %v4734_v60 = vsub.f32 %v328_v54, %v480_v53  ;;  %v340_v19 = vld [vmem:[%s4413_s10 + $0x260] sm:$0xff]  ;;  %v4739_v28 = vsub.f32 %v332_v21, %v484_v2  ;;  %v4752_v54 = vpack.c.bf16 %v490_v55, %v486_v49  ;;  %3565 = vmatpush1.bf16.msra.mxu1 %v4741_v42  ;;  %v347_v49 = vld [vmem:[%s4413_s10 + $0x298] sm:$0xff] }
  0xb2   : > { %6829 = vst [vmem:[#allocation112_spill] sm:$0xff] %v4728_v0  ;;  %6830 = vst [vmem:[#allocation113_spill] sm:$0xff] %v4730_v22  ;;  %v4756_v21 = vsub.f32 %v341_v20, %v490_v55  ;;  %v488_v32 = vand.u32 4294901760, %v336_v11  ;;  %v492_v53 = vand.u32 4294901760, %v340_v19  ;;  %v1772_v2 = vand.u32 4294901760, %v338_v8  ;;  %v351_v55 = vld [vmem:[%s4413_s10 + $0x2b8] sm:$0xff] }
  0xb3   : > { %6831 = vst [vmem:[#allocation114_spill] sm:$0xff] %v4732_v38  ;;  %6832 = vst [vmem:[#allocation115_spill] sm:$0xff] %v4734_v60  ;;  %3183 = vmatprep.subr.bf16.mxu0 %v4752_v54  ;;  %v498_v20 = vand.u32 4294901760, %v349_v45  ;;  %v4766_v38 = vsub.f32 %v343_v30, %v1774_v47  ;;  %v350_v60 = vld [vmem:[%s4413_s10 + $0x2b0] sm:$0xff]  ;;  %v357_v22 = vld [vmem:[%s4413_s10 + $0x2e8] sm:$0xff]  ;;  %v4790_v30 = vsub.f32 %v345_v29, %v494_v15 }
  0xb4   : > { %6833 = vst [vmem:[#allocation116_spill] sm:$0xff] %v4739_v28  ;;  %6834 = vst [vmem:[#allocation117_spill] sm:$0xff] %v4741_v42  ;;  %v4764_v42 = vpack.c.bf16 %v1774_v47, %v1770_v26  ;;  %v4768_v0 = vpack.c.bf16 %v492_v53, %v488_v32  ;;  %v4781_v28 = vsub.f32 %v342_v14, %v1776_v1  ;;  %v353_v26 = vld [vmem:[%s4413_s10 + $0x2c8] sm:$0xff]  ;;  %v1778_v47 = vand.u32 4294901760, %v347_v49 }
  0xb5   : > { %6835 = vst [vmem:[#allocation118_spill] sm:$0xff] %v4743_v24  ;;  %6836 = vst [vmem:[#allocation119_spill] sm:$0xff] %v4745_v59  ;;  %v4777_v59 = vpack.c.bf16 %v1776_v1, %v1772_v2  ;;  %v4779_v24 = vsub.f32 %v338_v8, %v1772_v2  ;;  %v1782_v14 = vand.u32 4294901760, %v351_v55  ;;  %v1784_v1 = vand.u32 4294901760, %v350_v60 }
  0xb6   : > { %6837 = vst [vmem:[#allocation120_spill] sm:$0xff] %v4752_v54  ;;  %6838 = vst [vmem:[#allocation121_spill] sm:$0xff] %v4754_v37  ;;  %v344_v37 = vld [vmem:[%s4413_s10 + $0x280] sm:$0xff]  ;;  %3567 = vmatprep.subr.bf16.mxu1 %v4764_v42  ;;  %3185 = vmatpush1.bf16.msra.mxu0 %v4768_v0  ;;  %v4796_v2 = vsub.f32 %v347_v49, %v1778_v47  ;;  %v502_v29 = vand.u32 4294901760, %v353_v26  ;;  %v354_v49 = vld [vmem:[%s4413_s10 + $0x2d0] sm:$0xff] }
  0xb7   : > { %6839 = vst [vmem:[#allocation122_spill] sm:$0xff] %v4756_v21  ;;  %6840 = vst [vmem:[#allocation123_spill] sm:$0xff] %v4760_v57  ;;  %v4770_v21 = vsub.f32 %v336_v11, %v488_v32  ;;  %v348_v54 = vld [vmem:[%s4413_s10 + $0x2a0] sm:$0xff]  ;;  %v4775_v57 = vsub.f32 %v340_v19, %v492_v53  ;;  %v4788_v11 = vpack.c.bf16 %v498_v20, %v494_v15  ;;  %3569 = vmatpush1.bf16.msra.mxu1 %v4777_v59  ;;  %v355_v15 = vld [vmem:[%s4413_s10 + $0x2d8] sm:$0xff] }
  0xb8   : > { %6841 = vst [vmem:[#allocation124_spill] sm:$0xff] %v4764_v42  ;;  %6842 = vst [vmem:[#allocation125_spill] sm:$0xff] %v4766_v38  ;;  %v4792_v19 = vsub.f32 %v349_v45, %v498_v20  ;;  %v496_v8 = vand.u32 4294901760, %v344_v37  ;;  %v500_v32 = vand.u32 4294901760, %v348_v54  ;;  %v1780_v53 = vand.u32 4294901760, %v346_v36  ;;  %v359_v20 = vld [vmem:[%s4413_s10 + $0x2f8] sm:$0xff] }
  0xb9   : > { %6843 = vst [vmem:[#allocation126_spill] sm:$0xff] %v4768_v0  ;;  %6844 = vst [vmem:[#allocation127_spill] sm:$0xff] %v4770_v21  ;;  %3187 = vmatprep.subr.bf16.mxu0 %v4788_v11  ;;  %v506_v45 = vand.u32 4294901760, %v357_v22  ;;  %v4802_v0 = vsub.f32 %v351_v55, %v1782_v14  ;;  %v358_v21 = vld [vmem:[%s4413_s10 + $0x2f0] sm:$0xff]  ;;  %v365_v38 = vld [vmem:[%s4413_s10 + $0x328] sm:$0xff]  ;;  %v4826_v55 = vsub.f32 %v353_v26, %v502_v29 }
  0xba   : > { %6845 = vst [vmem:[#allocation128_spill] sm:$0xff] %v4775_v57  ;;  %6846 = vst [vmem:[#allocation129_spill] sm:$0xff] %v4777_v59  ;;  %v4800_v59 = vpack.c.bf16 %v1782_v14, %v1778_v47  ;;  %v4804_v42 = vpack.c.bf16 %v500_v32, %v496_v8  ;;  %v4817_v57 = vsub.f32 %v350_v60, %v1784_v1  ;;  %v361_v47 = vld [vmem:[%s4413_s10 + $0x308] sm:$0xff]  ;;  %v1786_v14 = vand.u32 4294901760, %v355_v15 }
  0xbb   : > { %6847 = vst [vmem:[#allocation130_spill] sm:$0xff] %v4779_v24  ;;  %6848 = vst [vmem:[#allocation131_spill] sm:$0xff] %v4781_v28  ;;  %v4813_v28 = vpack.c.bf16 %v1784_v1, %v1780_v53  ;;  %v4815_v24 = vsub.f32 %v346_v36, %v1780_v53  ;;  %v1790_v60 = vand.u32 4294901760, %v359_v20  ;;  %v1792_v1 = vand.u32 4294901760, %v358_v21 }
  0xbc   : > { %6849 = vst [vmem:[#allocation132_spill] sm:$0xff] %v4788_v11  ;;  %6850 = vst [vmem:[#allocation133_spill] sm:$0xff] %v4790_v30  ;;  %v352_v30 = vld [vmem:[%s4413_s10 + $0x2c0] sm:$0xff]  ;;  %3571 = vmatprep.subr.bf16.mxu1 %v4800_v59  ;;  %3189 = vmatpush1.bf16.msra.mxu0 %v4804_v42  ;;  %v4832_v53 = vsub.f32 %v355_v15, %v1786_v14  ;;  %v510_v26 = vand.u32 4294901760, %v361_v47  ;;  %v362_v15 = vld [vmem:[%s4413_s10 + $0x310] sm:$0xff] }
  0xbd   : > { %6851 = vst [vmem:[#allocation134_spill] sm:$0xff] %v4792_v19  ;;  %6852 = vst [vmem:[#allocation135_spill] sm:$0xff] %v4796_v2  ;;  %v4806_v19 = vsub.f32 %v344_v37, %v496_v8  ;;  %v356_v11 = vld [vmem:[%s4413_s10 + $0x2e0] sm:$0xff]  ;;  %v4811_v2 = vsub.f32 %v348_v54, %v500_v32  ;;  %v4824_v37 = vpack.c.bf16 %v506_v45, %v502_v29  ;;  %3573 = vmatpush1.bf16.msra.mxu1 %v4813_v28  ;;  %v363_v29 = vld [vmem:[%s4413_s10 + $0x318] sm:$0xff] }
  0xbe   : > { %6853 = vst [vmem:[#allocation136_spill] sm:$0xff] %v4800_v59  ;;  %6854 = vst [vmem:[#allocation137_spill] sm:$0xff] %v4802_v0  ;;  %v4828_v54 = vsub.f32 %v357_v22, %v506_v45  ;;  %v504_v36 = vand.u32 4294901760, %v352_v30  ;;  %v508_v8 = vand.u32 4294901760, %v356_v11  ;;  %v1788_v32 = vand.u32 4294901760, %v354_v49  ;;  %v367_v45 = vld [vmem:[%s4413_s10 + $0x338] sm:$0xff] }
  0xbf   : > { %6855 = vst [vmem:[#allocation138_spill] sm:$0xff] %v4804_v42  ;;  %6856 = vst [vmem:[#allocation139_spill] sm:$0xff] %v4806_v19  ;;  %3191 = vmatprep.subr.bf16.mxu0 %v4824_v37  ;;  %v514_v22 = vand.u32 4294901760, %v365_v38  ;;  %v4838_v42 = vsub.f32 %v359_v20, %v1790_v60  ;;  %v366_v19 = vld [vmem:[%s4413_s10 + $0x330] sm:$0xff]  ;;  %v373_v0 = vld [vmem:[%s4413_s10 + $0x368] sm:$0xff]  ;;  %v4862_v20 = vsub.f32 %v361_v47, %v510_v26 }
  0xc0   : > { %6857 = vst [vmem:[#allocation140_spill] sm:$0xff] %v4811_v2  ;;  %6858 = vst [vmem:[#allocation141_spill] sm:$0xff] %v4813_v28  ;;  %v4836_v28 = vpack.c.bf16 %v1790_v60, %v1786_v14  ;;  %v4840_v59 = vpack.c.bf16 %v508_v8, %v504_v36  ;;  %v4853_v2 = vsub.f32 %v358_v21, %v1792_v1  ;;  %v369_v14 = vld [vmem:[%s4413_s10 + $0x348] sm:$0xff]  ;;  %v1794_v60 = vand.u32 4294901760, %v363_v29 }
  0xc1   : > { %6859 = vst [vmem:[#allocation142_spill] sm:$0xff] %v4815_v24  ;;  %6860 = vst [vmem:[#allocation143_spill] sm:$0xff] %v4817_v57  ;;  %v4849_v57 = vpack.c.bf16 %v1792_v1, %v1788_v32  ;;  %v4851_v24 = vsub.f32 %v354_v49, %v1788_v32  ;;  %v1798_v21 = vand.u32 4294901760, %v367_v45  ;;  %v1800_v1 = vand.u32 4294901760, %v366_v19 }
  0xc2   : > { %6861 = vst [vmem:[#allocation144_spill] sm:$0xff] %v4824_v37  ;;  %6862 = vst [vmem:[#allocation145_spill] sm:$0xff] %v4826_v55  ;;  %v360_v55 = vld [vmem:[%s4413_s10 + $0x300] sm:$0xff]  ;;  %3575 = vmatprep.subr.bf16.mxu1 %v4836_v28  ;;  %3193 = vmatpush1.bf16.msra.mxu0 %v4840_v59  ;;  %v4868_v32 = vsub.f32 %v363_v29, %v1794_v60  ;;  %v518_v47 = vand.u32 4294901760, %v369_v14  ;;  %v370_v29 = vld [vmem:[%s4413_s10 + $0x350] sm:$0xff] }
  0xc3   : > { %6863 = vst [vmem:[#allocation146_spill] sm:$0xff] %v4828_v54  ;;  %6864 = vst [vmem:[#allocation147_spill] sm:$0xff] %v4832_v53  ;;  %v4842_v54 = vsub.f32 %v352_v30, %v504_v36  ;;  %v364_v37 = vld [vmem:[%s4413_s10 + $0x320] sm:$0xff]  ;;  %v4847_v53 = vsub.f32 %v356_v11, %v508_v8  ;;  %v4860_v30 = vpack.c.bf16 %v514_v22, %v510_v26  ;;  %3577 = vmatpush1.bf16.msra.mxu1 %v4849_v57  ;;  %v371_v26 = vld [vmem:[%s4413_s10 + $0x358] sm:$0xff] }
  0xc4   : > { %6865 = vst [vmem:[#allocation148_spill] sm:$0xff] %v4836_v28  ;;  %6866 = vst [vmem:[#allocation149_spill] sm:$0xff] %v4838_v42  ;;  %v4864_v11 = vsub.f32 %v365_v38, %v514_v22  ;;  %v512_v49 = vand.u32 4294901760, %v360_v55  ;;  %v516_v36 = vand.u32 4294901760, %v364_v37  ;;  %v1796_v8 = vand.u32 4294901760, %v362_v15  ;;  %v375_v22 = vld [vmem:[%s4413_s10 + $0x378] sm:$0xff] }
  0xc5   : > { %6867 = vst [vmem:[#allocation150_spill] sm:$0xff] %v4840_v59  ;;  %6868 = vst [vmem:[#allocation151_spill] sm:$0xff] %v4842_v54  ;;  %3195 = vmatprep.subr.bf16.mxu0 %v4860_v30  ;;  %v522_v38 = vand.u32 4294901760, %v373_v0  ;;  %v4874_v59 = vsub.f32 %v367_v45, %v1798_v21  ;;  %v374_v54 = vld [vmem:[%s4413_s10 + $0x370] sm:$0xff]  ;;  %v381_v42 = vld [vmem:[%s4413_s10 + $0x3a8] sm:$0xff]  ;;  %v4898_v45 = vsub.f32 %v369_v14, %v518_v47 }
  0xc6   : > { %6869 = vst [vmem:[#allocation152_spill] sm:$0xff] %v4847_v53  ;;  %6870 = vst [vmem:[#allocation153_spill] sm:$0xff] %v4849_v57  ;;  %v4872_v57 = vpack.c.bf16 %v1798_v21, %v1794_v60  ;;  %v4876_v28 = vpack.c.bf16 %v516_v36, %v512_v49  ;;  %v4889_v53 = vsub.f32 %v366_v19, %v1800_v1  ;;  %v377_v60 = vld [vmem:[%s4413_s10 + $0x388] sm:$0xff]  ;;  %v1802_v21 = vand.u32 4294901760, %v371_v26 }
  0xc7   : > { %6871 = vst [vmem:[#allocation154_spill] sm:$0xff] %v4851_v24  ;;  %6872 = vst [vmem:[#allocation155_spill] sm:$0xff] %v4853_v2  ;;  %v4885_v2 = vpack.c.bf16 %v1800_v1, %v1796_v8  ;;  %v4887_v24 = vsub.f32 %v362_v15, %v1796_v8  ;;  %v1806_v19 = vand.u32 4294901760, %v375_v22  ;;  %v1808_v1 = vand.u32 4294901760, %v374_v54 }
  0xc8   : > { %6873 = vst [vmem:[#allocation156_spill] sm:$0xff] %v4860_v30  ;;  %6874 = vst [vmem:[#allocation157_spill] sm:$0xff] %v4862_v20  ;;  %v368_v20 = vld [vmem:[%s4413_s10 + $0x340] sm:$0xff]  ;;  %3579 = vmatprep.subr.bf16.mxu1 %v4872_v57  ;;  %3197 = vmatpush1.bf16.msra.mxu0 %v4876_v28  ;;  %v4904_v8 = vsub.f32 %v371_v26, %v1802_v21  ;;  %v526_v14 = vand.u32 4294901760, %v377_v60  ;;  %v378_v26 = vld [vmem:[%s4413_s10 + $0x390] sm:$0xff] }
  0xc9   : > { %6875 = vst [vmem:[#allocation158_spill] sm:$0xff] %v4864_v11  ;;  %6876 = vst [vmem:[#allocation159_spill] sm:$0xff] %v4868_v32  ;;  %v4878_v11 = vsub.f32 %v360_v55, %v512_v49  ;;  %v372_v30 = vld [vmem:[%s4413_s10 + $0x360] sm:$0xff]  ;;  %v4883_v32 = vsub.f32 %v364_v37, %v516_v36  ;;  %v4896_v55 = vpack.c.bf16 %v522_v38, %v518_v47  ;;  %3581 = vmatpush1.bf16.msra.mxu1 %v4885_v2  ;;  %v379_v47 = vld [vmem:[%s4413_s10 + $0x398] sm:$0xff] }
  0xca   : > { %6877 = vst [vmem:[#allocation160_spill] sm:$0xff] %v4872_v57  ;;  %6878 = vst [vmem:[#allocation161_spill] sm:$0xff] %v4874_v59  ;;  %v4900_v37 = vsub.f32 %v373_v0, %v522_v38  ;;  %v520_v15 = vand.u32 4294901760, %v368_v20  ;;  %v524_v49 = vand.u32 4294901760, %v372_v30  ;;  %v1804_v36 = vand.u32 4294901760, %v370_v29  ;;  %v383_v38 = vld [vmem:[%s4413_s10 + $0x3b8] sm:$0xff] }
  0xcb   : > { %6879 = vst [vmem:[#allocation162_spill] sm:$0xff] %v4876_v28  ;;  %6880 = vst [vmem:[#allocation163_spill] sm:$0xff] %v4878_v11  ;;  %3199 = vmatprep.subr.bf16.mxu0 %v4896_v55  ;;  %v530_v0 = vand.u32 4294901760, %v381_v42  ;;  %v4910_v28 = vsub.f32 %v375_v22, %v1806_v19  ;;  %v382_v11 = vld [vmem:[%s4413_s10 + $0x3b0] sm:$0xff]  ;;  %v389_v59 = vld [vmem:[%s4413_s10 + $0x3e8] sm:$0xff]  ;;  %v4934_v22 = vsub.f32 %v377_v60, %v526_v14 }
  0xcc   : > { %6881 = vst [vmem:[#allocation164_spill] sm:$0xff] %v4883_v32  ;;  %6882 = vst [vmem:[#allocation165_spill] sm:$0xff] %v4885_v2  ;;  %v4908_v2 = vpack.c.bf16 %v1806_v19, %v1802_v21  ;;  %v4912_v57 = vpack.c.bf16 %v524_v49, %v520_v15  ;;  %v4925_v32 = vsub.f32 %v374_v54, %v1808_v1  ;;  %v385_v21 = vld [vmem:[%s4413_s10 + $0x3c8] sm:$0xff]  ;;  %v1810_v19 = vand.u32 4294901760, %v379_v47 }
  0xcd   : > { %6883 = vst [vmem:[#allocation166_spill] sm:$0xff] %v4887_v24  ;;  %6884 = vst [vmem:[#allocation167_spill] sm:$0xff] %v4889_v53  ;;  %v4921_v53 = vpack.c.bf16 %v1808_v1, %v1804_v36  ;;  %v4923_v24 = vsub.f32 %v370_v29, %v1804_v36  ;;  %v1814_v54 = vand.u32 4294901760, %v383_v38  ;;  %v1816_v1 = vand.u32 4294901760, %v382_v11 }
  0xce   : > { %6885 = vst [vmem:[#allocation168_spill] sm:$0xff] %v4896_v55  ;;  %6886 = vst [vmem:[#allocation169_spill] sm:$0xff] %v4898_v45  ;;  %v376_v45 = vld [vmem:[%s4413_s10 + $0x380] sm:$0xff]  ;;  %3583 = vmatprep.subr.bf16.mxu1 %v4908_v2  ;;  %3201 = vmatpush1.bf16.msra.mxu0 %v4912_v57  ;;  %v4940_v36 = vsub.f32 %v379_v47, %v1810_v19  ;;  %v534_v60 = vand.u32 4294901760, %v385_v21 }
  0xcf   : > { %6887 = vst [vmem:[#allocation170_spill] sm:$0xff] %v4900_v37  ;;  %6888 = vst [vmem:[#allocation171_spill] sm:$0xff] %v4904_v8  ;;  %v4914_v37 = vsub.f32 %v368_v20, %v520_v15  ;;  %v380_v55 = vld [vmem:[%s4413_s10 + $0x3a0] sm:$0xff]  ;;  %v4919_v8 = vsub.f32 %v372_v30, %v524_v49  ;;  %v4932_v20 = vpack.c.bf16 %v530_v0, %v526_v14  ;;  %3585 = vmatpush1.bf16.msra.mxu1 %v4921_v53 }
  0xd0   : > { %6889 = vst [vmem:[#allocation172_spill] sm:$0xff] %v4908_v2  ;;  %6890 = vst [vmem:[#allocation173_spill] sm:$0xff] %v4910_v28  ;;  %v4936_v30 = vsub.f32 %v381_v42, %v530_v0  ;;  %v528_v29 = vand.u32 4294901760, %v376_v45  ;;  %v532_v15 = vand.u32 4294901760, %v380_v55  ;;  %v1812_v49 = vand.u32 4294901760, %v378_v26  ;;  %v387_v42 = vld [vmem:[%s4413_s10 + $0x3d8] sm:$0xff] }
  0xd1   : > { %6891 = vst [vmem:[#allocation174_spill] sm:$0xff] %v4912_v57  ;;  %6892 = vst [vmem:[#allocation175_spill] sm:$0xff] %v4914_v37  ;;  %3203 = vmatprep.subr.bf16.mxu0 %v4932_v20  ;;  %v538_v14 = vand.u32 4294901760, %v389_v59  ;;  %v391_v0 = vld [vmem:[%s4413_s10 + $0x3f8] sm:$0xff]  ;;  %v4944_v57 = vpack.c.bf16 %v1814_v54, %v1810_v19  ;;  %v390_v37 = vld [vmem:[%s4413_s10 + $0x3f0] sm:$0xff] }
  0xd2   : > { %6893 = vst [vmem:[#allocation176_spill] sm:$0xff] %v4919_v8  ;;  %6894 = vst [vmem:[#allocation177_spill] sm:$0xff] %v4921_v53  ;;  %v4946_v53 = vsub.f32 %v383_v38, %v1814_v54  ;;  %v4948_v2 = vpack.c.bf16 %v532_v15, %v528_v29  ;;  %v4957_v47 = vpack.c.bf16 %v1816_v1, %v1812_v49  ;;  %v263_v19 = vld [vmem:[#allocation2 + $0x8] sm:$0xff] }
  0xd3   : > { %6895 = vst [vmem:[#allocation178_spill] sm:$0xff] %v4923_v24  ;;  %6896 = vst [vmem:[#allocation179_spill] sm:$0xff] %v4925_v32  ;;  %v388_v32 = vld [vmem:[%s4413_s10 + $0x3e0] sm:$0xff]  ;;  %v386_v24 = vld [vmem:[%s4413_s10 + $0x3d0] sm:$0xff]  ;;  %v4961_v8 = vsub.f32 %v382_v11, %v1816_v1  ;;  %3587 = vmatprep.subr.bf16.mxu1 %v4944_v57  ;;  %v4966_v38 = vpack.c.bf16 %v538_v14, %v534_v60  ;;  %v4970_v54 = vsub.f32 %v389_v59, %v538_v14 }
  0xd4   : > { %6897 = vst [vmem:[#allocation180_spill] sm:$0xff] %v4932_v20  ;;  %6898 = vst [vmem:[#allocation181_spill] sm:$0xff] %v4934_v22  ;;  %v384_v22 = vld [vmem:[%s4413_s10 + $0x3c0] sm:$0xff]  ;;  %v4955_v20 = vsub.f32 %v380_v55, %v532_v15  ;;  %3205 = vmatpush1.bf16.msra.mxu0 %v4948_v2  ;;  %v1818_v55 = vand.u32 4294901760, %v387_v42  ;;  %3589 = vmatpush1.bf16.msra.mxu1 %v4957_v47  ;;  %v540_v15 = vand.u32 4294901760, %v388_v32  ;;  %v1820_v11 = vand.u32 4294901760, %v386_v24 }
  0xd5   : > { %6899 = vst [vmem:[#allocation182_spill] sm:$0xff] %v4936_v30  ;;  %6900 = vst [vmem:[#allocation183_spill] sm:$0xff] %v4940_v36  ;;  %v4950_v30 = vsub.f32 %v376_v45, %v528_v29  ;;  %v4959_v36 = vsub.f32 %v378_v26, %v1812_v49  ;;  %v4968_v45 = vsub.f32 %v385_v21, %v534_v60  ;;  %v1822_v29 = vand.u32 4294901760, %v391_v0 }
  0xd6   : > { %6901 = vst [vmem:[#allocation184_spill] sm:$0xff] %v4944_v57  ;;  %6902 = vst [vmem:[#allocation185_spill] sm:$0xff] %v4946_v53  ;;  %v536_v26 = vand.u32 4294901760, %v384_v22  ;;  %3207 = vmatprep.subr.bf16.mxu0 %v4966_v38  ;;  %v4974_v49 = vsub.f32 %v387_v42, %v1818_v55  ;;  %v1824_v1 = vand.u32 4294901760, %v390_v37  ;;  %v4976_v57 = vand.u32 4294901760, %v263_v19 }
  0xd7   : > { %6903 = vst [vmem:[#allocation186_spill] sm:$0xff] %v4948_v2  ;;  %6904 = vst [vmem:[#allocation187_spill] sm:$0xff] %v4950_v30  ;;  %v6416_v2 = vand.u32 4294901760, %v4430_v16  ;;  %v4979_v21 = vpack.c.bf16 %v1822_v29, %v1818_v55  ;;  %v4981_v59 = vsub.f32 %v391_v0, %v1822_v29  ;;  %v4991_v42 = vsub.f32 %v386_v24, %v1820_v11 }
  0xd8   : > { %6905 = vst [vmem:[#allocation188_spill] sm:$0xff] %v4955_v20  ;;  %6906 = vst [vmem:[#allocation189_spill] sm:$0xff] %v4957_v47  ;;  %v4983_v60 = vpack.c.bf16 %v540_v15, %v536_v26  ;;  %v4985_v14 = vsub.f32 %v384_v22, %v536_v26  ;;  %v262_v47 = vld [vmem:[#allocation2] sm:$0xff]  ;;  %v4998_v0 = vsub.f32 %v263_v19, %v4976_v57  ;;  %v6424_v55 = vand.u32 4294901760, %v4434_v18 }
  0xd9   : > { %6907 = vst [vmem:[#allocation190_spill] sm:$0xff] %v4959_v36  ;;  %6908 = vst [vmem:[#allocation191_spill] sm:$0xff] %v4961_v8  ;;  %3591 = vmatprep.subr.bf16.mxu1 %v4979_v21  ;;  %v562_v22 = vsub.f32 %v4430_v16, %v6416_v2  ;;  %v6429_v24 = vand.u32 4294901760, %v4441_v23  ;;  %v6926_v26 = vand.u32 4294901760, %v4445_v25 }
  0xda   : > { %6909 = vst [vmem:[#allocation192_spill] sm:$0xff] %v4966_v38  ;;  %6910 = vst [vmem:[#allocation193_spill] sm:$0xff] %v4968_v45  ;;  %v4989_v45 = vpack.c.bf16 %v1824_v1, %v1820_v11  ;;  %v4993_v38 = vsub.f32 %v390_v37, %v1824_v1  ;;  %3209 = vmatpush1.bf16.msra.mxu0 %v4983_v60  ;;  %v5007_v37 = vand.u32 4294901760, %v262_v47  ;;  %v5012_v19 = vand.u32 4294901760, %v4998_v0 }
  0xdb   : > { %6911 = vst [vmem:[#allocation194_spill] sm:$0xff] %v4970_v54  ;;  %6912 = vst [vmem:[#allocation195_spill] sm:$0xff] %v4974_v49  ;;  %v4987_v54 = vsub.f32 %v388_v32, %v540_v15  ;;  %v6421_v32 = vand.u32 4294901760, %v4432_v17  ;;  %v563_v15 = vand.u32 4294901760, %v562_v22  ;;  %v1846_v1 = vsub.f32 %v4434_v18, %v6424_v55 }
  0xdc   : > { %6913 = vst [vmem:[#allocation196_spill] sm:$0xff] %v4976_v57  ;;  %6914 = vst [vmem:[#allocation197_spill] sm:$0xff] %v4979_v21  ;;  %3593 = vmatpush1.bf16.msra.mxu1 %v4989_v45  ;;  %v1858_v2 = vsub.f32 %v4441_v23, %v6429_v24  ;;  %v5024_v29 = vsub.f32 %v262_v47, %v5007_v37  ;;  %v6927_v22 = vand.u32 4294901760, %v4449_v27  ;;  %v6441_v18 = vand.u32 4294901760, %v4458_v39 }
  0xdd   : > { %6915 = vst [vmem:[#allocation198_spill] sm:$0xff] %v4981_v59  ;;  %6916 = vst [vmem:[#allocation199_spill] sm:$0xff] %v4983_v60  ;;  %v574_v11 = vsub.f32 %v4432_v17, %v6421_v32  ;;  %v545_v32 = vsub.f32 %v4998_v0, %v5012_v19  ;;  %v1847_v55 = vand.u32 4294901760, %v1846_v1 }
  0xde   : > { %6917 = vst [vmem:[#allocation200_spill] sm:$0xff] %v4985_v14  ;;  %6918 = vst [vmem:[#allocation201_spill] sm:$0xff] %v4987_v54  ;;  %v580_v60 = vsub.f32 %v4449_v27, %v6927_v22  ;;  %v1859_v17 = vand.u32 4294901760, %v1858_v2  ;;  %v5036_v24 = vand.u32 4294901760, %v5024_v29  ;;  %v6440_v22 = vand.u32 4294901760, %v4460_v40 }
  0xdf   : > { %6919 = vst [vmem:[#allocation202_spill] sm:$0xff] %v4989_v45  ;;  %6920 = vst [vmem:[#allocation203_spill] sm:$0xff] %v4991_v42  ;;  %v568_v45 = vsub.f32 %v4445_v25, %v6926_v26  ;;  %v575_v21 = vand.u32 4294901760, %v574_v11  ;;  %v546_v23 = vand.u32 4294901760, %v545_v32  ;;  %v1852_v26 = vsub.f32 %v4458_v39, %v6441_v18 }
  0xe0   : > { %6921 = vst [vmem:[#allocation204_spill] sm:$0xff] %v4993_v38  ;;  %6922 = vst [vmem:[#allocation205_spill] sm:$0xff] %v4998_v0  ;;  %v3594_v27 = vpack.c.bf16 %v1859_v17, %v1847_v55  ;;  %v551_v11 = vsub.f32 %v5024_v29, %v5036_v24  ;;  %v6454_v2 = vand.u32 4294901760, %v4462_v41  ;;  %v6444_v55 = vand.u32 4294901760, %v4477_v50 }
  0xe1   : > { %6923 = vst [vmem:[#allocation206_spill] sm:$0xff] %v5007_v37  ;;  %6924 = vst [vmem:[#allocation207_spill] sm:$0xff] %v5012_v19  ;;  %v569_v47 = vand.u32 4294901760, %v568_v45  ;;  %v581_v37 = vand.u32 4294901760, %v580_v60  ;;  %v3210_v16 = vpack.c.bf16 %v575_v21, %v563_v15  ;;  %547 = vmatprep.mubr.f32.mxu0 %v546_v23  ;;  %v1853_v19 = vand.u32 4294901760, %v1852_v26  ;;  %1831 = vmatprep.mubr.f32.mxu1 %v546_v23 }
  0xe2   : > { %6925 = vst [vmem:[#allocation208_spill] sm:$0xff] %v5024_v29  ;;  %6928 = vst [vmem:[#allocation209_spill] sm:$0xff] %v5036_v24  ;;  %v1864_v45 = vsub.f32 %v4460_v40, %v6440_v22  ;;  %v6442_v21 = vand.u32 4294901760, %v4469_v46  ;;  %v6443_v60 = vand.u32 4294901760, %v4473_v48  ;;  %3595 = vmatprep.subr.bf16.mxu1 %v3594_v27  ;;  %v552_v17 = vand.u32 4294901760, %v551_v11 }
  0xe3   : > { %v3212_v1 = vpack.c.bf16 %v581_v37, %v569_v47  ;;  %3211 = vmatprep.subr.bf16.mxu0 %v3210_v16  ;;  %v586_v32 = vsub.f32 %v4462_v41, %v6454_v2  ;;  %v6445_v16 = vand.u32 4294901760, %v4479_v52  ;;  %v6446_v23 = vand.u32 4294901760, %v4487_v61 }
  0xe4   : > { %v1865_v37 = vand.u32 4294901760, %v1864_v45  ;;  %v598_v15 = vsub.f32 %v4469_v46, %v6442_v21  ;;  %v1870_v47 = vsub.f32 %v4473_v48, %v6443_v60  ;;  %553 = vmatmul.mubr.f32.vlgmr.msra.gmra.mrb[0].mxu0 %v552_v17  ;;  %1837 = vmatmul.mubr.f32.vlgmr.msra.gmra.mrb[0].mxu1 %v552_v17  ;;  %v1882_v26 = vsub.f32 %v4477_v50, %v6444_v55 }
  0xe5   : > { %v587_v27 = vand.u32 4294901760, %v586_v32  ;;  %v592_v11 = vsub.f32 %v4479_v52, %v6445_v16  ;;  %v6447_v45 = vand.u32 4294901760, %v4489_v62  ;;  %3213 = vmatpush1.bf16.msra.mxu0 %v3212_v1  ;;  %v604_v60 = vsub.f32 %v4487_v61, %v6446_v23  ;;  %944 = vmatprep.mubr.f32.mxu0 %v4976_v57 }
  0xe6   : > { %v3596_v22 = vpack.c.bf16 %v1865_v37, %v1853_v19  ;;  %v599_v18 = vand.u32 4294901760, %v598_v15  ;;  %v1871_v21 = vand.u32 4294901760, %v1870_v47  ;;  %v1883_v17 = vand.u32 4294901760, %v1882_v26  ;;  %2228 = vmatprep.mubr.f32.mxu1 %v4976_v57 }
  0xe7   : > { %v593_v32 = vand.u32 4294901760, %v592_v11  ;;  %v1876_v55 = vsub.f32 %v4489_v62, %v6447_v45  ;;  %v6448_v16 = vand.u32 4294901760, %v4496_v4  ;;  %v605_v1 = vand.u32 4294901760, %v604_v60 }
  0xe8   : > { %3597 = vmatpush1.bf16.msra.mxu1 %v3596_v22  ;;  %v3214_v19 = vpack.c.bf16 %v599_v18, %v587_v27  ;;  %v6451_v37 = vand.u32 4294901760, %v4500_v6  ;;  %v6449_v15 = vand.u32 4294901760, %v4506_v10  ;;  %v3598_v47 = vpack.c.bf16 %v1883_v17, %v1871_v21 }
  0xe9   : > { %v1877_v23 = vand.u32 4294901760, %v1876_v55  ;;  %v1888_v26 = vsub.f32 %v4496_v4, %v6448_v16  ;;  %v6450_v11 = vand.u32 4294901760, %v4510_v12  ;;  %v3216_v45 = vpack.c.bf16 %v605_v1, %v593_v32 }
  0xea   : > { %3215 = vmatprep.subr.bf16.mxu0 %v3214_v19  ;;  %v610_v22 = vsub.f32 %v4500_v6, %v6451_v37  ;;  %v622_v18 = vsub.f32 %v4506_v10, %v6449_v15  ;;  %v6452_v60 = vand.u32 4294901760, %v4512_v13  ;;  %3599 = vmatprep.subr.bf16.mxu1 %v3598_v47  ;;  %v6453_v27 = vand.u32 4294901760, %v4520_v33 }
  0xeb   : > { %v1889_v21 = vand.u32 4294901760, %v1888_v26  ;;  %v1894_v55 = vsub.f32 %v4510_v12, %v6450_v11  ;;  %v6462_v17 = vand.u32 4294901760, %v4522_v34  ;;  %3217 = vmatpush1.bf16.msra.mxu0 %v3216_v45  ;;  %v6456_v16 = vand.u32 4294901760, %v4529_v43 }
  0xec   : > { %v611_v32 = vand.u32 4294901760, %v610_v22  ;;  %v623_v19 = vand.u32 4294901760, %v622_v18  ;;  %v1906_v1 = vsub.f32 %v4512_v13, %v6452_v60  ;;  %v616_v26 = vsub.f32 %v4520_v33, %v6453_v27 }
  0xed   : > { %v3600_v15 = vpack.c.bf16 %v1889_v21, %v1877_v23  ;;  %v1895_v47 = vand.u32 4294901760, %v1894_v55  ;;  %v628_v11 = vsub.f32 %v4522_v34, %v6462_v17  ;;  %v1900_v22 = vsub.f32 %v4529_v43, %v6456_v16 }
  0xee   : > { %v3218_v37 = vpack.c.bf16 %v623_v19, %v611_v32  ;;  %v1907_v45 = vand.u32 4294901760, %v1906_v1  ;;  %v6455_v18 = vand.u32 4294901760, %v4531_v44  ;;  %v617_v60 = vand.u32 4294901760, %v616_v26 }
  0xef   : > { %3601 = vmatpush1.bf16.msra.mxu1 %v3600_v15  ;;  %v629_v23 = vand.u32 4294901760, %v628_v11  ;;  %v6459_v21 = vand.u32 4294901760, %v4535_v51  ;;  %v6457_v55 = vand.u32 4294901760, %v4542_v56  ;;  %v1901_v2 = vand.u32 4294901760, %v1900_v22 }
  0xf0   : > { %3219 = vmatprep.subr.bf16.mxu0 %v3218_v37  ;;  %v3602_v27 = vpack.c.bf16 %v1907_v45, %v1895_v47  ;;  %v1912_v32 = vsub.f32 %v4531_v44, %v6455_v18  ;;  %v6458_v19 = vand.u32 4294901760, %v4546_v58  ;;  %v6460_v26 = vand.u32 4294901760, %v4549_v63 }
  0xf1   : > { %v3220_v1 = vpack.c.bf16 %v629_v23, %v617_v60  ;;  %v634_v15 = vsub.f32 %v4535_v51, %v6459_v21  ;;  %v646_v11 = vsub.f32 %v4542_v56, %v6457_v55  ;;  %v6461_v45 = vand.u32 4294901760, %v4553_v7 }
  0xf2   : > { %3603 = vmatprep.subr.bf16.mxu1 %v3602_v27  ;;  %v1913_v37 = vand.u32 4294901760, %v1912_v32  ;;  %v1918_v47 = vsub.f32 %v4546_v58, %v6458_v19  ;;  %v6463_v60 = vand.u32 4294901760, %v4560_v9  ;;  %v1930_v18 = vsub.f32 %v4549_v63, %v6460_v26 }
  0xf3   : > { %3221 = vmatpush1.bf16.msra.mxu0 %v3220_v1  ;;  %v635_v22 = vand.u32 4294901760, %v634_v15  ;;  %v647_v23 = vand.u32 4294901760, %v646_v11  ;;  %v6464_v16 = vand.u32 4294901760, %v4564_v35  ;;  %v640_v32 = vsub.f32 %v4553_v7, %v6461_v45 }
  0xf4   : > { %v3604_v55 = vpack.c.bf16 %v1913_v37, %v1901_v2  ;;  %v1919_v27 = vand.u32 4294901760, %v1918_v47  ;;  %v652_v19 = vsub.f32 %v4560_v9, %v6463_v60  ;;  %v1931_v1 = vand.u32 4294901760, %v1930_v18 }
  0xf5   : > { %v3222_v21 = vpack.c.bf16 %v647_v23, %v635_v22  ;;  %v1924_v15 = vsub.f32 %v4564_v35, %v6464_v16  ;;  %v6465_v11 = vand.u32 4294901760, %v4569_v31  ;;  %v641_v26 = vand.u32 4294901760, %v640_v32  ;;  %v6929_v22 = vld [vmem:[#allocation63_spill] sm:$0xff]  ;;  %v6930_v32 = vld [vmem:[#allocation65_spill] sm:$0xff] }
  0xf6   : > { %3605 = vmatpush1.bf16.msra.mxu1 %v3604_v55  ;;  %v653_v2 = vand.u32 4294901760, %v652_v19  ;;  %v6468_v37 = vand.u32 4294901760, %v4573_v3  ;;  %v6469_v47 = vand.u32 4294901760, %v4575_v5  ;;  %v3606_v45 = vpack.c.bf16 %v1931_v1, %v1919_v27  ;;  %v6931_v1 = vld [vmem:[#allocation67_spill] sm:$0xff] }
  0xf7   : > { %3223 = vmatprep.subr.bf16.mxu0 %v3222_v21  ;;  %v1925_v17 = vand.u32 4294901760, %v1924_v15  ;;  %v1936_v18 = vsub.f32 %v4569_v31, %v6465_v11  ;;  %v6474_v23 = vand.u32 4294901760, %v6929_v22  ;;  %v6476_v16 = vand.u32 4294901760, %v6930_v32  ;;  %v6932_v11 = vld [vmem:[#allocation68_spill] sm:$0xff]  ;;  %v6936_v31 = vld [vmem:[#allocation74_spill] sm:$0xff] }
  0xf8   : > { %v3224_v60 = vpack.c.bf16 %v653_v2, %v641_v26  ;;  %v658_v55 = vsub.f32 %v4573_v3, %v6468_v37  ;;  %v670_v19 = vsub.f32 %v4575_v5, %v6469_v47  ;;  %3607 = vmatprep.subr.bf16.mxu1 %v3606_v45  ;;  %v6482_v15 = vand.u32 4294901760, %v6931_v1  ;;  %v6933_v47 = vld [vmem:[#allocation70_spill] sm:$0xff] }
  0xf9   : > { %v1937_v21 = vand.u32 4294901760, %v1936_v18  ;;  %v1942_v27 = vsub.f32 %v6929_v22, %v6474_v23  ;;  %v6484_v26 = vand.u32 4294901760, %v6932_v11  ;;  %v1954_v37 = vsub.f32 %v6930_v32, %v6476_v16 }
  0xfa   : > { %3225 = vmatpush1.bf16.msra.mxu0 %v3224_v60  ;;  %v659_v2 = vand.u32 4294901760, %v658_v55  ;;  %v671_v57 = vand.u32 4294901760, %v670_v19  ;;  %v6485_v24 = vand.u32 4294901760, %v6933_v47  ;;  %v664_v18 = vsub.f32 %v6931_v1, %v6482_v15  ;;  %v6934_v19 = vld [vmem:[#allocation71_spill] sm:$0xff] }
  0xfb   : > { %v3608_v29 = vpack.c.bf16 %v1937_v21, %v1925_v17  ;;  %v1943_v45 = vand.u32 4294901760, %v1942_v27  ;;  %v676_v23 = vsub.f32 %v6932_v11, %v6484_v26  ;;  %v1955_v60 = vand.u32 4294901760, %v1954_v37  ;;  %v6935_v21 = vld [vmem:[#allocation73_spill] sm:$0xff]  ;;  %v6937_v37 = vld [vmem:[#allocation75_spill] sm:$0xff] }
  0xfc   : > { %v3226_v22 = vpack.c.bf16 %v671_v57, %v659_v2  ;;  %v1948_v55 = vsub.f32 %v6933_v47, %v6485_v24  ;;  %v6486_v16 = vand.u32 4294901760, %v6934_v19  ;;  %v665_v32 = vand.u32 4294901760, %v664_v18  ;;  %v6938_v18 = vld [vmem:[#allocation77_spill] sm:$0xff] }
  0xfd   : > { %3609 = vmatpush1.bf16.msra.mxu1 %v3608_v29  ;;  %v677_v17 = vand.u32 4294901760, %v676_v23  ;;  %v6488_v27 = vand.u32 4294901760, %v6935_v21  ;;  %v6489_v35 = vand.u32 4294901760, %v6936_v31  ;;  %v3610_v15 = vpack.c.bf16 %v1955_v60, %v1943_v45  ;;  %v6939_v60 = vld [vmem:[#allocation79_spill] sm:$0xff] }
  0xfe   : > { %3227 = vmatprep.subr.bf16.mxu0 %v3226_v22  ;;  %v1949_v1 = vand.u32 4294901760, %v1948_v55  ;;  %v1960_v57 = vsub.f32 %v6934_v19, %v6486_v16  ;;  %v6492_v2 = vand.u32 4294901760, %v6937_v37  ;;  %v6494_v24 = vand.u32 4294901760, %v6938_v18  ;;  %v6940_v16 = vld [vmem:[#allocation80_spill] sm:$0xff] }
  0xff   : > { %v3228_v26 = vpack.c.bf16 %v677_v17, %v665_v32  ;;  %v682_v29 = vsub.f32 %v6935_v21, %v6488_v27  ;;  %v694_v23 = vsub.f32 %v6936_v31, %v6489_v35  ;;  %3611 = vmatprep.subr.bf16.mxu1 %v3610_v15  ;;  %v6498_v55 = vand.u32 4294901760, %v6939_v60  ;;  %v6941_v35 = vld [vmem:[#allocation82_spill] sm:$0xff] }
 0x100   : > { %v1961_v22 = vand.u32 4294901760, %v1960_v57  ;;  %v1966_v45 = vsub.f32 %v6937_v37, %v6492_v2  ;;  %v6500_v32 = vand.u32 4294901760, %v6940_v16  ;;  %v1978_v27 = vsub.f32 %v6938_v18, %v6494_v24  ;;  %v6944_v21 = vld [vmem:[#allocation86_spill] sm:$0xff] }
 0x101   : > { %3229 = vmatpush1.bf16.msra.mxu0 %v3228_v26  ;;  %v683_v17 = vand.u32 4294901760, %v682_v29  ;;  %v695_v19 = vand.u32 4294901760, %v694_v23  ;;  %v6501_v47 = vand.u32 4294901760, %v6941_v35  ;;  %v688_v57 = vsub.f32 %v6939_v60, %v6498_v55  ;;  %v6942_v23 = vld [vmem:[#allocation83_spill] sm:$0xff] }
 0x102   : > { %v3612_v31 = vpack.c.bf16 %v1961_v22, %v1949_v1  ;;  %v1967_v15 = vand.u32 4294901760, %v1966_v45  ;;  %v700_v2 = vsub.f32 %v6940_v16, %v6500_v32  ;;  %v1979_v26 = vand.u32 4294901760, %v1978_v27  ;;  %v6943_v22 = vld [vmem:[#allocation85_spill] sm:$0xff]  ;;  %v6945_v27 = vld [vmem:[#allocation87_spill] sm:$0xff] }
 0x103   : > { %v3230_v37 = vpack.c.bf16 %v695_v19, %v683_v17  ;;  %v1972_v29 = vsub.f32 %v6941_v35, %v6501_v47  ;;  %v6502_v24 = vand.u32 4294901760, %v6942_v23  ;;  %v689_v18 = vand.u32 4294901760, %v688_v57  ;;  %v6946_v57 = vld [vmem:[#allocation89_spill] sm:$0xff] }
 0x104   : > { %3613 = vmatpush1.bf16.msra.mxu1 %v3612_v31  ;;  %v701_v1 = vand.u32 4294901760, %v700_v2  ;;  %v6504_v45 = vand.u32 4294901760, %v6943_v22  ;;  %v6505_v11 = vand.u32 4294901760, %v6944_v21  ;;  %v3614_v55 = vpack.c.bf16 %v1979_v26, %v1967_v15  ;;  %v6947_v26 = vld [vmem:[#allocation91_spill] sm:$0xff] }
 0x105   : > { %3231 = vmatprep.subr.bf16.mxu0 %v3230_v37  ;;  %v1973_v60 = vand.u32 4294901760, %v1972_v29  ;;  %v1984_v19 = vsub.f32 %v6942_v23, %v6502_v24  ;;  %v6508_v17 = vand.u32 4294901760, %v6945_v27  ;;  %v6510_v47 = vand.u32 4294901760, %v6946_v57  ;;  %v6948_v24 = vld [vmem:[#allocation92_spill] sm:$0xff] }
 0x106   : > { %v3232_v32 = vpack.c.bf16 %v701_v1, %v689_v18  ;;  %v706_v31 = vsub.f32 %v6943_v22, %v6504_v45  ;;  %v718_v2 = vsub.f32 %v6944_v21, %v6505_v11  ;;  %3615 = vmatprep.subr.bf16.mxu1 %v3614_v55  ;;  %v6514_v29 = vand.u32 4294901760, %v6947_v26  ;;  %v6949_v11 = vld [vmem:[#allocation94_spill] sm:$0xff] }
 0x107   : > { %v1985_v37 = vand.u32 4294901760, %v1984_v19  ;;  %v1990_v15 = vsub.f32 %v6945_v27, %v6508_v17  ;;  %v6516_v18 = vand.u32 4294901760, %v6948_v24  ;;  %v2002_v45 = vsub.f32 %v6946_v57, %v6510_v47  ;;  %v6952_v22 = vld [vmem:[#allocation98_spill] sm:$0xff] }
 0x108   : > { %3233 = vmatpush1.bf16.msra.mxu0 %v3232_v32  ;;  %v707_v1 = vand.u32 4294901760, %v706_v31  ;;  %v719_v23 = vand.u32 4294901760, %v718_v2  ;;  %v6517_v35 = vand.u32 4294901760, %v6949_v11  ;;  %v712_v19 = vsub.f32 %v6947_v26, %v6514_v29  ;;  %v6950_v2 = vld [vmem:[#allocation95_spill] sm:$0xff] }
 0x109   : > { %v3616_v21 = vpack.c.bf16 %v1985_v37, %v1973_v60  ;;  %v1991_v55 = vand.u32 4294901760, %v1990_v15  ;;  %v724_v17 = vsub.f32 %v6948_v24, %v6516_v18  ;;  %v2003_v32 = vand.u32 4294901760, %v2002_v45  ;;  %v6951_v37 = vld [vmem:[#allocation97_spill] sm:$0xff]  ;;  %v6953_v45 = vld [vmem:[#allocation99_spill] sm:$0xff] }
 0x10a   : > { %v3234_v27 = vpack.c.bf16 %v719_v23, %v707_v1  ;;  %v1996_v31 = vsub.f32 %v6949_v11, %v6517_v35  ;;  %v6518_v47 = vand.u32 4294901760, %v6950_v2  ;;  %v713_v57 = vand.u32 4294901760, %v712_v19  ;;  %v6954_v19 = vld [vmem:[#allocation101_spill] sm:$0xff] }
 0x10b   : > { %3617 = vmatpush1.bf16.msra.mxu1 %v3616_v21  ;;  %v725_v60 = vand.u32 4294901760, %v724_v17  ;;  %v6520_v15 = vand.u32 4294901760, %v6951_v37  ;;  %v6521_v16 = vand.u32 4294901760, %v6952_v22  ;;  %v3618_v29 = vpack.c.bf16 %v2003_v32, %v1991_v55  ;;  %v6955_v32 = vld [vmem:[#allocation103_spill] sm:$0xff] }
 0x10c   : > { %3235 = vmatprep.subr.bf16.mxu0 %v3234_v27  ;;  %v1997_v26 = vand.u32 4294901760, %v1996_v31  ;;  %v2008_v23 = vsub.f32 %v6950_v2, %v6518_v47  ;;  %v6524_v1 = vand.u32 4294901760, %v6953_v45  ;;  %v6526_v35 = vand.u32 4294901760, %v6954_v19  ;;  %v6956_v47 = vld [vmem:[#allocation104_spill] sm:$0xff] }
 0x10d   : > { %v3236_v18 = vpack.c.bf16 %v725_v60, %v713_v57  ;;  %v730_v21 = vsub.f32 %v6951_v37, %v6520_v15  ;;  %v742_v17 = vsub.f32 %v6952_v22, %v6521_v16  ;;  %3619 = vmatprep.subr.bf16.mxu1 %v3618_v29  ;;  %v6530_v31 = vand.u32 4294901760, %v6955_v32  ;;  %v6957_v16 = vld [vmem:[#allocation106_spill] sm:$0xff] }
 0x10e   : > { %v2009_v27 = vand.u32 4294901760, %v2008_v23  ;;  %v2014_v55 = vsub.f32 %v6953_v45, %v6524_v1  ;;  %v6532_v57 = vand.u32 4294901760, %v6956_v47  ;;  %v2026_v15 = vsub.f32 %v6954_v19, %v6526_v35  ;;  %v6960_v37 = vld [vmem:[#allocation110_spill] sm:$0xff] }
 0x10f   : > { %3237 = vmatpush1.bf16.msra.mxu0 %v3236_v18  ;;  %v731_v60 = vand.u32 4294901760, %v730_v21  ;;  %v743_v2 = vand.u32 4294901760, %v742_v17  ;;  %v6533_v11 = vand.u32 4294901760, %v6957_v16  ;;  %v736_v23 = vsub.f32 %v6955_v32, %v6530_v31  ;;  %v6958_v17 = vld [vmem:[#allocation107_spill] sm:$0xff] }
 0x110   : > { %v3620_v22 = vpack.c.bf16 %v2009_v27, %v1997_v26  ;;  %v2015_v29 = vand.u32 4294901760, %v2014_v55  ;;  %v748_v1 = vsub.f32 %v6956_v47, %v6532_v57  ;;  %v2027_v18 = vand.u32 4294901760, %v2026_v15  ;;  %v6959_v27 = vld [vmem:[#allocation109_spill] sm:$0xff]  ;;  %v6961_v15 = vld [vmem:[#allocation111_spill] sm:$0xff] }
 0x111   : > { %v3238_v45 = vpack.c.bf16 %v743_v2, %v731_v60  ;;  %v2020_v21 = vsub.f32 %v6957_v16, %v6533_v11  ;;  %v6534_v35 = vand.u32 4294901760, %v6958_v17  ;;  %v737_v19 = vand.u32 4294901760, %v736_v23  ;;  %v6962_v23 = vld [vmem:[#allocation113_spill] sm:$0xff] }
 0x112   : > { %3621 = vmatpush1.bf16.msra.mxu1 %v3620_v22  ;;  %v749_v26 = vand.u32 4294901760, %v748_v1  ;;  %v6536_v55 = vand.u32 4294901760, %v6959_v27  ;;  %v6537_v24 = vand.u32 4294901760, %v6960_v37  ;;  %v3622_v31 = vpack.c.bf16 %v2027_v18, %v2015_v29  ;;  %v6963_v18 = vld [vmem:[#allocation115_spill] sm:$0xff] }
 0x113   : > { %3239 = vmatprep.subr.bf16.mxu0 %v3238_v45  ;;  %v2021_v32 = vand.u32 4294901760, %v2020_v21  ;;  %v2032_v2 = vsub.f32 %v6958_v17, %v6534_v35  ;;  %v6540_v60 = vand.u32 4294901760, %v6961_v15  ;;  %v6542_v11 = vand.u32 4294901760, %v6962_v23  ;;  %v6964_v35 = vld [vmem:[#allocation116_spill] sm:$0xff] }
 0x114   : > { %v3240_v57 = vpack.c.bf16 %v749_v26, %v737_v19  ;;  %v754_v22 = vsub.f32 %v6959_v27, %v6536_v55  ;;  %v766_v1 = vsub.f32 %v6960_v37, %v6537_v24  ;;  %3623 = vmatprep.subr.bf16.mxu1 %v3622_v31  ;;  %v6546_v21 = vand.u32 4294901760, %v6963_v18  ;;  %v6965_v24 = vld [vmem:[#allocation118_spill] sm:$0xff] }
 0x115   : > { %v2033_v45 = vand.u32 4294901760, %v2032_v2  ;;  %v2038_v29 = vsub.f32 %v6961_v15, %v6540_v60  ;;  %v6549_v19 = vand.u32 4294901760, %v6964_v35  ;;  %v2050_v55 = vsub.f32 %v6962_v23, %v6542_v11  ;;  %v6968_v27 = vld [vmem:[#allocation122_spill] sm:$0xff] }
 0x116   : > { %3241 = vmatpush1.bf16.msra.mxu0 %v3240_v57  ;;  %v755_v26 = vand.u32 4294901760, %v754_v22  ;;  %v767_v17 = vand.u32 4294901760, %v766_v1  ;;  %v6550_v16 = vand.u32 4294901760, %v6965_v24  ;;  %v760_v2 = vsub.f32 %v6963_v18, %v6546_v21  ;;  %v6966_v1 = vld [vmem:[#allocation119_spill] sm:$0xff] }
 0x117   : > { %v3624_v37 = vpack.c.bf16 %v2033_v45, %v2021_v32  ;;  %v2039_v31 = vand.u32 4294901760, %v2038_v29  ;;  %v772_v60 = vsub.f32 %v6964_v35, %v6549_v19  ;;  %v2051_v57 = vand.u32 4294901760, %v2050_v55  ;;  %v6967_v45 = vld [vmem:[#allocation121_spill] sm:$0xff]  ;;  %v6969_v55 = vld [vmem:[#allocation123_spill] sm:$0xff] }
 0x118   : > { %v3242_v15 = vpack.c.bf16 %v767_v17, %v755_v26  ;;  %v2044_v22 = vsub.f32 %v6965_v24, %v6550_v16  ;;  %v6551_v11 = vand.u32 4294901760, %v6966_v1  ;;  %v761_v23 = vand.u32 4294901760, %v760_v2  ;;  %v6970_v2 = vld [vmem:[#allocation125_spill] sm:$0xff]  ;;  %v6976_v24 = vld [vmem:[#allocation134_spill] sm:$0xff] }
 0x119   : > { %3625 = vmatpush1.bf16.msra.mxu1 %v3624_v37  ;;  %v773_v32 = vand.u32 4294901760, %v772_v60  ;;  %v6553_v29 = vand.u32 4294901760, %v6967_v45  ;;  %v6554_v47 = vand.u32 4294901760, %v6968_v27  ;;  %v3626_v21 = vpack.c.bf16 %v2051_v57, %v2039_v31  ;;  %v6971_v57 = vld [vmem:[#allocation127_spill] sm:$0xff] }
 0x11a   : > { %3243 = vmatprep.subr.bf16.mxu0 %v3242_v15  ;;  %v2045_v0 = vand.u32 4294901760, %v2044_v22  ;;  %v2056_v17 = vsub.f32 %v6966_v1, %v6551_v11  ;;  %v6557_v26 = vand.u32 4294901760, %v6969_v55  ;;  %v6559_v16 = vand.u32 4294901760, %v6970_v2  ;;  %v6972_v11 = vld [vmem:[#allocation128_spill] sm:$0xff] }
 0x11b   : > { %v3244_v19 = vpack.c.bf16 %v773_v32, %v761_v23  ;;  %v778_v37 = vsub.f32 %v6967_v45, %v6553_v29  ;;  %v790_v60 = vsub.f32 %v6968_v27, %v6554_v47  ;;  %3627 = vmatprep.subr.bf16.mxu1 %v3626_v21  ;;  %v6563_v22 = vand.u32 4294901760, %v6971_v57  ;;  %v6973_v47 = vld [vmem:[#allocation130_spill] sm:$0xff] }
 0x11c   : > { %v2057_v15 = vand.u32 4294901760, %v2056_v17  ;;  %v2062_v31 = vsub.f32 %v6969_v55, %v6557_v26  ;;  %v6565_v23 = vand.u32 4294901760, %v6972_v11  ;;  %v2074_v29 = vsub.f32 %v6970_v2, %v6559_v16 }
 0x11d   : > { %3245 = vmatpush1.bf16.msra.mxu0 %v3244_v19  ;;  %v779_v32 = vand.u32 4294901760, %v778_v37  ;;  %v791_v1 = vand.u32 4294901760, %v790_v60  ;;  %v6566_v27 = vand.u32 4294901760, %v6973_v47  ;;  %v784_v17 = vsub.f32 %v6971_v57, %v6563_v22  ;;  %v6974_v60 = vld [vmem:[#allocation131_spill] sm:$0xff] }
 0x11e   : > { %v3628_v45 = vpack.c.bf16 %v2057_v15, %v2045_v0  ;;  %v2063_v21 = vand.u32 4294901760, %v2062_v31  ;;  %v796_v26 = vsub.f32 %v6972_v11, %v6565_v23  ;;  %v2075_v19 = vand.u32 4294901760, %v2074_v29  ;;  %v6975_v15 = vld [vmem:[#allocation133_spill] sm:$0xff]  ;;  %v6977_v29 = vld [vmem:[#allocation135_spill] sm:$0xff] }
 0x11f   : > { %v3246_v55 = vpack.c.bf16 %v791_v1, %v779_v32  ;;  %v2068_v37 = vsub.f32 %v6973_v47, %v6566_v27  ;;  %v6567_v16 = vand.u32 4294901760, %v6974_v60  ;;  %v785_v2 = vand.u32 4294901760, %v784_v17  ;;  %v6978_v17 = vld [vmem:[#allocation137_spill] sm:$0xff]  ;;  %v6984_v47 = vld [vmem:[#allocation146_spill] sm:$0xff] }
 0x120   : > { %3629 = vmatpush1.bf16.msra.mxu1 %v3628_v45  ;;  %v797_v0 = vand.u32 4294901760, %v796_v26  ;;  %v6569_v31 = vand.u32 4294901760, %v6975_v15  ;;  %v6570_v35 = vand.u32 4294901760, %v6976_v24  ;;  %v3630_v22 = vpack.c.bf16 %v2075_v19, %v2063_v21  ;;  %v6979_v19 = vld [vmem:[#allocation139_spill] sm:$0xff] }
 0x121   : > { %3247 = vmatprep.subr.bf16.mxu0 %v3246_v55  ;;  %v2069_v57 = vand.u32 4294901760, %v2068_v37  ;;  %v2080_v1 = vsub.f32 %v6974_v60, %v6567_v16  ;;  %v6573_v32 = vand.u32 4294901760, %v6977_v29  ;;  %v6575_v27 = vand.u32 4294901760, %v6978_v17  ;;  %v6980_v16 = vld [vmem:[#allocation140_spill] sm:$0xff] }
 0x122   : > { %v3248_v23 = vpack.c.bf16 %v797_v0, %v785_v2  ;;  %v802_v45 = vsub.f32 %v6975_v15, %v6569_v31  ;;  %v814_v26 = vsub.f32 %v6976_v24, %v6570_v35  ;;  %3631 = vmatprep.subr.bf16.mxu1 %v3630_v22  ;;  %v6579_v37 = vand.u32 4294901760, %v6979_v19  ;;  %v6981_v35 = vld [vmem:[#allocation142_spill] sm:$0xff] }
 0x123   : > { %v2081_v55 = vand.u32 4294901760, %v2080_v1  ;;  %v2086_v21 = vsub.f32 %v6977_v29, %v6573_v32  ;;  %v6581_v2 = vand.u32 4294901760, %v6980_v16  ;;  %v2098_v31 = vsub.f32 %v6978_v17, %v6575_v27 }
 0x124   : > { %3249 = vmatpush1.bf16.msra.mxu0 %v3248_v23  ;;  %v803_v0 = vand.u32 4294901760, %v802_v45  ;;  %v815_v60 = vand.u32 4294901760, %v814_v26  ;;  %v6582_v24 = vand.u32 4294901760, %v6981_v35  ;;  %v808_v1 = vsub.f32 %v6979_v19, %v6579_v37  ;;  %v6982_v26 = vld [vmem:[#allocation143_spill] sm:$0xff] }
 0x125   : > { %v3632_v15 = vpack.c.bf16 %v2081_v55, %v2069_v57  ;;  %v2087_v22 = vand.u32 4294901760, %v2086_v21  ;;  %v820_v32 = vsub.f32 %v6980_v16, %v6581_v2  ;;  %v2099_v23 = vand.u32 4294901760, %v2098_v31  ;;  %v6983_v55 = vld [vmem:[#allocation145_spill] sm:$0xff]  ;;  %v6985_v31 = vld [vmem:[#allocation147_spill] sm:$0xff] }
 0x126   : > { %v3250_v29 = vpack.c.bf16 %v815_v60, %v803_v0  ;;  %v2092_v45 = vsub.f32 %v6981_v35, %v6582_v24  ;;  %v6583_v27 = vand.u32 4294901760, %v6982_v26  ;;  %v809_v17 = vand.u32 4294901760, %v808_v1  ;;  %v6986_v1 = vld [vmem:[#allocation149_spill] sm:$0xff]  ;;  %v6992_v35 = vld [vmem:[#allocation158_spill] sm:$0xff] }
 0x127   : > { %3633 = vmatpush1.bf16.msra.mxu1 %v3632_v15  ;;  %v821_v57 = vand.u32 4294901760, %v820_v32  ;;  %v6585_v21 = vand.u32 4294901760, %v6983_v55  ;;  %v6586_v11 = vand.u32 4294901760, %v6984_v47  ;;  %v3634_v37 = vpack.c.bf16 %v2099_v23, %v2087_v22  ;;  %v6987_v23 = vld [vmem:[#allocation151_spill] sm:$0xff] }
 0x128   : > { %3251 = vmatprep.subr.bf16.mxu0 %v3250_v29  ;;  %v2093_v19 = vand.u32 4294901760, %v2092_v45  ;;  %v2104_v60 = vsub.f32 %v6982_v26, %v6583_v27  ;;  %v6589_v0 = vand.u32 4294901760, %v6985_v31  ;;  %v6591_v24 = vand.u32 4294901760, %v6986_v1  ;;  %v6988_v27 = vld [vmem:[#allocation152_spill] sm:$0xff] }
 0x129   : > { %v3252_v2 = vpack.c.bf16 %v821_v57, %v809_v17  ;;  %v826_v15 = vsub.f32 %v6983_v55, %v6585_v21  ;;  %v838_v32 = vsub.f32 %v6984_v47, %v6586_v11  ;;  %3635 = vmatprep.subr.bf16.mxu1 %v3634_v37  ;;  %v6595_v45 = vand.u32 4294901760, %v6987_v23  ;;  %v6989_v11 = vld [vmem:[#allocation154_spill] sm:$0xff] }
 0x12a   : > { %v2105_v29 = vand.u32 4294901760, %v2104_v60  ;;  %v2110_v22 = vsub.f32 %v6985_v31, %v6589_v0  ;;  %v6597_v17 = vand.u32 4294901760, %v6988_v27  ;;  %v2122_v21 = vsub.f32 %v6986_v1, %v6591_v24 }
 0x12b   : > { %3253 = vmatpush1.bf16.msra.mxu0 %v3252_v2  ;;  %v827_v57 = vand.u32 4294901760, %v826_v15  ;;  %v839_v26 = vand.u32 4294901760, %v838_v32  ;;  %v6598_v47 = vand.u32 4294901760, %v6989_v11  ;;  %v832_v60 = vsub.f32 %v6987_v23, %v6595_v45  ;;  %v6990_v32 = vld [vmem:[#allocation155_spill] sm:$0xff] }
 0x12c   : > { %v3636_v55 = vpack.c.bf16 %v2105_v29, %v2093_v19  ;;  %v2111_v37 = vand.u32 4294901760, %v2110_v22  ;;  %v844_v0 = vsub.f32 %v6988_v27, %v6597_v17  ;;  %v2123_v2 = vand.u32 4294901760, %v2122_v21  ;;  %v6991_v29 = vld [vmem:[#allocation157_spill] sm:$0xff]  ;;  %v6993_v21 = vld [vmem:[#allocation159_spill] sm:$0xff] }
 0x12d   : > { %v3254_v31 = vpack.c.bf16 %v839_v26, %v827_v57  ;;  %v2116_v15 = vsub.f32 %v6989_v11, %v6598_v47  ;;  %v6599_v24 = vand.u32 4294901760, %v6990_v32  ;;  %v833_v1 = vand.u32 4294901760, %v832_v60  ;;  %v6994_v60 = vld [vmem:[#allocation161_spill] sm:$0xff]  ;;  %v7000_v11 = vld [vmem:[#allocation170_spill] sm:$0xff] }
 0x12e   : > { %3637 = vmatpush1.bf16.msra.mxu1 %v3636_v55  ;;  %v845_v19 = vand.u32 4294901760, %v844_v0  ;;  %v6601_v22 = vand.u32 4294901760, %v6991_v29  ;;  %v6602_v16 = vand.u32 4294901760, %v6992_v35  ;;  %v3638_v45 = vpack.c.bf16 %v2123_v2, %v2111_v37  ;;  %v6995_v2 = vld [vmem:[#allocation163_spill] sm:$0xff] }
 0x12f   : > { %3255 = vmatprep.subr.bf16.mxu0 %v3254_v31  ;;  %v2117_v23 = vand.u32 4294901760, %v2116_v15  ;;  %v2128_v26 = vsub.f32 %v6990_v32, %v6599_v24  ;;  %v6605_v57 = vand.u32 4294901760, %v6993_v21  ;;  %v6607_v47 = vand.u32 4294901760, %v6994_v60  ;;  %v6996_v24 = vld [vmem:[#allocation164_spill] sm:$0xff] }
 0x130   : > { %v3256_v17 = vpack.c.bf16 %v845_v19, %v833_v1  ;;  %v850_v55 = vsub.f32 %v6991_v29, %v6601_v22  ;;  %v862_v0 = vsub.f32 %v6992_v35, %v6602_v16  ;;  %3639 = vmatprep.subr.bf16.mxu1 %v3638_v45  ;;  %v6611_v15 = vand.u32 4294901760, %v6995_v2  ;;  %v6997_v16 = vld [vmem:[#allocation166_spill] sm:$0xff] }
 0x131   : > { %v2129_v31 = vand.u32 4294901760, %v2128_v26  ;;  %v2134_v37 = vsub.f32 %v6993_v21, %v6605_v57  ;;  %v6613_v1 = vand.u32 4294901760, %v6996_v24  ;;  %v2146_v22 = vsub.f32 %v6994_v60, %v6607_v47 }
 0x132   : > { %3257 = vmatpush1.bf16.msra.mxu0 %v3256_v17  ;;  %v851_v19 = vand.u32 4294901760, %v850_v55  ;;  %v863_v32 = vand.u32 4294901760, %v862_v0  ;;  %v6615_v35 = vand.u32 4294901760, %v6997_v16  ;;  %v856_v26 = vsub.f32 %v6995_v2, %v6611_v15  ;;  %v6998_v0 = vld [vmem:[#allocation167_spill] sm:$0xff] }
 0x133   : > { %v3640_v29 = vpack.c.bf16 %v2129_v31, %v2117_v23  ;;  %v2135_v45 = vand.u32 4294901760, %v2134_v37  ;;  %v868_v57 = vsub.f32 %v6996_v24, %v6613_v1  ;;  %v2147_v17 = vand.u32 4294901760, %v2146_v22  ;;  %v6999_v31 = vld [vmem:[#allocation169_spill] sm:$0xff]  ;;  %v7001_v22 = vld [vmem:[#allocation171_spill] sm:$0xff] }
 0x134   : > { %v3258_v21 = vpack.c.bf16 %v863_v32, %v851_v19  ;;  %v2140_v55 = vsub.f32 %v6997_v16, %v6615_v35  ;;  %v6614_v47 = vand.u32 4294901760, %v6998_v0  ;;  %v857_v60 = vand.u32 4294901760, %v856_v26 }
 0x135   : > { %3641 = vmatpush1.bf16.msra.mxu1 %v3640_v29  ;;  %v869_v23 = vand.u32 4294901760, %v868_v57  ;;  %v6616_v37 = vand.u32 4294901760, %v6999_v31  ;;  %v6617_v27 = vand.u32 4294901760, %v7000_v11  ;;  %v3642_v15 = vpack.c.bf16 %v2147_v17, %v2135_v45  ;;  %v7002_v17 = vld [vmem:[#allocation175_spill] sm:$0xff] }
 0x136   : > { %3259 = vmatprep.subr.bf16.mxu0 %v3258_v21  ;;  %v2141_v2 = vand.u32 4294901760, %v2140_v55  ;;  %v2152_v32 = vsub.f32 %v6998_v0, %v6614_v47  ;;  %v6620_v19 = vand.u32 4294901760, %v7001_v22  ;;  %v6622_v26 = vand.u32 4294901760, %v4910_v28  ;;  %v7003_v47 = vld [vmem:[#allocation176_spill] sm:$0xff]  ;;  %v7007_v0 = vld [vmem:[#allocation182_spill] sm:$0xff] }
 0x137   : > { %v3260_v1 = vpack.c.bf16 %v869_v23, %v857_v60  ;;  %v874_v29 = vsub.f32 %v6999_v31, %v6616_v37  ;;  %v886_v57 = vsub.f32 %v7000_v11, %v6617_v27  ;;  %3643 = vmatprep.subr.bf16.mxu1 %v3642_v15  ;;  %v6627_v55 = vand.u32 4294901760, %v7002_v17  ;;  %v7004_v27 = vld [vmem:[#allocation178_spill] sm:$0xff] }
 0x138   : > { %v2153_v21 = vand.u32 4294901760, %v2152_v32  ;;  %v2158_v45 = vsub.f32 %v7001_v22, %v6620_v19  ;;  %v6629_v60 = vand.u32 4294901760, %v7003_v47  ;;  %v2170_v37 = vsub.f32 %v4910_v28, %v6622_v26 }
 0x139   : > { %3261 = vmatpush1.bf16.msra.mxu0 %v3260_v1  ;;  %v875_v23 = vand.u32 4294901760, %v874_v29  ;;  %v887_v35 = vand.u32 4294901760, %v886_v57  ;;  %v6631_v11 = vand.u32 4294901760, %v7004_v27  ;;  %v880_v32 = vsub.f32 %v7002_v17, %v6627_v55  ;;  %v7005_v57 = vld [vmem:[#allocation179_spill] sm:$0xff] }
 0x13a   : > { %v3644_v31 = vpack.c.bf16 %v2153_v21, %v2141_v2  ;;  %v2159_v15 = vand.u32 4294901760, %v2158_v45  ;;  %v892_v19 = vsub.f32 %v7003_v47, %v6629_v60  ;;  %v2171_v1 = vand.u32 4294901760, %v2170_v37  ;;  %v7006_v21 = vld [vmem:[#allocation181_spill] sm:$0xff]  ;;  %v7008_v37 = vld [vmem:[#allocation183_spill] sm:$0xff] }
 0x13b   : > { %v3262_v22 = vpack.c.bf16 %v887_v35, %v875_v23  ;;  %v2164_v29 = vsub.f32 %v7004_v27, %v6631_v11  ;;  %v6630_v26 = vand.u32 4294901760, %v7005_v57  ;;  %v881_v28 = vand.u32 4294901760, %v880_v32 }
 0x13c   : > { %3645 = vmatpush1.bf16.msra.mxu1 %v3644_v31  ;;  %v893_v2 = vand.u32 4294901760, %v892_v19  ;;  %v6634_v45 = vand.u32 4294901760, %v7006_v21  ;;  %v6632_v16 = vand.u32 4294901760, %v7007_v0  ;;  %v3646_v55 = vpack.c.bf16 %v2171_v1, %v2159_v15 }
 0x13d   : > { %3263 = vmatprep.subr.bf16.mxu0 %v3262_v22  ;;  %v2165_v17 = vand.u32 4294901760, %v2164_v29  ;;  %v2176_v35 = vsub.f32 %v7005_v57, %v6630_v26  ;;  %v6633_v23 = vand.u32 4294901760, %v7008_v37  ;;  %v6635_v32 = vand.u32 4294901760, %v4946_v53 }
 0x13e   : > { %v3264_v60 = vpack.c.bf16 %v893_v2, %v881_v28  ;;  %v898_v31 = vsub.f32 %v7006_v21, %v6634_v45  ;;  %v910_v19 = vsub.f32 %v7007_v0, %v6632_v16  ;;  %3647 = vmatprep.subr.bf16.mxu1 %v3646_v55  ;;  %v6639_v1 = vand.u32 4294901760, %v4950_v30 }
 0x13f   : > { %v2177_v22 = vand.u32 4294901760, %v2176_v35  ;;  %v2182_v15 = vsub.f32 %v7008_v37, %v6633_v23  ;;  %v6649_v28 = vand.u32 4294901760, %v4955_v20  ;;  %v2194_v26 = vsub.f32 %v4946_v53, %v6635_v32  ;;  %v7010_v53 = vld [vmem:[#allocation194_spill] sm:$0xff] }
 0x140   : > { %3265 = vmatpush1.bf16.msra.mxu0 %v3264_v60  ;;  %v899_v29 = vand.u32 4294901760, %v898_v31  ;;  %v911_v2 = vand.u32 4294901760, %v910_v19  ;;  %v6643_v11 = vand.u32 4294901760, %v4959_v36  ;;  %v904_v35 = vsub.f32 %v4950_v30, %v6639_v1 }
 0x141   : > { %v3648_v16 = vpack.c.bf16 %v2177_v22, %v2165_v17  ;;  %v2183_v55 = vand.u32 4294901760, %v2182_v15  ;;  %v916_v23 = vsub.f32 %v4955_v20, %v6649_v28  ;;  %v2195_v60 = vand.u32 4294901760, %v2194_v26  ;;  %v7009_v22 = vld [vmem:[#allocation193_spill] sm:$0xff] }
 0x142   : > { %v3266_v45 = vpack.c.bf16 %v911_v2, %v899_v29  ;;  %v2188_v31 = vsub.f32 %v4959_v36, %v6643_v11  ;;  %v6642_v19 = vand.u32 4294901760, %v4961_v8  ;;  %v905_v32 = vand.u32 4294901760, %v904_v35  ;;  %v7011_v28 = vld [vmem:[#allocation13_spill] sm:$0xff] }
 0x143   : > { %3649 = vmatpush1.bf16.msra.mxu1 %v3648_v16  ;;  %v917_v17 = vand.u32 4294901760, %v916_v23  ;;  %v6646_v15 = vand.u32 4294901760, %v7009_v22  ;;  %v6644_v37 = vand.u32 4294901760, %v7010_v53  ;;  %v3650_v1 = vpack.c.bf16 %v2195_v60, %v2183_v55  ;;  %v7065_v36 = vld [vmem:[#allocation65_spill] sm:$0xff] }
 0x144   : > { %3267 = vmatprep.subr.bf16.mxu0 %v3266_v45  ;;  %v2189_v30 = vand.u32 4294901760, %v2188_v31  ;;  %v2200_v26 = vsub.f32 %v4961_v8, %v6642_v19  ;;  %v6645_v29 = vand.u32 4294901760, %v4974_v49  ;;  %v6647_v35 = vand.u32 4294901760, %v4981_v59  ;;  %v7066_v8 = vld [vmem:[#allocation67_spill] sm:$0xff] }
 0x145   : > { %v3268_v2 = vpack.c.bf16 %v917_v17, %v905_v32  ;;  %v922_v16 = vsub.f32 %v7009_v22, %v6646_v15  ;;  %v934_v23 = vsub.f32 %v7010_v53, %v6644_v37  ;;  %3651 = vmatprep.subr.bf16.mxu1 %v3650_v1  ;;  %v6648_v60 = vand.u32 4294901760, %v4985_v14  ;;  %v7067_v22 = vld [vmem:[#allocation68_spill] sm:$0xff] }
 0x146   : > { %v2201_v45 = vand.u32 4294901760, %v2200_v26  ;;  %v2206_v55 = vsub.f32 %v4974_v49, %v6645_v29  ;;  %v6650_v32 = vand.u32 4294901760, %v4987_v54  ;;  %v2218_v19 = vsub.f32 %v4981_v59, %v6647_v35  ;;  %v7068_v49 = vld [vmem:[#allocation73_spill] sm:$0xff] }
 0x147   : > { %3269 = vmatpush1.bf16.msra.mxu0 %v3268_v2  ;;  %v923_v31 = vand.u32 4294901760, %v922_v16  ;;  %v935_v17 = vand.u32 4294901760, %v934_v23  ;;  %v6651_v11 = vand.u32 4294901760, %v4991_v42  ;;  %v928_v26 = vsub.f32 %v4985_v14, %v6648_v60 }
 0x148   : > { %v3652_v37 = vpack.c.bf16 %v2201_v45, %v2189_v30  ;;  %v2207_v1 = vand.u32 4294901760, %v2206_v55  ;;  %v940_v29 = vsub.f32 %v4987_v54, %v6650_v32  ;;  %v2219_v2 = vand.u32 4294901760, %v2218_v19  ;;  %v7012_v32 = vld [vmem:[#allocation14_spill] sm:$0xff] }
 0x149   : > { %v3270_v15 = vpack.c.bf16 %v935_v17, %v923_v31  ;;  %v2212_v16 = vsub.f32 %v4991_v42, %v6651_v11  ;;  %v6656_v23 = vand.u32 4294901760, %v4993_v38  ;;  %v929_v35 = vand.u32 4294901760, %v928_v26  ;;  %v7013_v11 = vld [vmem:[#allocation15_spill] sm:$0xff]  ;;  %v7014_v42 = vld [vmem:[#allocation17_spill] sm:$0xff]  ;;  %v7016_v26 = vld [vmem:[#allocation206_spill] sm:$0xff] }
 0x14a   : > { %3653 = vmatpush1.bf16.msra.mxu1 %v3652_v37  ;;  %v941_v30 = vand.u32 4294901760, %v940_v29  ;;  %v3654_v45 = vpack.c.bf16 %v2219_v2, %v2207_v1  ;;  %v3274_v31 = vpack.c.bf16 %v7012_v32, %v7011_v28  ;;  %v3658_v54 = vpack.c.bf16 %v7014_v42, %v7013_v11  ;;  %v7015_v37 = vld [vmem:[#allocation20_spill] sm:$0xff]  ;;  %v7046_v42 = vld [vmem:[#allocation205_spill] sm:$0xff]  ;;  %v7057_v32 = vld [vmem:[#allocation183_spill] sm:$0xff] }
 0x14b   : > { %3271 = vmatprep.subr.bf16.mxu0 %v3270_v15  ;;  %v2213_v55 = vand.u32 4294901760, %v2212_v16  ;;  %v2224_v60 = vsub.f32 %v4993_v38, %v6656_v23  ;;  %v3276_v29 = vpack.c.bf16 %v7015_v37, %v4445_v25  ;;  %v3278_v1 = vpack.c.bf16 %v4469_v46, %v4462_v41  ;;  %v7018_v23 = vld [vmem:[#allocation118_spill] sm:$0xff]  ;;  %v7044_v37 = vld [vmem:[#allocation157_spill] sm:$0xff]  ;;  %v7054_v41 = vld [vmem:[#allocation171_spill] sm:$0xff] }
 0x14c   : > { %v3272_v19 = vpack.c.bf16 %v941_v30, %v929_v35  ;;  %3655 = vmatprep.subr.bf16.mxu1 %v3654_v45  ;;  %v3660_v35 = vpack.c.bf16 %v4460_v40, %v4458_v39  ;;  %v3280_v2 = vpack.c.bf16 %v4487_v61, %v4479_v52  ;;  %v3664_v16 = vpack.c.bf16 %v4496_v4, %v4489_v62  ;;  %v7030_v4 = vld [vmem:[#allocation135_spill] sm:$0xff]  ;;  %v7034_v61 = vld [vmem:[#allocation142_spill] sm:$0xff]  ;;  %v7041_v39 = vld [vmem:[#allocation152_spill] sm:$0xff] }
 0x14d   : > { %v2225_v17 = vand.u32 4294901760, %v2224_v60  ;;  %v3662_v60 = vpack.c.bf16 %v4477_v50, %v4473_v48  ;;  %v3282_v30 = vpack.c.bf16 %v4506_v10, %v4500_v6  ;;  %v3666_v45 = vpack.c.bf16 %v4512_v13, %v4510_v12  ;;  %v7029_v12 = vld [vmem:[#allocation134_spill] sm:$0xff]  ;;  %v7032_v10 = vld [vmem:[#allocation139_spill] sm:$0xff]  ;;  %v7052_v48 = vld [vmem:[#allocation169_spill] sm:$0xff] }
 0x14e   : > { %3273 = vmatpush1.bf16.msra.mxu0 %v3272_v19  ;;  %v3670_v19 = vpack.c.bf16 %v4549_v63, %v4546_v58  ;;  %v7024_v63 = vld [vmem:[#allocation127_spill] sm:$0xff]  ;;  %v7026_v58 = vld [vmem:[#allocation130_spill] sm:$0xff] }
 0x14f   : > { %v3656_v15 = vpack.c.bf16 %v2225_v17, %v2213_v55  ;;  %3275 = vmatprep.subr.bf16.mxu0 %v3274_v31  ;;  %v3668_v55 = vpack.c.bf16 %v4531_v44, %v4529_v43  ;;  %v3286_v31 = vpack.c.bf16 %v4542_v56, %v4535_v51  ;;  %v3288_v17 = vpack.c.bf16 %v4560_v9, %v4553_v7  ;;  %v7019_v44 = vld [vmem:[#allocation119_spill] sm:$0xff]  ;;  %v7023_v51 = vld [vmem:[#allocation125_spill] sm:$0xff]  ;;  %v7025_v9 = vld [vmem:[#allocation128_spill] sm:$0xff] }
 0x150   : > { %v7022_v56 = vld [vmem:[#allocation123_spill] sm:$0xff]  ;;  %v7031_v43 = vld [vmem:[#allocation137_spill] sm:$0xff]  ;;  %v7037_v52 = vld [vmem:[#allocation146_spill] sm:$0xff] }
 0x151   : > { %3657 = vmatpush1.bf16.msra.mxu1 %v3656_v15  ;;  %946 = vmatmul.mubr.f32.vlgmr.msra.gmra.mrb[0].mxu0 %v7016_v26  ;;  %v7017_v15 = vld [vmem:[#allocation116_spill] sm:$0xff]  ;;  %v7035_v13 = vld [vmem:[#allocation143_spill] sm:$0xff]  ;;  %v7045_v62 = vld [vmem:[#allocation158_spill] sm:$0xff] }
 0x152   : > { %3659 = vmatprep.subr.bf16.mxu1 %v3658_v54  ;;  %3277 = vmatpush1.bf16.msra.mxu0 %v3276_v29  ;;  %v3284_v54 = vpack.c.bf16 %v4522_v34, %v4520_v33  ;;  %v3290_v29 = vpack.c.bf16 %v4575_v5, %v4573_v3  ;;  %v7021_v34 = vld [vmem:[#allocation122_spill] sm:$0xff]  ;;  %v7027_v5 = vld [vmem:[#allocation131_spill] sm:$0xff]  ;;  %v7028_v3 = vld [vmem:[#allocation133_spill] sm:$0xff] }
 0x153   : > { %3279 = vmatprep.subr.bf16.mxu0 %v3278_v1  ;;  %v7033_v33 = vld [vmem:[#allocation140_spill] sm:$0xff]  ;;  %1146 = vmatprep.mubr.f32.mxu0 %v7046_v42  ;;  %v7047_v6 = vld [vmem:[#allocation159_spill] sm:$0xff]  ;;  %v7053_v46 = vld [vmem:[#allocation170_spill] sm:$0xff] }
 0x154   : > { %2230 = vmatmul.mubr.f32.vlgmr.msra.gmra.mrb[0].mxu1 %v7016_v26  ;;  %v7020_v26 = vld [vmem:[#allocation121_spill] sm:$0xff]  ;;  %v7062_v28 = vld [vmem:[#allocation58_spill] sm:$0xff] }
 0x155   : > { %3661 = vmatpush1.bf16.msra.mxu1 %v3660_v35  ;;  %v7055_v1 = vld [vmem:[#allocation173_spill] sm:$0xff]  ;;  %2430 = vmatprep.mubr.f32.mxu1 %v7046_v42  ;;  %v7069_v11 = vld [vmem:[#allocation74_spill] sm:$0xff]  ;;  %v7071_v35 = vld [vmem:[#allocation71_spill] sm:$0xff] }
 0x156   : > { %3663 = vmatprep.subr.bf16.mxu1 %v3662_v60  ;;  %3281 = vmatpush1.bf16.msra.mxu0 %v3280_v2  ;;  %v7036_v2 = vld [vmem:[#allocation145_spill] sm:$0xff]  ;;  %v3294_v14 = vpack.c.bf16 %v7069_v11, %v7068_v49  ;;  %v7070_v50 = vld [vmem:[#allocation70_spill] sm:$0xff] }
 0x157   : > { %3283 = vmatprep.subr.bf16.mxu0 %v3282_v30  ;;  %v7048_v60 = vld [vmem:[#allocation161_spill] sm:$0xff]  ;;  %v7056_v30 = vld [vmem:[#allocation175_spill] sm:$0xff]  ;;  %v3676_v42 = vpack.c.bf16 %v7071_v35, %v7070_v50  ;;  %v7083_v50 = vld [vmem:[#allocation92_spill] sm:$0xff] }
 0x158   : > { %v7058_v7 = vld [vmem:[#allocation185_spill] sm:$0xff] }
 0x159   : > { %3665 = vmatpush1.bf16.msra.mxu1 %v3664_v16  ;;  %v3292_v16 = vpack.c.bf16 %v7067_v22, %v7066_v8  ;;  %v7079_v8 = vld [vmem:[#allocation83_spill] sm:$0xff]  ;;  %v7081_v35 = vld [vmem:[#allocation89_spill] sm:$0xff] }
 0x15a   : > { %3667 = vmatprep.subr.bf16.mxu1 %v3666_v45  ;;  %3285 = vmatpush1.bf16.msra.mxu0 %v3284_v54  ;;  %v7063_v45 = vld [vmem:[#allocation59_spill] sm:$0xff] }
 0x15b   : > { %3287 = vmatprep.subr.bf16.mxu0 %v3286_v31  ;;  %v7060_v31 = vld [vmem:[#allocation201_spill] sm:$0xff]  ;;  %v3672_v40 = vpack.c.bf16 %v7063_v45, %v7062_v28  ;;  %v7064_v54 = vld [vmem:[#allocation63_spill] sm:$0xff]  ;;  %v7075_v28 = vld [vmem:[#allocation80_spill] sm:$0xff] }
 0x15c   : > { %v3674_v25 = vpack.c.bf16 %v7065_v36, %v7064_v54  ;;  %v7073_v45 = vld [vmem:[#allocation77_spill] sm:$0xff]  ;;  %v7077_v54 = vld [vmem:[#allocation86_spill] sm:$0xff] }
 0x15d   : > { %3669 = vmatpush1.bf16.msra.mxu1 %v3668_v55  ;;  %v7072_v55 = vld [vmem:[#allocation75_spill] sm:$0xff]  ;;  %v7076_v36 = vld [vmem:[#allocation85_spill] sm:$0xff] }
 0x15e   : > { %3671 = vmatprep.subr.bf16.mxu1 %v3670_v19  ;;  %3289 = vmatpush1.bf16.msra.mxu0 %v3288_v17  ;;  %v3678_v19 = vpack.c.bf16 %v7073_v45, %v7072_v55  ;;  %v7074_v17 = vld [vmem:[#allocation79_spill] sm:$0xff]  ;;  %v3298_v22 = vpack.c.bf16 %v7077_v54, %v7076_v36  ;;  %v7084_v45 = vld [vmem:[#allocation97_spill] sm:$0xff]  ;;  %v7085_v55 = vld [vmem:[#allocation98_spill] sm:$0xff] }
 0x15f   : > { %3291 = vmatprep.subr.bf16.mxu0 %v3290_v29  ;;  %v3296_v38 = vpack.c.bf16 %v7075_v28, %v7074_v17  ;;  %v7078_v29 = vld [vmem:[#allocation82_spill] sm:$0xff]  ;;  %v3302_v28 = vpack.c.bf16 %v7085_v55, %v7084_v45  ;;  %v7087_v17 = vld [vmem:[#allocation95_spill] sm:$0xff] }
 0x160   : > { %v3680_v11 = vpack.c.bf16 %v7079_v8, %v7078_v29  ;;  %v7089_v8 = vld [vmem:[#allocation101_spill] sm:$0xff]  ;;  %v7091_v29 = vld [vmem:[#allocation104_spill] sm:$0xff] }
 0x161   : > { %3673 = vmatpush1.bf16.msra.mxu1 %v3672_v40  ;;  %v7080_v40 = vld [vmem:[#allocation87_spill] sm:$0xff] }
 0x162   : > { %3675 = vmatprep.subr.bf16.mxu1 %v3674_v25  ;;  %3293 = vmatpush1.bf16.msra.mxu0 %v3292_v16  ;;  %v3682_v25 = vpack.c.bf16 %v7081_v35, %v7080_v40  ;;  %v7082_v16 = vld [vmem:[#allocation91_spill] sm:$0xff]  ;;  %v7092_v35 = vld [vmem:[#allocation109_spill] sm:$0xff]  ;;  %v7093_v40 = vld [vmem:[#allocation110_spill] sm:$0xff] }
 0x163   : > { %3295 = vmatprep.subr.bf16.mxu0 %v3294_v14  ;;  %v3300_v49 = vpack.c.bf16 %v7083_v50, %v7082_v16  ;;  %v7086_v14 = vld [vmem:[#allocation94_spill] sm:$0xff]  ;;  %v3306_v50 = vpack.c.bf16 %v7093_v40, %v7092_v35  ;;  %v7095_v16 = vld [vmem:[#allocation107_spill] sm:$0xff] }
 0x164   : > { %v3684_v54 = vpack.c.bf16 %v7087_v17, %v7086_v14  ;;  %v7097_v17 = vld [vmem:[#allocation113_spill] sm:$0xff] }
 0x165   : > { %3677 = vmatpush1.bf16.msra.mxu1 %v3676_v42  ;;  %v7088_v42 = vld [vmem:[#allocation99_spill] sm:$0xff] }
 0x166   : > { %3679 = vmatprep.subr.bf16.mxu1 %v3678_v19  ;;  %3297 = vmatpush1.bf16.msra.mxu0 %v3296_v38  ;;  %v3686_v19 = vpack.c.bf16 %v7089_v8, %v7088_v42  ;;  %v7090_v38 = vld [vmem:[#allocation103_spill] sm:$0xff] }
 0x167   : > { %3299 = vmatprep.subr.bf16.mxu0 %v3298_v22  ;;  %v3304_v36 = vpack.c.bf16 %v7091_v29, %v7090_v38  ;;  %v7094_v22 = vld [vmem:[#allocation106_spill] sm:$0xff] }
 0x168   : > { %v3688_v55 = vpack.c.bf16 %v7095_v16, %v7094_v22 }
 0x169   : > { %3681 = vmatpush1.bf16.msra.mxu1 %v3680_v11  ;;  %v7096_v11 = vld [vmem:[#allocation111_spill] sm:$0xff] }
 0x16a   : > { %3683 = vmatprep.subr.bf16.mxu1 %v3682_v25  ;;  %3301 = vmatpush1.bf16.msra.mxu0 %v3300_v49  ;;  %v3690_v25 = vpack.c.bf16 %v7097_v17, %v7096_v11  ;;  %v7098_v49 = vpack.c.bf16 %v7017_v15, %v6963_v18 }
 0x16b   : > { %3303 = vmatprep.subr.bf16.mxu0 %v3302_v28  ;;  %v7099_v28 = vpack.c.bf16 %v7021_v34, %v7020_v26 }
 0x16d   : > { %3685 = vmatpush1.bf16.msra.mxu1 %v3684_v54  ;;  %v7100_v54 = vpack.c.bf16 %v7019_v44, %v7018_v23 }
 0x16e   : > { %3687 = vmatprep.subr.bf16.mxu1 %v3686_v19  ;;  %3305 = vmatpush1.bf16.msra.mxu0 %v3304_v36  ;;  %v7101_v36 = vpack.c.bf16 %v7023_v51, %v7022_v56  ;;  %v7104_v19 = vpack.c.bf16 %v7027_v5, %v7026_v58 }
 0x16f   : > { %3307 = vmatprep.subr.bf16.mxu0 %v3306_v50  ;;  %v7102_v50 = vpack.c.bf16 %v7025_v9, %v7024_v63 }
 0x171   : > { %3689 = vmatpush1.bf16.msra.mxu1 %v3688_v55  ;;  %v7103_v55 = vpack.c.bf16 %v7029_v12, %v7028_v3 }
 0x172   : > { %3691 = vmatprep.subr.bf16.mxu1 %v3690_v25  ;;  %3309 = vmatpush1.bf16.msra.mxu0 %v7098_v49  ;;  %v7105_v25 = vpack.c.bf16 %v7031_v43, %v7030_v4  ;;  %v7106_v49 = vpack.c.bf16 %v7033_v33, %v7032_v10  ;;  %v7116_v33 = vld [vmem:[#allocation154_spill] sm:$0xff] }
 0x173   : > { %3311 = vmatprep.subr.bf16.mxu0 %v7099_v28  ;;  %v7107_v28 = vpack.c.bf16 %v7037_v52, %v7036_v2 }
 0x175   : > { %3693 = vmatpush1.bf16.msra.mxu1 %v7100_v54  ;;  %v7108_v54 = vpack.c.bf16 %v7035_v13, %v7034_v61 }
 0x176   : > { %3695 = vmatprep.subr.bf16.mxu1 %v7101_v36  ;;  %3313 = vmatpush1.bf16.msra.mxu0 %v7102_v50  ;;  %v7109_v36 = vld [vmem:[#allocation149_spill] sm:$0xff]  ;;  %v7110_v50 = vld [vmem:[#allocation147_spill] sm:$0xff] }
 0x177   : > { %3315 = vmatprep.subr.bf16.mxu0 %v7103_v55  ;;  %v7111_v55 = vpack.c.bf16 %v7109_v36, %v7110_v50 }
 0x179   : > { %3697 = vmatpush1.bf16.msra.mxu1 %v7104_v19  ;;  %v7112_v19 = vld [vmem:[#allocation151_spill] sm:$0xff] }
 0x17a   : > { %3699 = vmatprep.subr.bf16.mxu1 %v7105_v25  ;;  %3317 = vmatpush1.bf16.msra.mxu0 %v7106_v49  ;;  %v7113_v43 = vpack.c.bf16 %v7041_v39, %v7112_v19  ;;  %v7114_v25 = vpack.c.bf16 %v7045_v62, %v7044_v37  ;;  %v7115_v49 = vld [vmem:[#allocation155_spill] sm:$0xff]  ;;  %v7123_v39 = vld [vmem:[#allocation166_spill] sm:$0xff] }
 0x17b   : > { %3319 = vmatprep.subr.bf16.mxu0 %v7107_v28  ;;  %v7117_v52 = vpack.c.bf16 %v7115_v49, %v7116_v33  ;;  %v7118_v28 = vpack.c.bf16 %v7048_v60, %v7047_v6 }
 0x17d   : > { %3701 = vmatpush1.bf16.msra.mxu1 %v7108_v54  ;;  %v7119_v54 = vld [vmem:[#allocation163_spill] sm:$0xff] }
 0x17e   : > { %3703 = vmatprep.subr.bf16.mxu1 %v7111_v55  ;;  %3321 = vmatpush1.bf16.msra.mxu0 %v7113_v43  ;;  %v7120_v36 = vpack.c.bf16 %v6996_v24, %v7119_v54  ;;  %v7121_v55 = vpack.c.bf16 %v7053_v46, %v7052_v48  ;;  %v7122_v43 = vld [vmem:[#allocation167_spill] sm:$0xff] }
 0x17f   : > { %3323 = vmatprep.subr.bf16.mxu0 %v7114_v25  ;;  %v7124_v62 = vpack.c.bf16 %v7122_v43, %v7123_v39  ;;  %v7125_v25 = vpack.c.bf16 %v7055_v1, %v7054_v41  ;;  %v7229_v41 = vld [vmem:[#allocation23_spill] sm:$0xff]  ;;  %v7241_v39 = vld [vmem:[#allocation38_spill] sm:$0xff] }
 0x181   : > { %3705 = vmatpush1.bf16.msra.mxu1 %v7117_v52  ;;  %v7126_v52 = vpack.c.bf16 %v7003_v47, %v7056_v30  ;;  %v7135_v30 = vld [vmem:[#allocation190_spill] sm:$0xff] }
 0x182   : > { %3707 = vmatprep.subr.bf16.mxu1 %v7118_v28  ;;  %3325 = vmatpush1.bf16.msra.mxu0 %v7120_v36  ;;  %v7127_v28 = vpack.c.bf16 %v7007_v0, %v7006_v21  ;;  %v7128_v36 = vpack.c.bf16 %v7005_v57, %v7004_v27  ;;  %v7225_v21 = vld [vmem:[#allocation202_spill] sm:$0xff] }
 0x183   : > { %3327 = vmatprep.subr.bf16.mxu0 %v7121_v55  ;;  %v7129_v55 = vpack.c.bf16 %v7058_v7, %v7057_v32  ;;  %v7219_v32 = vld [vmem:[#allocation20_spill] sm:$0xff] }
 0x185   : > { %3709 = vmatpush1.bf16.msra.mxu1 %v7124_v62  ;;  %v7130_v62 = vld [vmem:[#allocation187_spill] sm:$0xff] }
 0x186   : > { %3711 = vmatprep.subr.bf16.mxu1 %v7125_v25  ;;  %3329 = vmatpush1.bf16.msra.mxu0 %v7126_v52  ;;  %v7131_v1 = vpack.c.bf16 %v4955_v20, %v7130_v62  ;;  %v7132_v25 = vld [vmem:[#allocation193_spill] sm:$0xff]  ;;  %v7134_v52 = vld [vmem:[#allocation191_spill] sm:$0xff]  ;;  %v7142_v20 = vld [vmem:[#allocation204_spill] sm:$0xff] }
 0x187   : > { %3331 = vmatprep.subr.bf16.mxu0 %v7127_v28  ;;  %v7133_v47 = vpack.c.bf16 %v7010_v53, %v7132_v25  ;;  %v7136_v0 = vpack.c.bf16 %v7134_v52, %v7135_v30  ;;  %v7137_v28 = vld [vmem:[#allocation195_spill] sm:$0xff]  ;;  %v7145_v53 = vld [vmem:[#allocation208_spill] sm:$0xff]  ;;  %v7147_v52 = vld [vmem:[#allocation18_spill] sm:$0xff] }
 0x188   : > { %v7138_v57 = vpack.c.bf16 %v4981_v59, %v7137_v28  ;;  %v7149_v59 = vld [vmem:[#allocation207_spill] sm:$0xff] }
 0x189   : > { %3713 = vmatpush1.bf16.msra.mxu1 %v7128_v36  ;;  %v7139_v36 = vld [vmem:[#allocation200_spill] sm:$0xff]  ;;  %v7217_v25 = vld [vmem:[#allocation19_spill] sm:$0xff] }
 0x18a   : > { %3715 = vmatprep.subr.bf16.mxu1 %v7129_v55  ;;  %3333 = vmatpush1.bf16.msra.mxu0 %v7131_v1  ;;  %v7140_v7 = vpack.c.bf16 %v7060_v31, %v7139_v36  ;;  %v7141_v55 = vld [vmem:[#allocation12_spill] sm:$0xff]  ;;  %v7143_v1 = vld [vmem:[#allocation203_spill] sm:$0xff]  ;;  %v7208_v31 = vld [vmem:[#allocation14_spill] sm:$0xff] }
 0x18b   : > { %3335 = vmatprep.subr.bf16.mxu0 %v7133_v47  ;;  %v7144_v62 = vpack.c.bf16 %v7142_v20, %v7143_v1  ;;  %v7146_v47 = vld [vmem:[#allocation16_spill] sm:$0xff]  ;;  %v7154_v20 = vld [vmem:[#allocation34_spill] sm:$0xff]  ;;  %v7158_v1 = vld [vmem:[#allocation45_spill] sm:$0xff] }
 0x18d   : > { %3717 = vmatpush1.bf16.msra.mxu1 %v7136_v0  ;;  %v7148_v0 = vld [vmem:[#allocation25_spill] sm:$0xff] }
 0x18e   : > { %3719 = vmatprep.subr.bf16.mxu1 %v7138_v57  ;;  %3337 = vmatpush1.bf16.msra.mxu0 %v7140_v7  ;;  %v7150_v57 = vld [vmem:[#allocation21_spill] sm:$0xff]  ;;  %v7151_v7 = vld [vmem:[#allocation27_spill] sm:$0xff] }
 0x18f   : > { %3339 = vmatprep.subr.bf16.mxu0 %v7141_v55  ;;  %v7152_v55 = vld [vmem:[#allocation31_spill] sm:$0xff] }
 0x191   : > { %3721 = vmatpush1.bf16.msra.mxu1 %v7144_v62  ;;  %1149 = vmatmul.mubr.f32.vlgmr.msra.gmra.mrb[0].mxu0 %v7145_v53  ;;  %v7153_v62 = vld [vmem:[#allocation36_spill] sm:$0xff] }
 0x192   : > { %3723 = vmatprep.subr.bf16.mxu1 %v7146_v47  ;;  %3341 = vmatpush1.bf16.msra.mxu0 %v7147_v52  ;;  %v7155_v47 = vld [vmem:[#allocation39_spill] sm:$0xff]  ;;  %v7156_v52 = vld [vmem:[#allocation42_spill] sm:$0xff] }
 0x193   : > { %3343 = vmatprep.subr.bf16.mxu0 %v7148_v0  ;;  %1286 = vmatprep.mubr.f32.mxu0 %v7149_v59  ;;  %v7157_v0 = vld [vmem:[#allocation48_spill] sm:$0xff] }
 0x194   : > { %2433 = vmatmul.mubr.f32.vlgmr.msra.gmra.mrb[0].mxu1 %v7145_v53  ;;  %v7159_v53 = vld [vmem:[#allocation51_spill] sm:$0xff] }
 0x195   : > { %3725 = vmatpush1.bf16.msra.mxu1 %v7150_v57  ;;  %2570 = vmatprep.mubr.f32.mxu1 %v7149_v59  ;;  %v7160_v57 = vld [vmem:[#allocation55_spill] sm:$0xff]  ;;  %v7161_v59 = vld [vmem:[#allocation60_spill] sm:$0xff] }
 0x196   : > { %3727 = vmatprep.subr.bf16.mxu1 %v7151_v7  ;;  %3345 = vmatpush1.bf16.msra.mxu0 %v7152_v55  ;;  %v7162_v7 = vld [vmem:[#allocation57_spill] sm:$0xff]  ;;  %v7163_v55 = vld [vmem:[#allocation64_spill] sm:$0xff] }
 0x197   : > { %3347 = vmatprep.subr.bf16.mxu0 %v7153_v62  ;;  %v7164_v62 = vld [vmem:[#allocation66_spill] sm:$0xff] }
 0x199   : > { %3729 = vmatpush1.bf16.msra.mxu1 %v7154_v20  ;;  %v7165_v20 = vld [vmem:[#allocation72_spill] sm:$0xff] }
 0x19a   : > { %3731 = vmatprep.subr.bf16.mxu1 %v7155_v47  ;;  %3349 = vmatpush1.bf16.msra.mxu0 %v7156_v52  ;;  %v7166_v47 = vld [vmem:[#allocation69_spill] sm:$0xff]  ;;  %v7167_v52 = vld [vmem:[#allocation76_spill] sm:$0xff] }
 0x19b   : > { %3351 = vmatprep.subr.bf16.mxu0 %v7157_v0  ;;  %v7168_v0 = vld [vmem:[#allocation78_spill] sm:$0xff] }
 0x19d   : > { %3733 = vmatpush1.bf16.msra.mxu1 %v7158_v1  ;;  %v7169_v1 = vld [vmem:[#allocation84_spill] sm:$0xff] }
 0x19e   : > { %3735 = vmatprep.subr.bf16.mxu1 %v7159_v53  ;;  %3353 = vmatpush1.bf16.msra.mxu0 %v7160_v57  ;;  %v7170_v53 = vld [vmem:[#allocation81_spill] sm:$0xff]  ;;  %v7171_v57 = vld [vmem:[#allocation88_spill] sm:$0xff] }
 0x19f   : > { %3355 = vmatprep.subr.bf16.mxu0 %v7161_v59  ;;  %v7172_v59 = vld [vmem:[#allocation90_spill] sm:$0xff] }
 0x1a1   : > { %3737 = vmatpush1.bf16.msra.mxu1 %v7162_v7  ;;  %v7173_v7 = vld [vmem:[#allocation96_spill] sm:$0xff] }
 0x1a2   : > { %3739 = vmatprep.subr.bf16.mxu1 %v7163_v55  ;;  %3357 = vmatpush1.bf16.msra.mxu0 %v7164_v62  ;;  %v7174_v55 = vld [vmem:[#allocation93_spill] sm:$0xff]  ;;  %v7175_v62 = vld [vmem:[#allocation100_spill] sm:$0xff] }
 0x1a3   : > { %3359 = vmatprep.subr.bf16.mxu0 %v7165_v20  ;;  %v7176_v20 = vld [vmem:[#allocation102_spill] sm:$0xff] }
 0x1a5   : > { %3741 = vmatpush1.bf16.msra.mxu1 %v7166_v47  ;;  %v7177_v47 = vld [vmem:[#allocation108_spill] sm:$0xff] }
 0x1a6   : > { %3743 = vmatprep.subr.bf16.mxu1 %v7167_v52  ;;  %3361 = vmatpush1.bf16.msra.mxu0 %v7168_v0  ;;  %v7178_v52 = vld [vmem:[#allocation105_spill] sm:$0xff]  ;;  %v7179_v0 = vld [vmem:[#allocation112_spill] sm:$0xff] }
 0x1a7   : > { %3363 = vmatprep.subr.bf16.mxu0 %v7169_v1  ;;  %v7180_v1 = vld [vmem:[#allocation114_spill] sm:$0xff] }
 0x1a9   : > { %3745 = vmatpush1.bf16.msra.mxu1 %v7170_v53  ;;  %v7181_v53 = vld [vmem:[#allocation120_spill] sm:$0xff] }
 0x1aa   : > { %3747 = vmatprep.subr.bf16.mxu1 %v7171_v57  ;;  %3365 = vmatpush1.bf16.msra.mxu0 %v7172_v59  ;;  %v7182_v57 = vld [vmem:[#allocation117_spill] sm:$0xff]  ;;  %v7183_v59 = vld [vmem:[#allocation124_spill] sm:$0xff] }
 0x1ab   : > { %3367 = vmatprep.subr.bf16.mxu0 %v7173_v7  ;;  %v7184_v7 = vld [vmem:[#allocation126_spill] sm:$0xff] }
 0x1ad   : > { %3749 = vmatpush1.bf16.msra.mxu1 %v7174_v55  ;;  %v7185_v55 = vld [vmem:[#allocation132_spill] sm:$0xff] }
 0x1ae   : > { %3751 = vmatprep.subr.bf16.mxu1 %v7175_v62  ;;  %3369 = vmatpush1.bf16.msra.mxu0 %v7176_v20  ;;  %v7186_v62 = vld [vmem:[#allocation129_spill] sm:$0xff]  ;;  %v7187_v20 = vld [vmem:[#allocation136_spill] sm:$0xff] }
 0x1af   : > { %3371 = vmatprep.subr.bf16.mxu0 %v7177_v47  ;;  %v7188_v47 = vld [vmem:[#allocation138_spill] sm:$0xff] }
 0x1b1   : > { %3753 = vmatpush1.bf16.msra.mxu1 %v7178_v52  ;;  %v7189_v52 = vld [vmem:[#allocation144_spill] sm:$0xff] }
 0x1b2   : > { %3755 = vmatprep.subr.bf16.mxu1 %v7179_v0  ;;  %3373 = vmatpush1.bf16.msra.mxu0 %v7180_v1  ;;  %v7190_v0 = vld [vmem:[#allocation141_spill] sm:$0xff]  ;;  %v7191_v1 = vld [vmem:[#allocation148_spill] sm:$0xff] }
 0x1b3   : > { %3375 = vmatprep.subr.bf16.mxu0 %v7181_v53  ;;  %v7192_v53 = vld [vmem:[#allocation150_spill] sm:$0xff] }
 0x1b5   : > { %3757 = vmatpush1.bf16.msra.mxu1 %v7182_v57  ;;  %v7193_v57 = vld [vmem:[#allocation156_spill] sm:$0xff] }
 0x1b6   : > { %3759 = vmatprep.subr.bf16.mxu1 %v7183_v59  ;;  %3377 = vmatpush1.bf16.msra.mxu0 %v7184_v7  ;;  %v7194_v59 = vld [vmem:[#allocation153_spill] sm:$0xff]  ;;  %v7195_v7 = vld [vmem:[#allocation160_spill] sm:$0xff] }
 0x1b7   : > { %3379 = vmatprep.subr.bf16.mxu0 %v7185_v55  ;;  %v7196_v55 = vld [vmem:[#allocation162_spill] sm:$0xff] }
 0x1b9   : > { %3761 = vmatpush1.bf16.msra.mxu1 %v7186_v62  ;;  %v7197_v62 = vld [vmem:[#allocation168_spill] sm:$0xff] }
 0x1ba   : > { %3763 = vmatprep.subr.bf16.mxu1 %v7187_v20  ;;  %3381 = vmatpush1.bf16.msra.mxu0 %v7188_v47  ;;  %v7198_v20 = vld [vmem:[#allocation165_spill] sm:$0xff]  ;;  %v7199_v47 = vld [vmem:[#allocation172_spill] sm:$0xff] }
 0x1bb   : > { %3383 = vmatprep.subr.bf16.mxu0 %v7189_v52  ;;  %v7200_v52 = vld [vmem:[#allocation174_spill] sm:$0xff] }
 0x1bd   : > { %3765 = vmatpush1.bf16.msra.mxu1 %v7190_v0  ;;  %v7201_v0 = vld [vmem:[#allocation180_spill] sm:$0xff] }
 0x1be   : > { %3767 = vmatprep.subr.bf16.mxu1 %v7191_v1  ;;  %3385 = vmatpush1.bf16.msra.mxu0 %v7192_v53  ;;  %v7202_v1 = vld [vmem:[#allocation177_spill] sm:$0xff]  ;;  %v7203_v53 = vld [vmem:[#allocation184_spill] sm:$0xff] }
 0x1bf   : > { %3387 = vmatprep.subr.bf16.mxu0 %v7193_v57  ;;  %v7204_v57 = vld [vmem:[#allocation186_spill] sm:$0xff] }
 0x1c1   : > { %3769 = vmatpush1.bf16.msra.mxu1 %v7194_v59  ;;  %v7205_v59 = vld [vmem:[#allocation192_spill] sm:$0xff] }
 0x1c2   : > { %3771 = vmatprep.subr.bf16.mxu1 %v7195_v7  ;;  %3389 = vmatpush1.bf16.msra.mxu0 %v7196_v55  ;;  %v7206_v7 = vld [vmem:[#allocation13_spill] sm:$0xff] }
 0x1c3   : > { %3391 = vmatprep.subr.bf16.mxu0 %v7197_v62  ;;  %v7207_v55 = vand.u32 4294901760, %v7206_v7  ;;  %v7209_v62 = vand.u32 4294901760, %v7208_v31  ;;  %v7221_v7 = vld [vmem:[#allocation24_spill] sm:$0xff] }
 0x1c4   : > { %v7222_v31 = vand.u32 4294901760, %v7221_v7 }
 0x1c5   : > { %3773 = vmatpush1.bf16.msra.mxu1 %v7198_v20  ;;  %v3402_v36 = vpack.c.bf16 %v7209_v62, %v7207_v55  ;;  %v7210_v20 = vld [vmem:[#allocation189_spill] sm:$0xff]  ;;  %v7223_v55 = vld [vmem:[#allocation26_spill] sm:$0xff] }
 0x1c6   : > { %3775 = vmatprep.subr.bf16.mxu1 %v7199_v47  ;;  %3393 = vmatpush1.bf16.msra.mxu0 %v7200_v52  ;;  %v7211_v47 = vld [vmem:[#allocation197_spill] sm:$0xff]  ;;  %v7212_v52 = vld [vmem:[#allocation199_spill] sm:$0xff]  ;;  %v7224_v62 = vand.u32 4294901760, %v7223_v55  ;;  %v7237_v55 = vld [vmem:[#allocation32_spill] sm:$0xff] }
 0x1c7   : > { %3395 = vmatprep.subr.bf16.mxu0 %v7201_v0  ;;  %v7213_v0 = vld [vmem:[#allocation15_spill] sm:$0xff] }
 0x1c8   : > { %v7214_v28 = vand.u32 4294901760, %v7213_v0 }
 0x1c9   : > { %3777 = vmatpush1.bf16.msra.mxu1 %v7202_v1  ;;  %v7215_v1 = vld [vmem:[#allocation17_spill] sm:$0xff] }
 0x1ca   : > { %3779 = vmatprep.subr.bf16.mxu1 %v7203_v53  ;;  %3397 = vmatpush1.bf16.msra.mxu0 %v7204_v57  ;;  %v7216_v30 = vand.u32 4294901760, %v7215_v1  ;;  %v7218_v57 = vand.u32 4294901760, %v7217_v25  ;;  %v7230_v1 = vand.u32 4294901760, %v7229_v41  ;;  %v7231_v25 = vld [vmem:[#allocation28_spill] sm:$0xff] }
 0x1cb   : > { %3399 = vmatprep.subr.bf16.mxu0 %v7205_v59  ;;  %v7220_v59 = vand.u32 4294901760, %v7219_v32  ;;  %v7232_v32 = vand.u32 4294901760, %v7231_v25  ;;  %v7243_v41 = vld [vmem:[#allocation196_spill] sm:$0xff] }
 0x1cc   : > { %v3786_v53 = vpack.c.bf16 %v7216_v30, %v7214_v28  ;;  %v7233_v28 = vld [vmem:[#allocation29_spill] sm:$0xff] }
 0x1cd   : > { %3781 = vmatpush1.bf16.msra.mxu1 %v7210_v20  ;;  %v3404_v27 = vpack.c.bf16 %v7220_v59, %v7218_v57  ;;  %v3406_v20 = vpack.c.bf16 %v7224_v62, %v7222_v31  ;;  %v7235_v59 = vld [vmem:[#allocation30_spill] sm:$0xff]  ;;  %v7238_v31 = vand.u32 4294901760, %v7237_v55 }
 0x1ce   : > { %3783 = vmatprep.subr.bf16.mxu1 %v7211_v47  ;;  %3401 = vmatpush1.bf16.msra.mxu0 %v7212_v52  ;;  %v7226_v47 = vld [vmem:[#allocation209_spill] sm:$0xff]  ;;  %v7227_v52 = vld [vmem:[#allocation22_spill] sm:$0xff]  ;;  %v7236_v7 = vand.u32 4294901760, %v7235_v59  ;;  %v7254_v59 = vld [vmem:[#allocation44_spill] sm:$0xff] }
 0x1cf   : > { %3403 = vmatprep.subr.bf16.mxu0 %v3402_v36  ;;  %v7228_v0 = vand.u32 4294901760, %v7227_v52  ;;  %v7234_v36 = vand.u32 4294901760, %v7233_v28  ;;  %v7242_v52 = vand.u32 4294901760, %v7241_v39 }
 0x1d0   : > { %v3408_v62 = vpack.c.bf16 %v7238_v31, %v7236_v7  ;;  %v7255_v7 = vand.u32 4294901760, %v7254_v59  ;;  %v7258_v31 = vld [vmem:[#allocation50_spill] sm:$0xff]  ;;  %v7270_v59 = vld [vmem:[#allocation56_spill] sm:$0xff] }
 0x1d1   : > { %3785 = vmatpush1.bf16.msra.mxu1 %v7225_v21  ;;  %1290 = vmatmul.mubr.f32.vlgmr.msra.gmra.mrb[0].mxu0 %v7226_v47  ;;  %v3788_v30 = vpack.c.bf16 %v7230_v1, %v7228_v0  ;;  %v3790_v57 = vpack.c.bf16 %v7234_v36, %v7232_v32  ;;  %v7239_v21 = vld [vmem:[#allocation37_spill] sm:$0xff]  ;;  %v7246_v0 = vld [vmem:[#allocation35_spill] sm:$0xff] }
 0x1d2   : > { %3787 = vmatprep.subr.bf16.mxu1 %v3786_v53  ;;  %3405 = vmatpush1.bf16.msra.mxu0 %v3404_v27  ;;  %v7240_v43 = vand.u32 4294901760, %v7239_v21  ;;  %v7244_v27 = vld [vmem:[#allocation33_spill] sm:$0xff]  ;;  %v7247_v1 = vand.u32 4294901760, %v7246_v0 }
 0x1d3   : > { %3407 = vmatprep.subr.bf16.mxu0 %v3406_v20  ;;  %1553 = vmatprep.mubr.f32.mxu0 %v7243_v41  ;;  %v7245_v53 = vand.u32 4294901760, %v7244_v27  ;;  %v7248_v20 = vld [vmem:[#allocation40_spill] sm:$0xff]  ;;  %v7250_v21 = vld [vmem:[#allocation41_spill] sm:$0xff] }
 0x1d4   : > { %v3410_v46 = vpack.c.bf16 %v7242_v52, %v7240_v43  ;;  %2574 = vmatmul.mubr.f32.vlgmr.msra.gmra.mrb[0].mxu1 %v7226_v47  ;;  %v7249_v32 = vand.u32 4294901760, %v7248_v20  ;;  %v7251_v28 = vand.u32 4294901760, %v7250_v21  ;;  %v7252_v43 = vld [vmem:[#allocation43_spill] sm:$0xff]  ;;  %v7259_v52 = vand.u32 4294901760, %v7258_v31  ;;  %v7264_v20 = vld [vmem:[#allocation52_spill] sm:$0xff]  ;;  %v7266_v21 = vld [vmem:[#allocation53_spill] sm:$0xff] }
 0x1d5   : > { %3789 = vmatpush1.bf16.msra.mxu1 %v3788_v30  ;;  %v3792_v25 = vpack.c.bf16 %v7247_v1, %v7245_v53  ;;  %2837 = vmatprep.mubr.f32.mxu1 %v7243_v41  ;;  %v7253_v36 = vand.u32 4294901760, %v7252_v43  ;;  %v7256_v30 = vld [vmem:[#allocation49_spill] sm:$0xff]  ;;  %v7260_v53 = vld [vmem:[#allocation46_spill] sm:$0xff] }
 0x1d6   : > { %3791 = vmatprep.subr.bf16.mxu1 %v3790_v57  ;;  %3409 = vmatpush1.bf16.msra.mxu0 %v3408_v62  ;;  %v3794_v39 = vpack.c.bf16 %v7251_v28, %v7249_v32  ;;  %v7257_v55 = vand.u32 4294901760, %v7256_v30  ;;  %v7261_v57 = vand.u32 4294901760, %v7260_v53  ;;  %v7262_v62 = vld [vmem:[#allocation47_spill] sm:$0xff]  ;;  %v7265_v32 = vand.u32 4294901760, %v7264_v20  ;;  %v7274_v31 = vld [vmem:[#allocation62_spill] sm:$0xff] }
 0x1d7   : > { %v3412_v47 = vpack.c.bf16 %v7255_v7, %v7253_v36  ;;  %3411 = vmatprep.subr.bf16.mxu0 %v3410_v46  ;;  %v7263_v0 = vand.u32 4294901760, %v7262_v62  ;;  %v7267_v28 = vand.u32 4294901760, %v7266_v21  ;;  %v7268_v36 = vld [vmem:[#allocation54_spill] sm:$0xff]  ;;  %v7271_v7 = vand.u32 4294901760, %v7270_v59  ;;  %v7280_v20 = vld [vmem:[#allocation63_spill] sm:$0xff]  ;;  %v7282_v21 = vld [vmem:[#allocation65_spill] sm:$0xff] }
 0x1d8   : > { %v3414_v27 = vpack.c.bf16 %v7259_v52, %v7257_v55  ;;  %v7269_v46 = vand.u32 4294901760, %v7268_v36  ;;  %v7272_v55 = vld [vmem:[#allocation61_spill] sm:$0xff]  ;;  %v7275_v52 = vand.u32 4294901760, %v7274_v31  ;;  %v7286_v59 = vld [vmem:[#allocation68_spill] sm:$0xff]  ;;  %v7290_v31 = vld [vmem:[#allocation74_spill] sm:$0xff] }
 0x1d9   : > { %3793 = vmatpush1.bf16.msra.mxu1 %v3792_v25  ;;  %v3796_v1 = vpack.c.bf16 %v7263_v0, %v7261_v57  ;;  %v3798_v43 = vpack.c.bf16 %v7267_v28, %v7265_v32  ;;  %v7273_v25 = vand.u32 4294901760, %v7272_v55  ;;  %v7276_v57 = vld [vmem:[#allocation58_spill] sm:$0xff]  ;;  %v7281_v32 = vand.u32 4294901760, %v7280_v20  ;;  %v7296_v20 = vld [vmem:[#allocation75_spill] sm:$0xff] }
 0x1da   : > { %3795 = vmatprep.subr.bf16.mxu1 %v3794_v39  ;;  %3413 = vmatpush1.bf16.msra.mxu0 %v3412_v47  ;;  %v3416_v30 = vpack.c.bf16 %v7271_v7, %v7269_v46  ;;  %v7277_v39 = vand.u32 4294901760, %v7276_v57  ;;  %v7278_v47 = vld [vmem:[#allocation59_spill] sm:$0xff]  ;;  %v7283_v28 = vand.u32 4294901760, %v7282_v21  ;;  %v7287_v7 = vand.u32 4294901760, %v7286_v59  ;;  %v7298_v21 = vld [vmem:[#allocation77_spill] sm:$0xff]  ;;  %v7302_v59 = vld [vmem:[#allocation80_spill] sm:$0xff] }
 0x1db   : > { %3415 = vmatprep.subr.bf16.mxu0 %v3414_v27  ;;  %v3418_v53 = vpack.c.bf16 %v7275_v52, %v7273_v25  ;;  %v7279_v62 = vand.u32 4294901760, %v7278_v47  ;;  %v7284_v46 = vld [vmem:[#allocation67_spill] sm:$0xff]  ;;  %v7288_v25 = vld [vmem:[#allocation73_spill] sm:$0xff]  ;;  %v7291_v52 = vand.u32 4294901760, %v7290_v31  ;;  %v7306_v31 = vld [vmem:[#allocation86_spill] sm:$0xff] }
 0x1dc   : > { %v3802_v36 = vpack.c.bf16 %v7283_v28, %v7281_v32  ;;  %v7285_v27 = vand.u32 4294901760, %v7284_v46  ;;  %v7297_v32 = vand.u32 4294901760, %v7296_v20  ;;  %v7299_v28 = vand.u32 4294901760, %v7298_v21  ;;  %v7312_v20 = vld [vmem:[#allocation87_spill] sm:$0xff]  ;;  %v7314_v21 = vld [vmem:[#allocation89_spill] sm:$0xff] }
 0x1dd   : > { %3797 = vmatpush1.bf16.msra.mxu1 %v3796_v1  ;;  %v3800_v0 = vpack.c.bf16 %v7279_v62, %v7277_v39  ;;  %v7289_v1 = vand.u32 4294901760, %v7288_v25  ;;  %v7292_v39 = vld [vmem:[#allocation70_spill] sm:$0xff] }
 0x1de   : > { %3799 = vmatprep.subr.bf16.mxu1 %v3798_v43  ;;  %3417 = vmatpush1.bf16.msra.mxu0 %v3416_v30  ;;  %v3420_v55 = vpack.c.bf16 %v7287_v7, %v7285_v27  ;;  %v7293_v43 = vand.u32 4294901760, %v7292_v39  ;;  %v7294_v30 = vld [vmem:[#allocation71_spill] sm:$0xff]  ;;  %v3806_v46 = vpack.c.bf16 %v7299_v28, %v7297_v32  ;;  %v7303_v7 = vand.u32 4294901760, %v7302_v59  ;;  %v7318_v59 = vld [vmem:[#allocation92_spill] sm:$0xff] }
 0x1df   : > { %3419 = vmatprep.subr.bf16.mxu0 %v3418_v53  ;;  %v3422_v57 = vpack.c.bf16 %v7291_v52, %v7289_v1  ;;  %v7295_v47 = vand.u32 4294901760, %v7294_v30  ;;  %v7300_v27 = vld [vmem:[#allocation79_spill] sm:$0xff]  ;;  %v7304_v1 = vld [vmem:[#allocation85_spill] sm:$0xff]  ;;  %v7307_v52 = vand.u32 4294901760, %v7306_v31  ;;  %v7313_v32 = vand.u32 4294901760, %v7312_v20 }
 0x1e0   : > { %v7301_v53 = vand.u32 4294901760, %v7300_v27  ;;  %v7315_v28 = vand.u32 4294901760, %v7314_v21 }
 0x1e1   : > { %3801 = vmatpush1.bf16.msra.mxu1 %v3800_v0  ;;  %v3804_v62 = vpack.c.bf16 %v7295_v47, %v7293_v43  ;;  %v7305_v0 = vand.u32 4294901760, %v7304_v1  ;;  %v7308_v43 = vld [vmem:[#allocation82_spill] sm:$0xff] }
 0x1e2   : > { %3803 = vmatprep.subr.bf16.mxu1 %v3802_v36  ;;  %3421 = vmatpush1.bf16.msra.mxu0 %v3420_v55  ;;  %v3424_v25 = vpack.c.bf16 %v7303_v7, %v7301_v53  ;;  %v7309_v36 = vand.u32 4294901760, %v7308_v43  ;;  %v7310_v55 = vld [vmem:[#allocation83_spill] sm:$0xff]  ;;  %v3810_v27 = vpack.c.bf16 %v7315_v28, %v7313_v32  ;;  %v7319_v7 = vand.u32 4294901760, %v7318_v59 }
 0x1e3   : > { %3423 = vmatprep.subr.bf16.mxu0 %v3422_v57  ;;  %v3426_v39 = vpack.c.bf16 %v7307_v52, %v7305_v0  ;;  %v7311_v30 = vand.u32 4294901760, %v7310_v55  ;;  %v7316_v53 = vld [vmem:[#allocation91_spill] sm:$0xff]  ;;  %v7321_v0 = vld [vmem:[#allocation98_spill] sm:$0xff]  ;;  %v7326_v55 = vand.u32 4294901760, %v7088_v42  ;;  %v7332_v28 = vand.u32 4294901760, %v7094_v22 }
 0x1e4   : > { %v7317_v57 = vand.u32 4294901760, %v7316_v53  ;;  %v7322_v31 = vand.u32 4294901760, %v7321_v0  ;;  %v7336_v53 = vand.u32 4294901760, %v6963_v18  ;;  %v7339_v22 = vand.u32 4294901760, %v7021_v34 }
 0x1e5   : > { %3805 = vmatpush1.bf16.msra.mxu1 %v3804_v62  ;;  %v3808_v47 = vpack.c.bf16 %v7311_v30, %v7309_v36  ;;  %v7320_v62 = vand.u32 4294901760, %v7084_v45  ;;  %v7327_v30 = vand.u32 4294901760, %v7089_v8  ;;  %v7329_v45 = vand.u32 4294901760, %v7091_v29 }
 0x1e6   : > { %3807 = vmatprep.subr.bf16.mxu1 %v3806_v46  ;;  %3425 = vmatpush1.bf16.msra.mxu0 %v3424_v25  ;;  %v3428_v1 = vpack.c.bf16 %v7319_v7, %v7317_v57  ;;  %v7323_v46 = vand.u32 4294901760, %v7086_v14  ;;  %v7324_v25 = vld [vmem:[#allocation95_spill] sm:$0xff]  ;;  %v7331_v14 = vand.u32 4294901760, %v7093_v40  ;;  %v7334_v8 = vand.u32 4294901760, %v7096_v11 }
 0x1e7   : > { %3427 = vmatprep.subr.bf16.mxu0 %v3426_v39  ;;  %v3430_v52 = vpack.c.bf16 %v7322_v31, %v7320_v62  ;;  %v7325_v43 = vand.u32 4294901760, %v7324_v25  ;;  %v3814_v20 = vpack.c.bf16 %v7327_v30, %v7326_v55  ;;  %v7328_v39 = vand.u32 4294901760, %v7090_v38  ;;  %v7354_v25 = vld [vmem:[#allocation140_spill] sm:$0xff] }
 0x1e8   : > { %v7335_v38 = vand.u32 4294901760, %v7097_v17  ;;  %v7338_v40 = vand.u32 4294901760, %v7020_v26  ;;  %v7341_v7 = vand.u32 4294901760, %v7019_v44  ;;  %v7342_v17 = vand.u32 4294901760, %v7022_v56 }
 0x1e9   : > { %3809 = vmatpush1.bf16.msra.mxu1 %v3808_v47  ;;  %v3812_v36 = vpack.c.bf16 %v7325_v43, %v7323_v46  ;;  %v3432_v32 = vpack.c.bf16 %v7329_v45, %v7328_v39  ;;  %v7330_v47 = vand.u32 4294901760, %v7092_v35  ;;  %v7337_v35 = vand.u32 4294901760, %v7017_v15 }
 0x1ea   : > { %3811 = vmatprep.subr.bf16.mxu1 %v3810_v27  ;;  %3429 = vmatpush1.bf16.msra.mxu0 %v3428_v1  ;;  %v7333_v27 = vand.u32 4294901760, %v7095_v16  ;;  %v3818_v29 = vpack.c.bf16 %v7335_v38, %v7334_v8  ;;  %v3438_v59 = vpack.c.bf16 %v7339_v22, %v7338_v40  ;;  %v7340_v16 = vand.u32 4294901760, %v7018_v23 }
 0x1eb   : > { %3431 = vmatprep.subr.bf16.mxu0 %v3430_v52  ;;  %v3434_v21 = vpack.c.bf16 %v7331_v14, %v7330_v47  ;;  %v3436_v57 = vpack.c.bf16 %v7337_v35, %v7336_v53  ;;  %v7343_v18 = vand.u32 4294901760, %v7023_v51  ;;  %v7344_v1 = vand.u32 4294901760, %v7024_v63  ;;  %v7351_v63 = vld [vmem:[#allocation137_spill] sm:$0xff]  ;;  %v7365_v47 = vld [vmem:[#allocation152_spill] sm:$0xff] }
 0x1ec   : > { %v3816_v42 = vpack.c.bf16 %v7333_v27, %v7332_v28  ;;  %v3820_v11 = vpack.c.bf16 %v7341_v7, %v7340_v16  ;;  %v7345_v26 = vand.u32 4294901760, %v7025_v9  ;;  %v7346_v34 = vand.u32 4294901760, %v7028_v3  ;;  %v7368_v28 = vld [vmem:[#allocation158_spill] sm:$0xff] }
 0x1ed   : > { %3813 = vmatpush1.bf16.msra.mxu1 %v3812_v36  ;;  %v3822_v15 = vpack.c.bf16 %v7343_v18, %v7342_v17  ;;  %v7347_v23 = vand.u32 4294901760, %v7029_v12  ;;  %v7348_v44 = vand.u32 4294901760, %v7026_v58  ;;  %v7349_v31 = vand.u32 4294901760, %v7027_v5  ;;  %v7357_v36 = vld [vmem:[#allocation146_spill] sm:$0xff]  ;;  %v7387_v17 = vld [vmem:[#allocation175_spill] sm:$0xff] }
 0x1ee   : > { %3815 = vmatprep.subr.bf16.mxu1 %v3814_v20  ;;  %3433 = vmatpush1.bf16.msra.mxu0 %v3432_v32  ;;  %v3440_v62 = vpack.c.bf16 %v7345_v26, %v7344_v1  ;;  %v7350_v51 = vand.u32 4294901760, %v7030_v4  ;;  %v7352_v52 = vand.u32 4294901760, %v7351_v63  ;;  %v7353_v46 = vand.u32 4294901760, %v7032_v10  ;;  %v7362_v10 = vld [vmem:[#allocation149_spill] sm:$0xff] }
 0x1ef   : > { %3435 = vmatprep.subr.bf16.mxu0 %v3434_v21  ;;  %v3442_v0 = vpack.c.bf16 %v7347_v23, %v7346_v34  ;;  %v3824_v56 = vpack.c.bf16 %v7349_v31, %v7348_v44  ;;  %v7355_v3 = vand.u32 4294901760, %v7354_v25  ;;  %v7356_v12 = vand.u32 4294901760, %v7036_v2  ;;  %v7391_v26 = vld [vmem:[#allocation181_spill] sm:$0xff]  ;;  %v7393_v34 = vld [vmem:[#allocation182_spill] sm:$0xff] }
 0x1f0   : > { %v3826_v9 = vpack.c.bf16 %v7352_v52, %v7350_v51  ;;  %v7358_v58 = vand.u32 4294901760, %v7357_v36  ;;  %v7359_v5 = vand.u32 4294901760, %v7034_v61  ;;  %v7360_v30 = vand.u32 4294901760, %v7035_v13  ;;  %v7395_v44 = vld [vmem:[#allocation178_spill] sm:$0xff]  ;;  %v7399_v52 = vld [vmem:[#allocation183_spill] sm:$0xff]  ;;  %v7405_v36 = vld [vmem:[#allocation188_spill] sm:$0xff] }
 0x1f1   : > { %3817 = vmatpush1.bf16.msra.mxu1 %v3816_v42  ;;  %v3444_v43 = vpack.c.bf16 %v7355_v3, %v7353_v46  ;;  %v7361_v20 = vand.u32 4294901760, %v7110_v50  ;;  %v7363_v39 = vand.u32 4294901760, %v7362_v10  ;;  %v7364_v32 = vand.u32 4294901760, %v7112_v19  ;;  %v7401_v46 = vld [vmem:[#allocation185_spill] sm:$0xff] }
 0x1f2   : > { %3819 = vmatprep.subr.bf16.mxu1 %v3818_v29  ;;  %3437 = vmatpush1.bf16.msra.mxu0 %v3436_v57  ;;  %v3446_v55 = vpack.c.bf16 %v7358_v58, %v7356_v12  ;;  %v3828_v4 = vpack.c.bf16 %v7360_v30, %v7359_v5  ;;  %v7366_v2 = vand.u32 4294901760, %v7365_v47  ;;  %v7367_v21 = vand.u32 4294901760, %v7044_v37  ;;  %v7377_v57 = vld [vmem:[#allocation170_spill] sm:$0xff]  ;;  %v7407_v5 = vld [vmem:[#allocation193_spill] sm:$0xff] }
 0x1f3   : > { %3439 = vmatprep.subr.bf16.mxu0 %v3438_v59  ;;  %v3830_v45 = vpack.c.bf16 %v7363_v39, %v7361_v20  ;;  %v7369_v61 = vand.u32 4294901760, %v7368_v28  ;;  %v7370_v13 = vand.u32 4294901760, %v7116_v33  ;;  %v7371_v42 = vand.u32 4294901760, %v7115_v49  ;;  %v7379_v49 = vld [vmem:[#allocation166_spill] sm:$0xff]  ;;  %v7381_v59 = vld [vmem:[#allocation167_spill] sm:$0xff] }
 0x1f4   : > { %v3448_v14 = vpack.c.bf16 %v7366_v2, %v7364_v32  ;;  %v7372_v8 = vand.u32 4294901760, %v7047_v6  ;;  %v7373_v19 = vand.u32 4294901760, %v7048_v60  ;;  %v7374_v29 = vand.u32 4294901760, %v7119_v54  ;;  %v7383_v60 = vld [vmem:[#allocation171_spill] sm:$0xff]  ;;  %v7385_v54 = vld [vmem:[#allocation173_spill] sm:$0xff]  ;;  %v7411_v39 = vld [vmem:[#allocation190_spill] sm:$0xff] }
 0x1f5   : > { %3821 = vmatpush1.bf16.msra.mxu1 %v3820_v11  ;;  %v3450_v27 = vpack.c.bf16 %v7369_v61, %v7367_v21  ;;  %v3832_v50 = vpack.c.bf16 %v7371_v42, %v7370_v13  ;;  %v7375_v37 = vand.u32 4294901760, %v6996_v24  ;;  %v7376_v35 = vand.u32 4294901760, %v7052_v48  ;;  %v7413_v32 = vld [vmem:[#allocation191_spill] sm:$0xff]  ;;  %v7417_v28 = vld [vmem:[#allocation198_spill] sm:$0xff]  ;;  %v7419_v13 = vld [vmem:[#allocation200_spill] sm:$0xff] }
 0x1f6   : > { %3823 = vmatprep.subr.bf16.mxu1 %v3822_v15  ;;  %3441 = vmatpush1.bf16.msra.mxu0 %v3440_v62  ;;  %v3834_v38 = vpack.c.bf16 %v7373_v19, %v7372_v8  ;;  %v7378_v33 = vand.u32 4294901760, %v7377_v57  ;;  %v7380_v22 = vand.u32 4294901760, %v7379_v49  ;;  %v7382_v16 = vand.u32 4294901760, %v7381_v59  ;;  %v7389_v15 = vld [vmem:[#allocation176_spill] sm:$0xff]  ;;  %v7430_v49 = vld [vmem:[#allocation18_spill] sm:$0xff]  ;;  %v7432_v59 = vld [vmem:[#allocation21_spill] sm:$0xff] }
 0x1f7   : > { %3443 = vmatprep.subr.bf16.mxu0 %v3442_v0  ;;  %v3452_v53 = vpack.c.bf16 %v7375_v37, %v7374_v29  ;;  %v7384_v7 = vand.u32 4294901760, %v7383_v60  ;;  %v7386_v11 = vand.u32 4294901760, %v7385_v54  ;;  %v7388_v18 = vand.u32 4294901760, %v7387_v17  ;;  %v7425_v37 = vld [vmem:[#allocation204_spill] sm:$0xff]  ;;  %v7437_v54 = vld [vmem:[#allocation39_spill] sm:$0xff]  ;;  %v7440_v17 = vld [vmem:[#allocation45_spill] sm:$0xff] }
 0x1f8   : > { %v3454_v40 = vpack.c.bf16 %v7378_v33, %v7376_v35  ;;  %v3836_v6 = vpack.c.bf16 %v7382_v16, %v7380_v22  ;;  %v7390_v48 = vand.u32 4294901760, %v7389_v15  ;;  %v7392_v62 = vand.u32 4294901760, %v7391_v26  ;;  %v7427_v57 = vld [vmem:[#allocation12_spill] sm:$0xff]  ;;  %v7428_v33 = vld [vmem:[#allocation206_spill] sm:$0xff]  ;;  %v7431_v22 = vld [vmem:[#allocation25_spill] sm:$0xff] }
 0x1f9   : > { %3825 = vmatpush1.bf16.msra.mxu1 %v3824_v56  ;;  %v3838_v24 = vpack.c.bf16 %v7386_v11, %v7384_v7  ;;  %v7394_v23 = vand.u32 4294901760, %v7393_v34  ;;  %v7396_v31 = vand.u32 4294901760, %v7395_v44  ;;  %v7397_v56 = vld [vmem:[#allocation179_spill] sm:$0xff]  ;;  %v7402_v25 = vand.u32 4294901760, %v7401_v46  ;;  %v7435_v60 = vld [vmem:[#allocation36_spill] sm:$0xff]  ;;  %v7436_v7 = vld [vmem:[#allocation34_spill] sm:$0xff] }
 0x1fa   : > { %3827 = vmatprep.subr.bf16.mxu1 %v3826_v9  ;;  %3445 = vmatpush1.bf16.msra.mxu0 %v3444_v43  ;;  %v3456_v1 = vpack.c.bf16 %v7390_v48, %v7388_v18  ;;  %v7398_v51 = vand.u32 4294901760, %v7397_v56  ;;  %v7400_v9 = vand.u32 4294901760, %v7399_v52  ;;  %v7403_v43 = vld [vmem:[#allocation187_spill] sm:$0xff]  ;;  %v7406_v58 = vand.u32 4294901760, %v7405_v36  ;;  %v7438_v11 = vld [vmem:[#allocation42_spill] sm:$0xff]  ;;  %v7444_v48 = vld [vmem:[#allocation57_spill] sm:$0xff] }
 0x1fb   : > { %3447 = vmatprep.subr.bf16.mxu0 %v3446_v55  ;;  %v3458_v0 = vpack.c.bf16 %v7394_v23, %v7392_v62  ;;  %v7404_v12 = vand.u32 4294901760, %v7403_v43  ;;  %v7408_v30 = vand.u32 4294901760, %v7407_v5  ;;  %v7414_v47 = vand.u32 4294901760, %v7413_v32  ;;  %v7433_v16 = vld [vmem:[#allocation27_spill] sm:$0xff]  ;;  %v7446_v26 = vld [vmem:[#allocation66_spill] sm:$0xff]  ;;  %v7447_v62 = vld [vmem:[#allocation72_spill] sm:$0xff] }
 0x1fc   : > { %v3840_v63 = vpack.c.bf16 %v7398_v51, %v7396_v31  ;;  %v3842_v3 = vpack.c.bf16 %v7402_v25, %v7400_v9  ;;  %v7418_v61 = vand.u32 4294901760, %v7417_v28  ;;  %v7420_v42 = vand.u32 4294901760, %v7419_v13  ;;  %v7441_v18 = vld [vmem:[#allocation51_spill] sm:$0xff]  ;;  %v7448_v34 = vld [vmem:[#allocation69_spill] sm:$0xff]  ;;  %v7449_v23 = vld [vmem:[#allocation76_spill] sm:$0xff] }
 0x1fd   : > { %3829 = vmatpush1.bf16.msra.mxu1 %v3828_v4  ;;  %v3460_v55 = vpack.c.bf16 %v7406_v58, %v7404_v12  ;;  %v7409_v4 = vld [vmem:[#allocation194_spill] sm:$0xff]  ;;  %v7442_v15 = vld [vmem:[#allocation55_spill] sm:$0xff]  ;;  %v7451_v44 = vld [vmem:[#allocation84_spill] sm:$0xff] }
 0x1fe   : > { %3831 = vmatprep.subr.bf16.mxu1 %v3830_v45  ;;  %3449 = vmatpush1.bf16.msra.mxu0 %v3448_v14  ;;  %v7410_v20 = vand.u32 4294901760, %v7409_v4  ;;  %v7412_v45 = vand.u32 4294901760, %v7411_v39  ;;  %v7415_v14 = vld [vmem:[#allocation195_spill] sm:$0xff]  ;;  %v7452_v31 = vld [vmem:[#allocation81_spill] sm:$0xff]  ;;  %v7453_v56 = vld [vmem:[#allocation88_spill] sm:$0xff] }
 0x1ff   : > { %3451 = vmatprep.subr.bf16.mxu0 %v3450_v27  ;;  %v7416_v21 = vand.u32 4294901760, %v7415_v14  ;;  %v7454_v51 = vld [vmem:[#allocation90_spill] sm:$0xff]  ;;  %v7456_v52 = vld [vmem:[#allocation93_spill] sm:$0xff]  ;;  %v7457_v9 = vld [vmem:[#allocation100_spill] sm:$0xff] }
 0x200   : > { %v3462_v10 = vpack.c.bf16 %v7410_v20, %v7408_v30  ;;  %v3844_v2 = vpack.c.bf16 %v7414_v47, %v7412_v45  ;;  %v7458_v46 = vld [vmem:[#allocation102_spill] sm:$0xff]  ;;  %v7459_v25 = vld [vmem:[#allocation108_spill] sm:$0xff]  ;;  %v7464_v58 = vld [vmem:[#allocation117_spill] sm:$0xff] }
 0x201   : > { %3833 = vmatpush1.bf16.msra.mxu1 %v3832_v50  ;;  %v3846_v27 = vpack.c.bf16 %v7418_v61, %v7416_v21  ;;  %v7421_v50 = vld [vmem:[#allocation201_spill] sm:$0xff]  ;;  %v7461_v43 = vld [vmem:[#allocation112_spill] sm:$0xff]  ;;  %v7462_v12 = vld [vmem:[#allocation114_spill] sm:$0xff] }
 0x202   : > { %3835 = vmatprep.subr.bf16.mxu1 %v3834_v38  ;;  %3453 = vmatpush1.bf16.msra.mxu0 %v3452_v53  ;;  %v7422_v8 = vand.u32 4294901760, %v7421_v50  ;;  %v7423_v38 = vld [vmem:[#allocation203_spill] sm:$0xff]  ;;  %v7426_v53 = vand.u32 4294901760, %v7425_v37  ;;  %v7463_v36 = vld [vmem:[#allocation120_spill] sm:$0xff]  ;;  %v7466_v5 = vld [vmem:[#allocation126_spill] sm:$0xff] }
 0x203   : > { %3455 = vmatprep.subr.bf16.mxu0 %v3454_v40  ;;  %v7424_v29 = vand.u32 4294901760, %v7423_v38  ;;  %v7429_v40 = vld [vmem:[#allocation16_spill] sm:$0xff]  ;;  %v7468_v4 = vld [vmem:[#allocation129_spill] sm:$0xff]  ;;  %v7474_v47 = vld [vmem:[#allocation150_spill] sm:$0xff] }
 0x204   : > { %v3464_v19 = vpack.c.bf16 %v7422_v8, %v7420_v42  ;;  %v7467_v30 = vld [vmem:[#allocation132_spill] sm:$0xff]  ;;  %v7472_v45 = vld [vmem:[#allocation141_spill] sm:$0xff]  ;;  %v7478_v28 = vld [vmem:[#allocation162_spill] sm:$0xff] }
 0x205   : > { %3837 = vmatpush1.bf16.msra.mxu1 %v3836_v6  ;;  %v3848_v35 = vpack.c.bf16 %v7426_v53, %v7424_v29  ;;  %v7434_v6 = vld [vmem:[#allocation31_spill] sm:$0xff]  ;;  %v7469_v20 = vld [vmem:[#allocation136_spill] sm:$0xff]  ;;  %v7476_v14 = vld [vmem:[#allocation153_spill] sm:$0xff] }
 0x206   : > { %3839 = vmatprep.subr.bf16.mxu1 %v3838_v24  ;;  %3457 = vmatpush1.bf16.msra.mxu0 %v3456_v1  ;;  %v7439_v24 = vld [vmem:[#allocation48_spill] sm:$0xff]  ;;  %v7482_v42 = vld [vmem:[#allocation174_spill] sm:$0xff]  ;;  %v7484_v8 = vld [vmem:[#allocation177_spill] sm:$0xff] }
 0x207   : > { %3459 = vmatprep.subr.bf16.mxu0 %v3458_v0  ;;  %v7445_v1 = vld [vmem:[#allocation64_spill] sm:$0xff]  ;;  %v7450_v0 = vld [vmem:[#allocation78_spill] sm:$0xff]  ;;  %v7488_v37 = vld [vmem:[#allocation189_spill] sm:$0xff] }
 0x208   : > { %v7471_v39 = vld [vmem:[#allocation144_spill] sm:$0xff]  ;;  %v7486_v38 = vld [vmem:[#allocation186_spill] sm:$0xff]  ;;  %v7489_v53 = vld [vmem:[#allocation197_spill] sm:$0xff] }
 0x209   : > { %3841 = vmatpush1.bf16.msra.mxu1 %v3840_v63  ;;  %v7455_v63 = vld [vmem:[#allocation96_spill] sm:$0xff] }
 0x20a   : > { %3843 = vmatprep.subr.bf16.mxu1 %v3842_v3  ;;  %3461 = vmatpush1.bf16.msra.mxu0 %v3460_v55  ;;  %v7460_v3 = vld [vmem:[#allocation105_spill] sm:$0xff]  ;;  %v7465_v55 = vld [vmem:[#allocation124_spill] sm:$0xff] }
 0x20b   : > { %3463 = vmatprep.subr.bf16.mxu0 %v3462_v10  ;;  %v7470_v10 = vld [vmem:[#allocation138_spill] sm:$0xff]  ;;  %v7473_v32 = vld [vmem:[#allocation148_spill] sm:$0xff] }
 0x20c   : > { %v7477_v21 = vld [vmem:[#allocation160_spill] sm:$0xff] }
 0x20d   : > { %3845 = vmatpush1.bf16.msra.mxu1 %v3844_v2  ;;  %v7475_v2 = vld [vmem:[#allocation156_spill] sm:$0xff] }
 0x20e   : > { %3847 = vmatprep.subr.bf16.mxu1 %v3846_v27  ;;  %3465 = vmatpush1.bf16.msra.mxu0 %v3464_v19  ;;  %v7479_v61 = vld [vmem:[#allocation168_spill] sm:$0xff]  ;;  %v7480_v27 = vld [vmem:[#allocation165_spill] sm:$0xff] }
 0x20f   : > { %3467 = vmatprep.subr.bf16.mxu0 %v7427_v57  ;;  %v7481_v13 = vld [vmem:[#allocation172_spill] sm:$0xff]  ;;  %v7491_v57 = vld [vmem:[#allocation202_spill] sm:$0xff] }
 0x210   : > { %v7483_v50 = vld [vmem:[#allocation180_spill] sm:$0xff] }
 0x211   : > { %3849 = vmatpush1.bf16.msra.mxu1 %v3848_v35  ;;  %1555 = vmatmul.mubr.f32.vlgmr.msra.gmra.mrb[0].mxu0 %v7428_v33  ;;  %v7485_v19 = vld [vmem:[#allocation184_spill] sm:$0xff]  ;;  %v7490_v35 = vld [vmem:[#allocation199_spill] sm:$0xff] }
 0x212   : > { %3851 = vmatprep.subr.bf16.mxu1 %v7429_v40  ;;  %3469 = vmatpush1.bf16.msra.mxu0 %v7430_v49  ;;  %v7487_v29 = vld [vmem:[#allocation192_spill] sm:$0xff]  ;;  %v394_v40 = vlaneseq }
 0x213   : > { %3471 = vmatprep.subr.bf16.mxu0 %v7431_v22  ;;  %1690 = vmatprep.mubr.f32.mxu0 %v7243_v41 }
 0x214   : > { %2839 = vmatmul.mubr.f32.vlgmr.msra.gmra.mrb[0].mxu1 %v7428_v33  ;;  %v395_v49 = vshrl.u32 %v394_v40, 7 }
 0x215   : > { %3853 = vmatpush1.bf16.msra.mxu1 %v7432_v59  ;;  %2974 = vmatprep.mubr.f32.mxu1 %v7243_v41  ;;  %v7443_v41 = vld [vmem:[#allocation60_spill] sm:$0xff]  ;;  %v392_v59 = vld [vmem:[%s231_s7] sm:$0xf] }
 0x216   : > { %3855 = vmatprep.subr.bf16.mxu1 %v7433_v16  ;;  %3473 = vmatpush1.bf16.msra.mxu0 %v7434_v6  ;;  %v396_v22 = vsub.s32 0, %v395_v49  ;;  %v400_v16 = vsub.s32 1, %v395_v49  ;;  %v404_v6 = vsub.s32 2, %v395_v49 }
 0x217   : > { %3475 = vmatprep.subr.bf16.mxu0 %v7435_v60 }
 0x218   : > { %v397_v60 = vrot.slane %v392_v59, %v396_v22 }
 0x219   : > { %3857 = vmatpush1.bf16.msra.mxu1 %v7436_v7  ;;  %v408_v7 = vsub.s32 3, %v395_v49 }
 0x21a   : > { %3859 = vmatprep.subr.bf16.mxu1 %v7437_v54  ;;  %3477 = vmatpush1.bf16.msra.mxu0 %v7438_v11  ;;  %v401_v54 = vrot.slane %v392_v59, %v400_v16 }
 0x21b   : > { %3479 = vmatprep.subr.bf16.mxu0 %v7439_v24  ;;  %v405_v24 = vrot.slane %v392_v59, %v404_v6 }
 0x21d   : > { %3861 = vmatpush1.bf16.msra.mxu1 %v7440_v17 }
 0x21e   : > { %3863 = vmatprep.subr.bf16.mxu1 %v7441_v18  ;;  %3481 = vmatpush1.bf16.msra.mxu0 %v7442_v15  ;;  %v409_v15 = vrot.slane %v392_v59, %v408_v7 }
 0x21f   : > { %3483 = vmatprep.subr.bf16.mxu0 %v7443_v41 }
 0x221   : > { %3865 = vmatpush1.bf16.msra.mxu1 %v7444_v48 }
 0x222   : > { %3867 = vmatprep.subr.bf16.mxu1 %v7445_v1  ;;  %3485 = vmatpush1.bf16.msra.mxu0 %v7446_v26 }
 0x223   : > { %3487 = vmatprep.subr.bf16.mxu0 %v7447_v62 }
 0x225   : > { %3869 = vmatpush1.bf16.msra.mxu1 %v7448_v34 }
 0x226   : > { %3871 = vmatprep.subr.bf16.mxu1 %v7449_v23  ;;  %3489 = vmatpush1.bf16.msra.mxu0 %v7450_v0 }
 0x227   : > { %3491 = vmatprep.subr.bf16.mxu0 %v7451_v44 }
 0x229   : > { %3873 = vmatpush1.bf16.msra.mxu1 %v7452_v31 }
 0x22a   : > { %3875 = vmatprep.subr.bf16.mxu1 %v7453_v56  ;;  %3493 = vmatpush1.bf16.msra.mxu0 %v7454_v51 }
 0x22b   : > { %3495 = vmatprep.subr.bf16.mxu0 %v7455_v63 }
 0x22d   : > { %3877 = vmatpush1.bf16.msra.mxu1 %v7456_v52 }
 0x22e   : > { %3879 = vmatprep.subr.bf16.mxu1 %v7457_v9  ;;  %3497 = vmatpush1.bf16.msra.mxu0 %v7458_v46 }
 0x22f   : > { %3499 = vmatprep.subr.bf16.mxu0 %v7459_v25 }
 0x231   : > { %3881 = vmatpush1.bf16.msra.mxu1 %v7460_v3 }
 0x232   : > { %3883 = vmatprep.subr.bf16.mxu1 %v7461_v43  ;;  %3501 = vmatpush1.bf16.msra.mxu0 %v7462_v12 }
 0x233   : > { %3503 = vmatprep.subr.bf16.mxu0 %v7463_v36 }
 0x235   : > { %3885 = vmatpush1.bf16.msra.mxu1 %v7464_v58 }
 0x236   : > { %3887 = vmatprep.subr.bf16.mxu1 %v7465_v55  ;;  %3505 = vmatpush1.bf16.msra.mxu0 %v7466_v5 }
 0x237   : > { %3507 = vmatprep.subr.bf16.mxu0 %v7467_v30 }
 0x239   : > { %3889 = vmatpush1.bf16.msra.mxu1 %v7468_v4 }
 0x23a   : > { %3891 = vmatprep.subr.bf16.mxu1 %v7469_v20  ;;  %3509 = vmatpush1.bf16.msra.mxu0 %v7470_v10 }
 0x23b   : > { %3511 = vmatprep.subr.bf16.mxu0 %v7471_v39 }
 0x23d   : > { %3893 = vmatpush1.bf16.msra.mxu1 %v7472_v45 }
 0x23e   : > { %3895 = vmatprep.subr.bf16.mxu1 %v7473_v32  ;;  %3513 = vmatpush1.bf16.msra.mxu0 %v7474_v47 }
 0x23f   : > { %3515 = vmatprep.subr.bf16.mxu0 %v7475_v2 }
 0x241   : > { %3897 = vmatpush1.bf16.msra.mxu1 %v7476_v14 }
 0x242   : > { %3899 = vmatprep.subr.bf16.mxu1 %v7477_v21  ;;  %3517 = vmatpush1.bf16.msra.mxu0 %v7478_v28 }
 0x243   : > { %3519 = vmatprep.subr.bf16.mxu0 %v7479_v61 }
 0x245   : > { %3901 = vmatpush1.bf16.msra.mxu1 %v7480_v27 }
 0x246   : > { %3903 = vmatprep.subr.bf16.mxu1 %v7481_v13  ;;  %3521 = vmatpush1.bf16.msra.mxu0 %v7482_v42 }
 0x247   : > { %3523 = vmatprep.subr.bf16.mxu0 %v7483_v50 }
 0x249   : > { %3905 = vmatpush1.bf16.msra.mxu1 %v7484_v8 }
 0x24a   : > { %3907 = vmatprep.subr.bf16.mxu1 %v7485_v19  ;;  %3525 = vmatpush1.bf16.msra.mxu0 %v7486_v38 }
 0x24b   : > { %3527 = vmatprep.subr.bf16.mxu0 %v7487_v29 }
 0x24d   : > { %3909 = vmatpush1.bf16.msra.mxu1 %v7488_v37 }
 0x24e   : > { %3911 = vmatprep.subr.bf16.mxu1 %v7489_v53  ;;  %3529 = vmatpush1.bf16.msra.mxu0 %v7490_v35 }
 0x251   : > { %3913 = vmatpush1.bf16.msra.mxu1 %v7491_v57  ;;  %1692 = vmatmul.mubr.f32.vlgmr.msra.gmra.mrb[0].mxu0 %v7428_v33 }
 0x254   : > { %2976 = vmatmul.mubr.f32.vlgmr.msra.gmra.mrb[0].mxu1 %v7428_v33 }
 0x324   : > { %v1693_v11 = vpop.f32.mrb[0].mxu0 }
 0x325   : > { %v3914_v17 = vadd.f32 %v1693_v11, %v397_v60  ;;  %v1695_v18 = vpop.f32.mrb[1].mxu0 }
 0x326   : > { %v3915_v41 = vadd.f32 %v1695_v18, %v401_v54 }
 0x327   : > { %v2982_v33 = vmax.f32 %v3914_v17, 0.0  ;;  %v2977_v48 = vpop.f32.mrb[0].mxu1 }
 0x328   : > { %v3916_v1 = vadd.f32 %v2977_v48, %v405_v24  ;;  %v2983_v26 = vmax.f32 %v3915_v41, 0.0  ;;  %v2979_v62 = vpop.f32.mrb[1].mxu1 }
 0x329   : > { %2986 = vst [vmem:[%s258_s27] sm:$0xff] %v2982_v33  ;;  %v3917_v34 = vadd.f32 %v2979_v62, %v409_v15 }
 0x32a   : > { %v2984_v23 = vmax.f32 %v3916_v1, 0.0  ;;  %2987 = vst [vmem:[%s258_s27 + $0x8] sm:$0xff] %v2983_v26 }
 0x32b   : > { %v2985_v0 = vmax.f32 %v3917_v34, 0.0 }
 0x32c   : > { %2988 = vst [vmem:[%s258_s27 + $0x10] sm:$0xff] %v2984_v23 }
 0x32d   : > { %2989 = vst [vmem:[%s258_s27 + $0x18] sm:$0xff] %v2985_v0 }
 0x32e   : > { %4120 = shalt.err (!%p4117_p2)
}
 0x32f   : > { %s4121_s23 = scalar_lea.hbm %s6155_s8, 512  ;;  %s4125_s6 = scalar_lea.hbm %s6206_s3, 4096 }
 0x330   : > { %p4122_p5 = scmp.ne.s32.totalorder %s6155_s8, %s4121_s23  ;;  %p4126_p7 = scmp.lt.u32.totalorder %s6155_s8, %s6206_s3 }
 0x331   : > { %p4127_p4 = scmp.lt.u32.totalorder %s4125_s6, %s4121_s23  ;;  %p4129_p9 = scmp.lt.u32.totalorder %s4121_s23, %s6155_s8 }
 0x332   : > { %p4123_p11 = pnand %p4122_p5, %p7492_p12 }
 0x333   : > { %p4128_p0 = por %p4127_p4, %p4126_p7 }
 0x334   : > { %p4124_p8 = pneg %p4123_p11 }
 0x335   : > { %p4130_p13 = por %p4129_p9, %p4128_p0 }
 0x337   : > { %p4131_p6 = pnand %p4130_p13, %p4124_p8 }
 0x339   : > { %4134 = shalt.err (!%p4131_p6)
}
 0x33a   : > { %3946 = dma.vmem_to_hbm [thread:$0]  (%p7492_p12), %s6157_s19, 512, %s6155_s8, %s2991_s15  }
 0x33b PF: > { %p3966_p3 = scmp.ge.s32.totalorder %s4193_s17, 2  ;;  %s3019_s7 = sand.u32 1, %s4173_s12  }
 0x33c   : > { %p7493_p1 = scmp.ne.s32.totalorder %s6721_s4, 0  ;;  %s3020_s9 = scalar_lea.sflag [#allocation4], %s3019_s7 }
 0x33e   : > { %p3960_p10 = pnand %p3966_p3, %p7493_p1 }
 0x340   : > { %4168 = dma.done.wait (!%p3960_p10), %s3020_s9, 512  }
 0x341   : > { %4170 = vsyncadd (!%p3960_p10), %s3020_s9, 4294966784  ;;  %s20_s17 = sadd.s32 1, %s4193_s17   ;;  %s7494_s12 = smov %s4177_s13 }
 0x342   : > { %p17_p2 = scmp.ge.s32.totalorder %s20_s17, 10   ;;  %s7495_s13 = smov %s4181_s14 }
 0x343   : > { %s7496_s14 = smov %s4269_s24  ;;  %s7497_s15 = smov %s4189_s16 }
 0x344   : > { %s7498_s16 = smov %s7500_s18  ;;  %19 = sbr.rel (!%p17_p2) target bundleno = 9 (0x9), region = 94 }
 0x34b   :  { %3025 = vsyncpa [#allocation3], 1 }
 0x34c   :  { %3027 = vsyncpa [#allocation3 + $0x1], 1 }
 0x34d   :  { %3028 = vsyncpa [#allocation6], 1 }
 0x34e   :  { %3030 = vsyncpa [#allocation6 + $0x1], 1 }
 0x34f   :  { %3031 = vsyncpa [#allocation4], 1 }
 0x350   :  { %3033 = vsyncpa [#allocation4 + $0x1], 1 }

</bundles_post_ra>
